<compile_context>
chip_gen: v5e
topology: v5e:2x2
jax: 0.10.0
libtpu: 0.0.40
codegen_flags: <defaults>
</compile_context>

<pallas_src>
import functools

import jax
import jax.numpy as jnp
import numpy as np
from jax.experimental import pallas as pl
from jax.experimental.pallas import tpu as pltpu

NEG_SLOPE = 0.01  # nn.LeakyReLU default negative slope
BN_EPS = 1e-5     # nn.BatchNorm2d default eps


def _round_up(x, m):
    return ((x + m - 1) // m) * m


# ----------------------------- Pallas kernels ------------------------------

def _conv_bn_kernel(x_ref, ht_ref, hb_ref, w_ref, b_ref, s_ref, t_ref, o_ref, v_ref,
                    *, kh, kw, dil, pad, th, w, hrp):
    """o = BN_affine(LeakyReLU(conv(x) + b)) for one row tile of th image rows.

    x_ref : (tm, cin)   main rows of the tile (flattened (th, w)), bf16, read in place
    ht_ref: (hrp, cin)  [alignment/pad zeros | pad halo rows above the tile]
    hb_ref: (hrp, cin)  [pad halo rows below the tile | alignment/pad zeros]
    w_ref : (kh*kw, cin, cout) bf16 weights, one (cin, cout) slab per tap
    v_ref : VMEM scratch (tm + 2*hrp, cin) holding the stitched context.
    """
    tm = th * w
    # Stitch [top halo | main | bottom halo] into one contiguous context (VMEM only).
    v_ref[pl.ds(0, hrp), :] = ht_ref[...]
    v_ref[pl.ds(hrp, tm), :] = x_ref[...]
    v_ref[pl.ds(hrp + tm, hrp), :] = hb_ref[...]

    # Virtual flat index 0 (first halo row, column 0) sits at v index hrp - pad*w;
    # tap (ky, kx) for output flat index u reads v[base + ky*dil*w + kx*dil + u].
    base = hrp - pad * (w + 1)

    # Column-validity masks depend only on kx: output column x reads input column
    # x + kx*dil - pad, which must fall inside [0, w).
    col = jax.lax.broadcasted_iota(jnp.int32, (tm, 1), 0) % w
    masks = []
    for kx in range(kw):
        cshift = kx * dil - pad
        if cshift == 0:
            masks.append(None)
        else:
            masks.append((col + cshift >= 0) & (col + cshift < w))

    acc = None
    for ky in range(kh):                           # static tap loops
        for kx in range(kw):
            start = base + ky * dil * w + kx * dil
            slab = v_ref[pl.ds(start, tm), :]
            if masks[kx] is not None:
                slab = jnp.where(masks[kx], slab, jnp.zeros_like(slab))
            d = jnp.dot(slab, w_ref[ky * kw + kx], preferred_element_type=jnp.float32)
            acc = d if acc is None else acc + d

    y = acc + b_ref[...]
    y = jnp.where(y >= 0.0, y, NEG_SLOPE * y)                       # LeakyReLU
    o_ref[...] = (y * s_ref[...] + t_ref[...]).astype(o_ref.dtype)  # BN (eval) affine


def _pool2x2_sum(z, th, w):
    """Sum over non-overlapping 2x2 spatial windows of a (th*w, C) row-major tile."""
    c = z.shape[-1]
    z = z.reshape((th * w) // 2, 2, c)
    z = z[:, 0, :] + z[:, 1, :]                    # horizontal neighbour pairs
    z = z.reshape(th // 2, 2, w // 2, c)
    z = z[:, 0, :, :] + z[:, 1, :, :]              # vertical neighbour pairs
    return z.reshape((th * w) // 4, c)


def _conv5_res_softpool_kernel(a1_ref, a2_ref, a3_ref, x_ref, w5a_ref, w5b_ref, w5c_ref,
                               wsc_ref, b5_ref, bsc_ref, s_ref, t_ref, oa_ref, ob_ref,
                               *, th, w):
    """resA = shortcut + BN4(LeakyReLU(conv5([resA1|resA2|resA3]) + b5));
    resB = SoftPool2x2(resA).  The channel concat is never materialised (3 accumulated
    dots); the 1x1 shortcut conv is recomputed from the original input tile (one tiny
    extra dot, no HBM round trip); pooling is reshape/slice adds, not a matmul."""
    acc = jnp.dot(a1_ref[...], w5a_ref[...], preferred_element_type=jnp.float32)
    acc = acc + jnp.dot(a2_ref[...], w5b_ref[...], preferred_element_type=jnp.float32)
    acc = acc + jnp.dot(a3_ref[...], w5c_ref[...], preferred_element_type=jnp.float32)
    y = acc + b5_ref[...]
    y = jnp.where(y >= 0.0, y, NEG_SLOPE * y)
    y = y * s_ref[...] + t_ref[...]

    sc = jnp.dot(x_ref[...], wsc_ref[...], preferred_element_type=jnp.float32) + bsc_ref[...]
    sc = jnp.where(sc >= 0.0, sc, NEG_SLOPE * sc)

    res = y + sc
    oa_ref[...] = res.astype(oa_ref.dtype)

    # SoftPool 2x2 / stride 2 (Dropout2d in eval mode is identity).
    e = jnp.exp(jnp.minimum(res, 60.0))            # clamp only to avoid exp overflow
    num = _pool2x2_sum(res * e, th, w)
    den = _pool2x2_sum(e, th, w)
    ob_ref[...] = (num * pl.reciprocal(den, approx=True)).astype(ob_ref.dtype)


# ------------------------------ JAX wrappers --------------------------------

def _choose_th(n, h, w, target_rows=2048, min_tiles=8):
    """Largest even divisor th of H with th*W <= target_rows, keeping >= min_tiles
    grid steps (megacore + pipelining depth) when possible."""
    divs = [d for d in range(2, h + 1, 2) if h % d == 0]
    cands = [d for d in divs if d * w <= target_rows] or [divs[0]]
    good = [d for d in cands if n * (h // d) >= min_tiles]
    return max(good) if good else max(cands)


def _bn_affine(p):
    scale = p['gamma'] / jnp.sqrt(p['var'] + BN_EPS)
    shift = p['beta'] - p['mean'] * scale
    return scale, shift


def _make_halos(act_img, pad, th, hrp):
    """Per-tile halo rows: (ntiles, hrp, C) top [zeros | pad rows above] and
    bottom [pad rows below | zeros].  Tiny: ~2*pad/th of the activation."""
    n, h, w, c = act_img.shape
    nt = h // th
    zrows = jnp.zeros((n, pad, w, c), act_img.dtype)
    xp = jnp.concatenate([zrows, act_img, zrows], axis=1)            # (n, h+2p, w, c)
    top = jnp.stack([xp[:, t * th: t * th + pad] for t in range(nt)], axis=1)
    bot = jnp.stack([xp[:, t * th + th + pad: t * th + th + 2 * pad] for t in range(nt)], axis=1)
    top = top.reshape(n * nt, pad * w, c)
    bot = bot.reshape(n * nt, pad * w, c)
    zfill = jnp.zeros((n * nt, hrp - pad * w, c), act_img.dtype)
    return jnp.concatenate([zfill, top], axis=1), jnp.concatenate([bot, zfill], axis=1)


def _conv_bn(act_flat, w_hwio, b, scale, shift, *, n, h, w, dil, pad, th, cparams):
    """conv(kh x kw, dilation dil, 'same' padding pad) + LeakyReLU + BN(eval) affine."""
    cin = act_flat.shape[-1]
    kh, kw, _, cout = w_hwio.shape
    tm = th * w
    ntiles = n * (h // th)
    m = n * h * w
    hrp = _round_up(pad * (w + 1), 16)               # extended halo rows, 16-row aligned
    ht, hb = _make_halos(act_flat.reshape(n, h, w, cin), pad, th, hrp)
    wf = w_hwio.reshape(kh * kw, cin, cout).astype(jnp.bfloat16)
    kernel = functools.partial(_conv_bn_kernel, kh=kh, kw=kw, dil=dil, pad=pad,
                               th=th, w=w, hrp=hrp)
    return pl.pallas_call(
        kernel,
        grid=(ntiles,),
        in_specs=[
            pl.BlockSpec((tm, cin), lambda i: (i, 0)),            # main rows, in place
            pl.BlockSpec((None, hrp, cin), lambda i: (i, 0, 0)),  # top halo
            pl.BlockSpec((None, hrp, cin), lambda i: (i, 0, 0)),  # bottom halo
            pl.BlockSpec((kh * kw, cin, cout), lambda i: (0, 0, 0)),
            pl.BlockSpec((1, cout), lambda i: (0, 0)),
            pl.BlockSpec((1, cout), lambda i: (0, 0)),
            pl.BlockSpec((1, cout), lambda i: (0, 0)),
        ],
        out_specs=pl.BlockSpec((tm, cout), lambda i: (i, 0)),
        out_shape=jax.ShapeDtypeStruct((m, cout), jnp.bfloat16),
        scratch_shapes=[pltpu.VMEM((tm + 2 * hrp, cin), jnp.bfloat16)],
        compiler_params=cparams,
    )(act_flat, ht, hb, wf,
      b.reshape(1, cout), scale.reshape(1, cout), shift.reshape(1, cout))


def resblock_forward(x_nchw, params, th=None):
    """ResBlock forward (pooling=True, drop_out=True, use_softpool=True, eval mode).
    Returns (resB, resA) in NCHW, matching the PyTorch module."""
    n, cin, h, w = x_nchw.shape
    cout = params['w2'].shape[-1]
    assert h % 2 == 0 and w % 2 == 0, "SoftPool 2x2/2 needs even H and W"
    if th is None:
        th = _choose_th(n, h, w)
    assert h % th == 0 and th % 2 == 0
    tm = th * w
    assert tm % 8 == 0
    ntiles = n * (h // th)
    m = n * h * w

    cparams = pltpu.CompilerParams(
        dimension_semantics=("parallel",),
        vmem_limit_bytes=48 * 1024 * 1024,
    )

    # NCHW -> flattened NHWC (channels on lanes), bf16 once for all matmul consumers.
    x = jnp.transpose(x_nchw, (0, 2, 3, 1)).reshape(m, cin).astype(jnp.bfloat16)

    s1, t1 = _bn_affine(params['bn1'])
    s2, t2 = _bn_affine(params['bn2'])
    s3, t3 = _bn_affine(params['bn3'])
    s4, t4 = _bn_affine(params['bn4'])

    # conv2 (3x3, pad 1) / conv3 (3x3, dil 2, pad 2) / conv4 (2x2, dil 2, pad 1).
    resA1 = _conv_bn(x, params['w2'], params['b2'], s1, t1,
                     n=n, h=h, w=w, dil=1, pad=1, th=th, cparams=cparams)
    resA2 = _conv_bn(resA1, params['w3'], params['b3'], s2, t2,
                     n=n, h=h, w=w, dil=2, pad=2, th=th, cparams=cparams)
    resA3 = _conv_bn(resA2, params['w4'], params['b4'], s3, t3,
                     n=n, h=h, w=w, dil=2, pad=1, th=th, cparams=cparams)

    # conv5 (1x1 over implicit concat) + BN4 + recomputed 1x1 shortcut + residual
    # + SoftPool 2x2/2 (Dropout2d = identity in eval).
    w5 = params['w5'].reshape(3 * cout, cout)
    w5a = w5[:cout].astype(jnp.bfloat16)
    w5b = w5[cout:2 * cout].astype(jnp.bfloat16)
    w5c = w5[2 * cout:].astype(jnp.bfloat16)
    wsc = params['w1'].reshape(cin, cout).astype(jnp.bfloat16)

    resA_flat, resB_flat = pl.pallas_call(
        functools.partial(_conv5_res_softpool_kernel, th=th, w=w),
        grid=(ntiles,),
        in_specs=[
            pl.BlockSpec((tm, cout), lambda i: (i, 0)),      # resA1
            pl.BlockSpec((tm, cout), lambda i: (i, 0)),      # resA2
            pl.BlockSpec((tm, cout), lambda i: (i, 0)),      # resA3
            pl.BlockSpec((tm, cin), lambda i: (i, 0)),       # original x (for shortcut)
            pl.BlockSpec((cout, cout), lambda i: (0, 0)),    # w5 block 1
            pl.BlockSpec((cout, cout), lambda i: (0, 0)),    # w5 block 2
            pl.BlockSpec((cout, cout), lambda i: (0, 0)),    # w5 block 3
            pl.BlockSpec((cin, cout), lambda i: (0, 0)),     # shortcut 1x1 weight
            pl.BlockSpec((1, cout), lambda i: (0, 0)),       # b5
            pl.BlockSpec((1, cout), lambda i: (0, 0)),       # b1 (shortcut bias)
            pl.BlockSpec((1, cout), lambda i: (0, 0)),       # bn4 scale
            pl.BlockSpec((1, cout), lambda i: (0, 0)),       # bn4 shift
        ],
        out_specs=[
            pl.BlockSpec((tm, cout), lambda i: (i, 0)),
            pl.BlockSpec((tm // 4, cout), lambda i: (i, 0)),
        ],
        out_shape=(jax.ShapeDtypeStruct((m, cout), jnp.bfloat16),
                   jax.ShapeDtypeStruct((m // 4, cout), jnp.float32)),
        compiler_params=cparams,
    )(resA1, resA2, resA3, x, w5a, w5b, w5c, wsc,
      params['b5'].reshape(1, cout), params['b1'].reshape(1, cout),
      s4.reshape(1, cout), t4.reshape(1, cout))

    resA_nhwc = resA_flat.reshape(n, h, w, cout)
    resB_nhwc = resB_flat.reshape(n, h // 2, w // 2, cout)
    return (jnp.transpose(resB_nhwc, (0, 3, 1, 2)),
            jnp.transpose(resA_nhwc, (0, 3, 1, 2)).astype(jnp.float32))


# --------------------------- pure-JAX reference -----------------------------

def _leaky(x):
    return jnp.where(x >= 0, x, NEG_SLOPE * x)


def _conv_ref(x, w_hwio, b, dilation, padding):
    y = jax.lax.conv_general_dilated(
        x, w_hwio, window_strides=(1, 1),
        padding=[(padding, padding), (padding, padding)],
        rhs_dilation=(dilation, dilation),
        dimension_numbers=('NHWC', 'HWIO', 'NHWC'))
    return y + b


def _bn_ref(x, p):
    return (x - p['mean']) / jnp.sqrt(p['var'] + BN_EPS) * p['gamma'] + p['beta']


def resblock_ref(x_nchw, params):
    x = jnp.transpose(x_nchw, (0, 2, 3, 1))
    shortcut = _leaky(_conv_ref(x, params['w1'], params['b1'], 1, 0))
    resA1 = _bn_ref(_leaky(_conv_ref(x, params['w2'], params['b2'], 1, 1)), params['bn1'])
    resA2 = _bn_ref(_leaky(_conv_ref(resA1, params['w3'], params['b3'], 2, 2)), params['bn2'])
    resA3 = _bn_ref(_leaky(_conv_ref(resA2, params['w4'], params['b4'], 2, 1)), params['bn3'])
    concat = jnp.concatenate([resA1, resA2, resA3], axis=-1)
    resA = _bn_ref(_leaky(_conv_ref(concat, params['w5'], params['b5'], 1, 0)), params['bn4'])
    resA = shortcut + resA
    n, h, w, c = resA.shape
    e = jnp.exp(resA)
    num = (resA * e).reshape(n, h // 2, 2, w // 2, 2, c).sum(axis=(2, 4))
    den = e.reshape(n, h // 2, 2, w // 2, 2, c).sum(axis=(2, 4))
    resB = num / den
    return jnp.transpose(resB, (0, 3, 1, 2)), jnp.transpose(resA, (0, 3, 1, 2))


# ------------------------------- parameters ---------------------------------

def make_params(key, cin, cout):
    keys = jax.random.split(key, 32)
    it = iter(keys)

    def nk():
        return next(it)

    def wconv(kh, kw, ci, co, scale=0.15):
        return scale * jax.random.normal(nk(), (kh, kw, ci, co), jnp.float32)

    def bconv(co):
        return 0.05 * jax.random.normal(nk(), (co,), jnp.float32)

    def bn(co):
        return {
            'gamma': jax.random.uniform(nk(), (co,), jnp.float32, 0.5, 1.5),
            'beta': 0.1 * jax.random.normal(nk(), (co,), jnp.float32),
            'mean': 0.1 * jax.random.normal(nk(), (co,), jnp.float32),
            'var': jax.random.uniform(nk(), (co,), jnp.float32, 0.5, 1.5),
        }

    return {
        'w1': wconv(1, 1, cin, cout), 'b1': bconv(cout),
        'w2': wconv(3, 3, cin, cout), 'b2': bconv(cout),
        'w3': wconv(3, 3, cout, cout), 'b3': bconv(cout),
        'w4': wconv(2, 2, cout, cout), 'b4': bconv(cout),
        'w5': wconv(1, 1, 3 * cout, cout), 'b5': bconv(cout),
        'bn1': bn(cout), 'bn2': bn(cout), 'bn3': bn(cout), 'bn4': bn(cout),
    }


if __name__ == "__main__":
    key = jax.random.PRNGKey(0)
    kx, kp = jax.random.split(key)

    N, Cin, Cout, H, W = 2, 4, 8, 16, 16
    x = jax.random.normal(kx, (N, Cin, H, W), jnp.float32)
    params = make_params(kp, Cin, Cout)

    fwd = jax.jit(resblock_forward)
    resB, resA = fwd(x, params)
    jax.block_until_ready((resB, resA))

    assert resB.shape == (N, Cout, H // 2, W // 2), resB.shape
    assert resA.shape == (N, Cout, H, W), resA.shape

    refB, refA = resblock_ref(x, params)
    np.testing.assert_allclose(np.asarray(resA), np.asarray(refA), rtol=5e-2, atol=5e-2)
    np.testing.assert_allclose(np.asarray(resB), np.asarray(refB), rtol=5e-2, atol=5e-2)

    print("KERNEL_OK")
</pallas_src>

<mosaic_0001>
module attributes {stable_mosaic.version = 11 : i64} {
  func.func @_conv_bn_kernel(%arg0: i32, %arg1: memref<64x4xbf16, #tpu.memory_space<vmem>>, %arg2: memref<1x32x4xbf16, #tpu.memory_space<vmem>>, %arg3: memref<1x32x4xbf16, #tpu.memory_space<vmem>>, %arg4: memref<9x4x8xbf16, #tpu.memory_space<vmem>>, %arg5: memref<1x8xf32, #tpu.memory_space<vmem>>, %arg6: memref<1x8xf32, #tpu.memory_space<vmem>>, %arg7: memref<1x8xf32, #tpu.memory_space<vmem>>, %arg8: memref<64x8xbf16, #tpu.memory_space<vmem>>, %arg9: memref<128x4xbf16, #tpu.memory_space<vmem>>) attributes {dimension_semantics = [#tpu.dimension_semantics<parallel>], iteration_bounds = array<i64: 8>, scalar_prefetch = 0 : i64, scratch_operands = 1 : i64, tpu.core_type = #tpu.core_type<tc>, window_params = [{transform_indices = @transform_0, window_bounds = array<i64: 64, 4>}, {transform_indices = @transform_1, window_bounds = array<i64: 1, 32, 4>}, {transform_indices = @transform_2, window_bounds = array<i64: 1, 32, 4>}, {pipeline_mode = #tpu.pipeline_mode<synchronous>, transform_indices = @transform_3, window_bounds = array<i64: 9, 4, 8>}, {pipeline_mode = #tpu.pipeline_mode<synchronous>, transform_indices = @transform_4, window_bounds = array<i64: 1, 8>}, {pipeline_mode = #tpu.pipeline_mode<synchronous>, transform_indices = @transform_5, window_bounds = array<i64: 1, 8>}, {pipeline_mode = #tpu.pipeline_mode<synchronous>, transform_indices = @transform_6, window_bounds = array<i64: 1, 8>}, {transform_indices = @transform_7, window_bounds = array<i64: 64, 8>}]} {
    %c0 = arith.constant 0 : index
    %c0_0 = arith.constant 0 : index
    %c0_1 = arith.constant 0 : index
    %0 = vector.load %arg2[%c0, %c0_0, %c0_1] : memref<1x32x4xbf16, #tpu.memory_space<vmem>>, vector<1x32x4xbf16>
    %1 = vector.shape_cast %0 : vector<1x32x4xbf16> to vector<32x4xbf16>
    %c0_2 = arith.constant 0 : index
    %c0_3 = arith.constant 0 : index
    %2 = vector.load %arg9[%c0_2, %c0_3] : memref<128x4xbf16, #tpu.memory_space<vmem>>, vector<32x4xbf16>
    tpu.vector_store %arg9[%c0_2, %c0_3], %1 {strides = array<i32>} : memref<128x4xbf16, #tpu.memory_space<vmem>>, vector<32x4xbf16>,
    %c0_4 = arith.constant 0 : index
    %c0_5 = arith.constant 0 : index
    %3 = vector.load %arg1[%c0_4, %c0_5] : memref<64x4xbf16, #tpu.memory_space<vmem>>, vector<64x4xbf16>
    %c32 = arith.constant 32 : index
    %c0_6 = arith.constant 0 : index
    %4 = vector.load %arg9[%c32, %c0_6] : memref<128x4xbf16, #tpu.memory_space<vmem>>, vector<64x4xbf16>
    tpu.vector_store %arg9[%c32, %c0_6], %3 {strides = array<i32>} : memref<128x4xbf16, #tpu.memory_space<vmem>>, vector<64x4xbf16>,
    %c0_7 = arith.constant 0 : index
    %c0_8 = arith.constant 0 : index
    %c0_9 = arith.constant 0 : index
    %5 = vector.load %arg3[%c0_7, %c0_8, %c0_9] : memref<1x32x4xbf16, #tpu.memory_space<vmem>>, vector<1x32x4xbf16>
    %6 = vector.shape_cast %5 : vector<1x32x4xbf16> to vector<32x4xbf16>
    %c96 = arith.constant 96 : index
    %c0_10 = arith.constant 0 : index
    %7 = vector.load %arg9[%c96, %c0_10] : memref<128x4xbf16, #tpu.memory_space<vmem>>, vector<32x4xbf16>
    tpu.vector_store %arg9[%c96, %c0_10], %6 {strides = array<i32>} : memref<128x4xbf16, #tpu.memory_space<vmem>>, vector<32x4xbf16>,
    %8 = tpu.iota {dimensions = array<i32: 0>} : vector<64x1xi32>
    %c16_i32 = arith.constant 16 : i32
    %c0_i32 = arith.constant 0 : i32
    %9 = arith.cmpi eq, %c16_i32, %c0_i32 : i32
    %c1_i32 = arith.constant 1 : i32
    %10 = arith.select %9, %c1_i32, %c16_i32 : i32
    %11 = vector.broadcast %10 : i32 to vector<64x1xi32>
    %12 = arith.remsi %8, %11 : vector<64x1xi32>
    %c0_i32_11 = arith.constant 0 : i32
    %13 = vector.broadcast %c0_i32_11 : i32 to vector<64x1xi32>
    %14 = arith.cmpi ne, %12, %13 : vector<64x1xi32>
    %c0_i32_12 = arith.constant 0 : i32
    %15 = vector.broadcast %c0_i32_12 : i32 to vector<64x1xi32>
    %16 = arith.cmpi slt, %12, %15 : vector<64x1xi32>
    %c0_i32_13 = arith.constant 0 : i32
    %17 = arith.cmpi slt, %10, %c0_i32_13 : i32
    %18 = vector.broadcast %17 : i1 to vector<64x1xi1>
    %19 = vector.broadcast %18 : vector<64x1xi1> to vector<64x1xi1>
    %20 = arith.xori %16, %19 : vector<64x1xi1>
    %21 = arith.andi %20, %14 : vector<64x1xi1>
    %22 = vector.broadcast %10 : i32 to vector<64x1xi32>
    %23 = arith.addi %12, %22 : vector<64x1xi32>
    %24 = arith.select %21, %23, %12 : vector<64x1xi1>, vector<64x1xi32>
    %c-1_i32 = arith.constant -1 : i32
    %25 = vector.broadcast %c-1_i32 : i32 to vector<64x1xi32>
    %26 = arith.addi %24, %25 : vector<64x1xi32>
    %c0_i32_14 = arith.constant 0 : i32
    %27 = vector.broadcast %c0_i32_14 : i32 to vector<64x1xi32>
    %28 = arith.cmpi sge, %26, %27 : vector<64x1xi32>
    %c-1_i32_15 = arith.constant -1 : i32
    %29 = vector.broadcast %c-1_i32_15 : i32 to vector<64x1xi32>
    %30 = arith.addi %24, %29 : vector<64x1xi32>
    %c16_i32_16 = arith.constant 16 : i32
    %31 = vector.broadcast %c16_i32_16 : i32 to vector<64x1xi32>
    %32 = arith.cmpi slt, %30, %31 : vector<64x1xi32>
    %33 = arith.andi %28, %32 : vector<64x1xi1>
    %c1_i32_17 = arith.constant 1 : i32
    %34 = vector.broadcast %c1_i32_17 : i32 to vector<64x1xi32>
    %35 = arith.addi %24, %34 : vector<64x1xi32>
    %c0_i32_18 = arith.constant 0 : i32
    %36 = vector.broadcast %c0_i32_18 : i32 to vector<64x1xi32>
    %37 = arith.cmpi sge, %35, %36 : vector<64x1xi32>
    %c1_i32_19 = arith.constant 1 : i32
    %38 = vector.broadcast %c1_i32_19 : i32 to vector<64x1xi32>
    %39 = arith.addi %24, %38 : vector<64x1xi32>
    %c16_i32_20 = arith.constant 16 : i32
    %40 = vector.broadcast %c16_i32_20 : i32 to vector<64x1xi32>
    %41 = arith.cmpi slt, %39, %40 : vector<64x1xi32>
    %42 = arith.andi %37, %41 : vector<64x1xi1>
    %c15 = arith.constant 15 : index
    %c0_21 = arith.constant 0 : index
    %43 = vector.load %arg9[%c15, %c0_21] : memref<128x4xbf16, #tpu.memory_space<vmem>>, vector<64x4xbf16>
    %cst = arith.constant 0.000000e+00 : bf16
    %44 = vector.broadcast %cst : bf16 to vector<64x4xbf16>
    %45 = vector.shape_cast %33 : vector<64x1xi1> to vector<64x1xi1>
    %46 = vector.broadcast %45 : vector<64x1xi1> to vector<64x4xi1>
    %47 = arith.select %46, %43, %44 : vector<64x4xi1>, vector<64x4xbf16>
    %c0_22 = arith.constant 0 : index
    %c0_23 = arith.constant 0 : index
    %c0_24 = arith.constant 0 : index
    %48 = vector.load %arg4[%c0_22, %c0_23, %c0_24] : memref<9x4x8xbf16, #tpu.memory_space<vmem>>, vector<1x4x8xbf16>
    %49 = vector.shape_cast %48 : vector<1x4x8xbf16> to vector<4x8xbf16>
    %cst_25 = arith.constant dense<0.000000e+00> : vector<64x8xf32>
    %50 = tpu.matmul %47, %49, %cst_25 {dimension_numbers = #tpu.dot_dimension_numbers<[1], [0], [0], [1], [0, 0, 1, 1], [], []>} : vector<64x4xbf16>, vector<4x8xbf16>, vector<64x8xf32> -> vector<64x8xf32>
    %c16 = arith.constant 16 : index
    %c0_26 = arith.constant 0 : index
    %51 = vector.load %arg9[%c16, %c0_26] : memref<128x4xbf16, #tpu.memory_space<vmem>>, vector<64x4xbf16>
    %c1 = arith.constant 1 : index
    %c0_27 = arith.constant 0 : index
    %c0_28 = arith.constant 0 : index
    %52 = vector.load %arg4[%c1, %c0_27, %c0_28] : memref<9x4x8xbf16, #tpu.memory_space<vmem>>, vector<1x4x8xbf16>
    %53 = vector.shape_cast %52 : vector<1x4x8xbf16> to vector<4x8xbf16>
    %cst_29 = arith.constant dense<0.000000e+00> : vector<64x8xf32>
    %54 = tpu.matmul %51, %53, %cst_29 {dimension_numbers = #tpu.dot_dimension_numbers<[1], [0], [0], [1], [0, 0, 1, 1], [], []>} : vector<64x4xbf16>, vector<4x8xbf16>, vector<64x8xf32> -> vector<64x8xf32>
    %55 = arith.addf %50, %54 : vector<64x8xf32>
    %c17 = arith.constant 17 : index
    %c0_30 = arith.constant 0 : index
    %56 = vector.load %arg9[%c17, %c0_30] : memref<128x4xbf16, #tpu.memory_space<vmem>>, vector<64x4xbf16>
    %cst_31 = arith.constant 0.000000e+00 : bf16
    %57 = vector.broadcast %cst_31 : bf16 to vector<64x4xbf16>
    %58 = vector.shape_cast %42 : vector<64x1xi1> to vector<64x1xi1>
    %59 = vector.broadcast %58 : vector<64x1xi1> to vector<64x4xi1>
    %60 = arith.select %59, %56, %57 : vector<64x4xi1>, vector<64x4xbf16>
    %c2 = arith.constant 2 : index
    %c0_32 = arith.constant 0 : index
    %c0_33 = arith.constant 0 : index
    %61 = vector.load %arg4[%c2, %c0_32, %c0_33] : memref<9x4x8xbf16, #tpu.memory_space<vmem>>, vector<1x4x8xbf16>
    %62 = vector.shape_cast %61 : vector<1x4x8xbf16> to vector<4x8xbf16>
    %cst_34 = arith.constant dense<0.000000e+00> : vector<64x8xf32>
    %63 = tpu.matmul %60, %62, %cst_34 {dimension_numbers = #tpu.dot_dimension_numbers<[1], [0], [0], [1], [0, 0, 1, 1], [], []>} : vector<64x4xbf16>, vector<4x8xbf16>, vector<64x8xf32> -> vector<64x8xf32>
    %64 = arith.addf %55, %63 : vector<64x8xf32>
    %c31 = arith.constant 31 : index
    %c0_35 = arith.constant 0 : index
    %65 = vector.load %arg9[%c31, %c0_35] : memref<128x4xbf16, #tpu.memory_space<vmem>>, vector<64x4xbf16>
    %cst_36 = arith.constant 0.000000e+00 : bf16
    %66 = vector.broadcast %cst_36 : bf16 to vector<64x4xbf16>
    %67 = vector.shape_cast %33 : vector<64x1xi1> to vector<64x1xi1>
    %68 = vector.broadcast %67 : vector<64x1xi1> to vector<64x4xi1>
    %69 = arith.select %68, %65, %66 : vector<64x4xi1>, vector<64x4xbf16>
    %c3 = arith.constant 3 : index
    %c0_37 = arith.constant 0 : index
    %c0_38 = arith.constant 0 : index
    %70 = vector.load %arg4[%c3, %c0_37, %c0_38] : memref<9x4x8xbf16, #tpu.memory_space<vmem>>, vector<1x4x8xbf16>
    %71 = vector.shape_cast %70 : vector<1x4x8xbf16> to vector<4x8xbf16>
    %cst_39 = arith.constant dense<0.000000e+00> : vector<64x8xf32>
    %72 = tpu.matmul %69, %71, %cst_39 {dimension_numbers = #tpu.dot_dimension_numbers<[1], [0], [0], [1], [0, 0, 1, 1], [], []>} : vector<64x4xbf16>, vector<4x8xbf16>, vector<64x8xf32> -> vector<64x8xf32>
    %73 = arith.addf %64, %72 : vector<64x8xf32>
    %c32_40 = arith.constant 32 : index
    %c0_41 = arith.constant 0 : index
    %74 = vector.load %arg9[%c32_40, %c0_41] : memref<128x4xbf16, #tpu.memory_space<vmem>>, vector<64x4xbf16>
    %c4 = arith.constant 4 : index
    %c0_42 = arith.constant 0 : index
    %c0_43 = arith.constant 0 : index
    %75 = vector.load %arg4[%c4, %c0_42, %c0_43] : memref<9x4x8xbf16, #tpu.memory_space<vmem>>, vector<1x4x8xbf16>
    %76 = vector.shape_cast %75 : vector<1x4x8xbf16> to vector<4x8xbf16>
    %cst_44 = arith.constant dense<0.000000e+00> : vector<64x8xf32>
    %77 = tpu.matmul %74, %76, %cst_44 {dimension_numbers = #tpu.dot_dimension_numbers<[1], [0], [0], [1], [0, 0, 1, 1], [], []>} : vector<64x4xbf16>, vector<4x8xbf16>, vector<64x8xf32> -> vector<64x8xf32>
    %78 = arith.addf %73, %77 : vector<64x8xf32>
    %c33 = arith.constant 33 : index
    %c0_45 = arith.constant 0 : index
    %79 = vector.load %arg9[%c33, %c0_45] : memref<128x4xbf16, #tpu.memory_space<vmem>>, vector<64x4xbf16>
    %cst_46 = arith.constant 0.000000e+00 : bf16
    %80 = vector.broadcast %cst_46 : bf16 to vector<64x4xbf16>
    %81 = vector.shape_cast %42 : vector<64x1xi1> to vector<64x1xi1>
    %82 = vector.broadcast %81 : vector<64x1xi1> to vector<64x4xi1>
    %83 = arith.select %82, %79, %80 : vector<64x4xi1>, vector<64x4xbf16>
    %c5 = arith.constant 5 : index
    %c0_47 = arith.constant 0 : index
    %c0_48 = arith.constant 0 : index
    %84 = vector.load %arg4[%c5, %c0_47, %c0_48] : memref<9x4x8xbf16, #tpu.memory_space<vmem>>, vector<1x4x8xbf16>
    %85 = vector.shape_cast %84 : vector<1x4x8xbf16> to vector<4x8xbf16>
    %cst_49 = arith.constant dense<0.000000e+00> : vector<64x8xf32>
    %86 = tpu.matmul %83, %85, %cst_49 {dimension_numbers = #tpu.dot_dimension_numbers<[1], [0], [0], [1], [0, 0, 1, 1], [], []>} : vector<64x4xbf16>, vector<4x8xbf16>, vector<64x8xf32> -> vector<64x8xf32>
    %87 = arith.addf %78, %86 : vector<64x8xf32>
    %c47 = arith.constant 47 : index
    %c0_50 = arith.constant 0 : index
    %88 = vector.load %arg9[%c47, %c0_50] : memref<128x4xbf16, #tpu.memory_space<vmem>>, vector<64x4xbf16>
    %cst_51 = arith.constant 0.000000e+00 : bf16
    %89 = vector.broadcast %cst_51 : bf16 to vector<64x4xbf16>
    %90 = vector.shape_cast %33 : vector<64x1xi1> to vector<64x1xi1>
    %91 = vector.broadcast %90 : vector<64x1xi1> to vector<64x4xi1>
    %92 = arith.select %91, %88, %89 : vector<64x4xi1>, vector<64x4xbf16>
    %c6 = arith.constant 6 : index
    %c0_52 = arith.constant 0 : index
    %c0_53 = arith.constant 0 : index
    %93 = vector.load %arg4[%c6, %c0_52, %c0_53] : memref<9x4x8xbf16, #tpu.memory_space<vmem>>, vector<1x4x8xbf16>
    %94 = vector.shape_cast %93 : vector<1x4x8xbf16> to vector<4x8xbf16>
    %cst_54 = arith.constant dense<0.000000e+00> : vector<64x8xf32>
    %95 = tpu.matmul %92, %94, %cst_54 {dimension_numbers = #tpu.dot_dimension_numbers<[1], [0], [0], [1], [0, 0, 1, 1], [], []>} : vector<64x4xbf16>, vector<4x8xbf16>, vector<64x8xf32> -> vector<64x8xf32>
    %96 = arith.addf %87, %95 : vector<64x8xf32>
    %c48 = arith.constant 48 : index
    %c0_55 = arith.constant 0 : index
    %97 = vector.load %arg9[%c48, %c0_55] : memref<128x4xbf16, #tpu.memory_space<vmem>>, vector<64x4xbf16>
    %c7 = arith.constant 7 : index
    %c0_56 = arith.constant 0 : index
    %c0_57 = arith.constant 0 : index
    %98 = vector.load %arg4[%c7, %c0_56, %c0_57] : memref<9x4x8xbf16, #tpu.memory_space<vmem>>, vector<1x4x8xbf16>
    %99 = vector.shape_cast %98 : vector<1x4x8xbf16> to vector<4x8xbf16>
    %cst_58 = arith.constant dense<0.000000e+00> : vector<64x8xf32>
    %100 = tpu.matmul %97, %99, %cst_58 {dimension_numbers = #tpu.dot_dimension_numbers<[1], [0], [0], [1], [0, 0, 1, 1], [], []>} : vector<64x4xbf16>, vector<4x8xbf16>, vector<64x8xf32> -> vector<64x8xf32>
    %101 = arith.addf %96, %100 : vector<64x8xf32>
    %c49 = arith.constant 49 : index
    %c0_59 = arith.constant 0 : index
    %102 = vector.load %arg9[%c49, %c0_59] : memref<128x4xbf16, #tpu.memory_space<vmem>>, vector<64x4xbf16>
    %cst_60 = arith.constant 0.000000e+00 : bf16
    %103 = vector.broadcast %cst_60 : bf16 to vector<64x4xbf16>
    %104 = vector.shape_cast %42 : vector<64x1xi1> to vector<64x1xi1>
    %105 = vector.broadcast %104 : vector<64x1xi1> to vector<64x4xi1>
    %106 = arith.select %105, %102, %103 : vector<64x4xi1>, vector<64x4xbf16>
    %c8 = arith.constant 8 : index
    %c0_61 = arith.constant 0 : index
    %c0_62 = arith.constant 0 : index
    %107 = vector.load %arg4[%c8, %c0_61, %c0_62] : memref<9x4x8xbf16, #tpu.memory_space<vmem>>, vector<1x4x8xbf16>
    %108 = vector.shape_cast %107 : vector<1x4x8xbf16> to vector<4x8xbf16>
    %cst_63 = arith.constant dense<0.000000e+00> : vector<64x8xf32>
    %109 = tpu.matmul %106, %108, %cst_63 {dimension_numbers = #tpu.dot_dimension_numbers<[1], [0], [0], [1], [0, 0, 1, 1], [], []>} : vector<64x4xbf16>, vector<4x8xbf16>, vector<64x8xf32> -> vector<64x8xf32>
    %110 = arith.addf %101, %109 : vector<64x8xf32>
    %c0_64 = arith.constant 0 : index
    %c0_65 = arith.constant 0 : index
    %111 = vector.load %arg5[%c0_64, %c0_65] : memref<1x8xf32, #tpu.memory_space<vmem>>, vector<1x8xf32>
    %112 = vector.broadcast %111 : vector<1x8xf32> to vector<64x8xf32>
    %113 = arith.addf %110, %112 : vector<64x8xf32>
    %cst_66 = arith.constant 0.000000e+00 : f32
    %114 = vector.broadcast %cst_66 : f32 to vector<64x8xf32>
    %115 = arith.cmpf oge, %113, %114 : vector<64x8xf32>
    %cst_67 = arith.constant 0.00999999977 : f32
    %116 = vector.broadcast %cst_67 : f32 to vector<64x8xf32>
    %117 = arith.mulf %116, %113 : vector<64x8xf32>
    %118 = arith.select %115, %113, %117 : vector<64x8xi1>, vector<64x8xf32>
    %c0_68 = arith.constant 0 : index
    %c0_69 = arith.constant 0 : index
    %119 = vector.load %arg6[%c0_68, %c0_69] : memref<1x8xf32, #tpu.memory_space<vmem>>, vector<1x8xf32>
    %120 = vector.broadcast %119 : vector<1x8xf32> to vector<64x8xf32>
    %121 = arith.mulf %118, %120 : vector<64x8xf32>
    %c0_70 = arith.constant 0 : index
    %c0_71 = arith.constant 0 : index
    %122 = vector.load %arg7[%c0_70, %c0_71] : memref<1x8xf32, #tpu.memory_space<vmem>>, vector<1x8xf32>
    %123 = vector.broadcast %122 : vector<1x8xf32> to vector<64x8xf32>
    %124 = arith.addf %121, %123 : vector<64x8xf32>
    %125 = arith.truncf %124 : vector<64x8xf32> to vector<64x8xbf16>
    %c0_72 = arith.constant 0 : index
    %c0_73 = arith.constant 0 : index
    %126 = vector.load %arg8[%c0_72, %c0_73] : memref<64x8xbf16, #tpu.memory_space<vmem>>, vector<64x8xbf16>
    tpu.vector_store %arg8[%c0_72, %c0_73], %125 {strides = array<i32>} : memref<64x8xbf16, #tpu.memory_space<vmem>>, vector<64x8xbf16>,
    return
  }
  func.func @transform_0(%arg0: i32) -> (i32, i32) {
    %c0_i32 = arith.constant 0 : i32
    %c0_i32_0 = arith.constant 0 : i32
    return %arg0, %c0_i32 : i32, i32
  }
  func.func @transform_1(%arg0: i32) -> (i32, i32, i32) {
    %c0_i32 = arith.constant 0 : i32
    %c0_i32_0 = arith.constant 0 : i32
    %c0_i32_1 = arith.constant 0 : i32
    return %arg0, %c0_i32, %c0_i32_0 : i32, i32, i32
  }
  func.func @transform_2(%arg0: i32) -> (i32, i32, i32) {
    %c0_i32 = arith.constant 0 : i32
    %c0_i32_0 = arith.constant 0 : i32
    %c0_i32_1 = arith.constant 0 : i32
    return %arg0, %c0_i32, %c0_i32_0 : i32, i32, i32
  }
  func.func @transform_3(%arg0: i32) -> (i32, i32, i32) {
    %c0_i32 = arith.constant 0 : i32
    %c0_i32_0 = arith.constant 0 : i32
    %c0_i32_1 = arith.constant 0 : i32
    %c0_i32_2 = arith.constant 0 : i32
    return %c0_i32, %c0_i32_0, %c0_i32_1 : i32, i32, i32
  }
  func.func @transform_4(%arg0: i32) -> (i32, i32) {
    %c0_i32 = arith.constant 0 : i32
    %c0_i32_0 = arith.constant 0 : i32
    %c0_i32_1 = arith.constant 0 : i32
    return %c0_i32, %c0_i32_0 : i32, i32
  }
  func.func @transform_5(%arg0: i32) -> (i32, i32) {
    %c0_i32 = arith.constant 0 : i32
    %c0_i32_0 = arith.constant 0 : i32
    %c0_i32_1 = arith.constant 0 : i32
    return %c0_i32, %c0_i32_0 : i32, i32
  }
  func.func @transform_6(%arg0: i32) -> (i32, i32) {
    %c0_i32 = arith.constant 0 : i32
    %c0_i32_0 = arith.constant 0 : i32
    %c0_i32_1 = arith.constant 0 : i32
    return %c0_i32, %c0_i32_0 : i32, i32
  }
  func.func @transform_7(%arg0: i32) -> (i32, i32) {
    %c0_i32 = arith.constant 0 : i32
    %c0_i32_0 = arith.constant 0 : i32
    return %arg0, %c0_i32 : i32, i32
  }
}

module attributes {stable_mosaic.version = 11 : i64} {
  func.func @_conv_bn_kernel(%arg0: i32, %arg1: memref<64x8xbf16, #tpu.memory_space<vmem>>, %arg2: memref<1x48x8xbf16, #tpu.memory_space<vmem>>, %arg3: memref<1x48x8xbf16, #tpu.memory_space<vmem>>, %arg4: memref<9x8x8xbf16, #tpu.memory_space<vmem>>, %arg5: memref<1x8xf32, #tpu.memory_space<vmem>>, %arg6: memref<1x8xf32, #tpu.memory_space<vmem>>, %arg7: memref<1x8xf32, #tpu.memory_space<vmem>>, %arg8: memref<64x8xbf16, #tpu.memory_space<vmem>>, %arg9: memref<160x8xbf16, #tpu.memory_space<vmem>>) attributes {dimension_semantics = [#tpu.dimension_semantics<parallel>], iteration_bounds = array<i64: 8>, scalar_prefetch = 0 : i64, scratch_operands = 1 : i64, tpu.core_type = #tpu.core_type<tc>, window_params = [{transform_indices = @transform_0, window_bounds = array<i64: 64, 8>}, {transform_indices = @transform_1, window_bounds = array<i64: 1, 48, 8>}, {transform_indices = @transform_2, window_bounds = array<i64: 1, 48, 8>}, {pipeline_mode = #tpu.pipeline_mode<synchronous>, transform_indices = @transform_3, window_bounds = array<i64: 9, 8, 8>}, {pipeline_mode = #tpu.pipeline_mode<synchronous>, transform_indices = @transform_4, window_bounds = array<i64: 1, 8>}, {pipeline_mode = #tpu.pipeline_mode<synchronous>, transform_indices = @transform_5, window_bounds = array<i64: 1, 8>}, {pipeline_mode = #tpu.pipeline_mode<synchronous>, transform_indices = @transform_6, window_bounds = array<i64: 1, 8>}, {transform_indices = @transform_7, window_bounds = array<i64: 64, 8>}]} {
    %c0 = arith.constant 0 : index
    %c0_0 = arith.constant 0 : index
    %c0_1 = arith.constant 0 : index
    %0 = vector.load %arg2[%c0, %c0_0, %c0_1] : memref<1x48x8xbf16, #tpu.memory_space<vmem>>, vector<1x48x8xbf16>
    %1 = vector.shape_cast %0 : vector<1x48x8xbf16> to vector<48x8xbf16>
    %c0_2 = arith.constant 0 : index
    %c0_3 = arith.constant 0 : index
    %2 = vector.load %arg9[%c0_2, %c0_3] : memref<160x8xbf16, #tpu.memory_space<vmem>>, vector<48x8xbf16>
    tpu.vector_store %arg9[%c0_2, %c0_3], %1 {strides = array<i32>} : memref<160x8xbf16, #tpu.memory_space<vmem>>, vector<48x8xbf16>,
    %c0_4 = arith.constant 0 : index
    %c0_5 = arith.constant 0 : index
    %3 = vector.load %arg1[%c0_4, %c0_5] : memref<64x8xbf16, #tpu.memory_space<vmem>>, vector<64x8xbf16>
    %c48 = arith.constant 48 : index
    %c0_6 = arith.constant 0 : index
    %4 = vector.load %arg9[%c48, %c0_6] : memref<160x8xbf16, #tpu.memory_space<vmem>>, vector<64x8xbf16>
    tpu.vector_store %arg9[%c48, %c0_6], %3 {strides = array<i32>} : memref<160x8xbf16, #tpu.memory_space<vmem>>, vector<64x8xbf16>,
    %c0_7 = arith.constant 0 : index
    %c0_8 = arith.constant 0 : index
    %c0_9 = arith.constant 0 : index
    %5 = vector.load %arg3[%c0_7, %c0_8, %c0_9] : memref<1x48x8xbf16, #tpu.memory_space<vmem>>, vector<1x48x8xbf16>
    %6 = vector.shape_cast %5 : vector<1x48x8xbf16> to vector<48x8xbf16>
    %c112 = arith.constant 112 : index
    %c0_10 = arith.constant 0 : index
    %7 = vector.load %arg9[%c112, %c0_10] : memref<160x8xbf16, #tpu.memory_space<vmem>>, vector<48x8xbf16>
    tpu.vector_store %arg9[%c112, %c0_10], %6 {strides = array<i32>} : memref<160x8xbf16, #tpu.memory_space<vmem>>, vector<48x8xbf16>,
    %8 = tpu.iota {dimensions = array<i32: 0>} : vector<64x1xi32>
    %c16_i32 = arith.constant 16 : i32
    %c0_i32 = arith.constant 0 : i32
    %9 = arith.cmpi eq, %c16_i32, %c0_i32 : i32
    %c1_i32 = arith.constant 1 : i32
    %10 = arith.select %9, %c1_i32, %c16_i32 : i32
    %11 = vector.broadcast %10 : i32 to vector<64x1xi32>
    %12 = arith.remsi %8, %11 : vector<64x1xi32>
    %c0_i32_11 = arith.constant 0 : i32
    %13 = vector.broadcast %c0_i32_11 : i32 to vector<64x1xi32>
    %14 = arith.cmpi ne, %12, %13 : vector<64x1xi32>
    %c0_i32_12 = arith.constant 0 : i32
    %15 = vector.broadcast %c0_i32_12 : i32 to vector<64x1xi32>
    %16 = arith.cmpi slt, %12, %15 : vector<64x1xi32>
    %c0_i32_13 = arith.constant 0 : i32
    %17 = arith.cmpi slt, %10, %c0_i32_13 : i32
    %18 = vector.broadcast %17 : i1 to vector<64x1xi1>
    %19 = vector.broadcast %18 : vector<64x1xi1> to vector<64x1xi1>
    %20 = arith.xori %16, %19 : vector<64x1xi1>
    %21 = arith.andi %20, %14 : vector<64x1xi1>
    %22 = vector.broadcast %10 : i32 to vector<64x1xi32>
    %23 = arith.addi %12, %22 : vector<64x1xi32>
    %24 = arith.select %21, %23, %12 : vector<64x1xi1>, vector<64x1xi32>
    %c-2_i32 = arith.constant -2 : i32
    %25 = vector.broadcast %c-2_i32 : i32 to vector<64x1xi32>
    %26 = arith.addi %24, %25 : vector<64x1xi32>
    %c0_i32_14 = arith.constant 0 : i32
    %27 = vector.broadcast %c0_i32_14 : i32 to vector<64x1xi32>
    %28 = arith.cmpi sge, %26, %27 : vector<64x1xi32>
    %c-2_i32_15 = arith.constant -2 : i32
    %29 = vector.broadcast %c-2_i32_15 : i32 to vector<64x1xi32>
    %30 = arith.addi %24, %29 : vector<64x1xi32>
    %c16_i32_16 = arith.constant 16 : i32
    %31 = vector.broadcast %c16_i32_16 : i32 to vector<64x1xi32>
    %32 = arith.cmpi slt, %30, %31 : vector<64x1xi32>
    %33 = arith.andi %28, %32 : vector<64x1xi1>
    %c2_i32 = arith.constant 2 : i32
    %34 = vector.broadcast %c2_i32 : i32 to vector<64x1xi32>
    %35 = arith.addi %24, %34 : vector<64x1xi32>
    %c0_i32_17 = arith.constant 0 : i32
    %36 = vector.broadcast %c0_i32_17 : i32 to vector<64x1xi32>
    %37 = arith.cmpi sge, %35, %36 : vector<64x1xi32>
    %c2_i32_18 = arith.constant 2 : i32
    %38 = vector.broadcast %c2_i32_18 : i32 to vector<64x1xi32>
    %39 = arith.addi %24, %38 : vector<64x1xi32>
    %c16_i32_19 = arith.constant 16 : i32
    %40 = vector.broadcast %c16_i32_19 : i32 to vector<64x1xi32>
    %41 = arith.cmpi slt, %39, %40 : vector<64x1xi32>
    %42 = arith.andi %37, %41 : vector<64x1xi1>
    %c14 = arith.constant 14 : index
    %c0_20 = arith.constant 0 : index
    %43 = vector.load %arg9[%c14, %c0_20] : memref<160x8xbf16, #tpu.memory_space<vmem>>, vector<64x8xbf16>
    %cst = arith.constant 0.000000e+00 : bf16
    %44 = vector.broadcast %cst : bf16 to vector<64x8xbf16>
    %45 = vector.shape_cast %33 : vector<64x1xi1> to vector<64x1xi1>
    %46 = vector.broadcast %45 : vector<64x1xi1> to vector<64x8xi1>
    %47 = arith.select %46, %43, %44 : vector<64x8xi1>, vector<64x8xbf16>
    %c0_21 = arith.constant 0 : index
    %c0_22 = arith.constant 0 : index
    %c0_23 = arith.constant 0 : index
    %48 = vector.load %arg4[%c0_21, %c0_22, %c0_23] : memref<9x8x8xbf16, #tpu.memory_space<vmem>>, vector<1x8x8xbf16>
    %49 = vector.shape_cast %48 : vector<1x8x8xbf16> to vector<8x8xbf16>
    %cst_24 = arith.constant dense<0.000000e+00> : vector<64x8xf32>
    %50 = tpu.matmul %47, %49, %cst_24 {dimension_numbers = #tpu.dot_dimension_numbers<[1], [0], [0], [1], [0, 0, 1, 1], [], []>} : vector<64x8xbf16>, vector<8x8xbf16>, vector<64x8xf32> -> vector<64x8xf32>
    %c16 = arith.constant 16 : index
    %c0_25 = arith.constant 0 : index
    %51 = vector.load %arg9[%c16, %c0_25] : memref<160x8xbf16, #tpu.memory_space<vmem>>, vector<64x8xbf16>
    %c1 = arith.constant 1 : index
    %c0_26 = arith.constant 0 : index
    %c0_27 = arith.constant 0 : index
    %52 = vector.load %arg4[%c1, %c0_26, %c0_27] : memref<9x8x8xbf16, #tpu.memory_space<vmem>>, vector<1x8x8xbf16>
    %53 = vector.shape_cast %52 : vector<1x8x8xbf16> to vector<8x8xbf16>
    %cst_28 = arith.constant dense<0.000000e+00> : vector<64x8xf32>
    %54 = tpu.matmul %51, %53, %cst_28 {dimension_numbers = #tpu.dot_dimension_numbers<[1], [0], [0], [1], [0, 0, 1, 1], [], []>} : vector<64x8xbf16>, vector<8x8xbf16>, vector<64x8xf32> -> vector<64x8xf32>
    %55 = arith.addf %50, %54 : vector<64x8xf32>
    %c18 = arith.constant 18 : index
    %c0_29 = arith.constant 0 : index
    %56 = vector.load %arg9[%c18, %c0_29] : memref<160x8xbf16, #tpu.memory_space<vmem>>, vector<64x8xbf16>
    %cst_30 = arith.constant 0.000000e+00 : bf16
    %57 = vector.broadcast %cst_30 : bf16 to vector<64x8xbf16>
    %58 = vector.shape_cast %42 : vector<64x1xi1> to vector<64x1xi1>
    %59 = vector.broadcast %58 : vector<64x1xi1> to vector<64x8xi1>
    %60 = arith.select %59, %56, %57 : vector<64x8xi1>, vector<64x8xbf16>
    %c2 = arith.constant 2 : index
    %c0_31 = arith.constant 0 : index
    %c0_32 = arith.constant 0 : index
    %61 = vector.load %arg4[%c2, %c0_31, %c0_32] : memref<9x8x8xbf16, #tpu.memory_space<vmem>>, vector<1x8x8xbf16>
    %62 = vector.shape_cast %61 : vector<1x8x8xbf16> to vector<8x8xbf16>
    %cst_33 = arith.constant dense<0.000000e+00> : vector<64x8xf32>
    %63 = tpu.matmul %60, %62, %cst_33 {dimension_numbers = #tpu.dot_dimension_numbers<[1], [0], [0], [1], [0, 0, 1, 1], [], []>} : vector<64x8xbf16>, vector<8x8xbf16>, vector<64x8xf32> -> vector<64x8xf32>
    %64 = arith.addf %55, %63 : vector<64x8xf32>
    %c46 = arith.constant 46 : index
    %c0_34 = arith.constant 0 : index
    %65 = vector.load %arg9[%c46, %c0_34] : memref<160x8xbf16, #tpu.memory_space<vmem>>, vector<64x8xbf16>
    %cst_35 = arith.constant 0.000000e+00 : bf16
    %66 = vector.broadcast %cst_35 : bf16 to vector<64x8xbf16>
    %67 = vector.shape_cast %33 : vector<64x1xi1> to vector<64x1xi1>
    %68 = vector.broadcast %67 : vector<64x1xi1> to vector<64x8xi1>
    %69 = arith.select %68, %65, %66 : vector<64x8xi1>, vector<64x8xbf16>
    %c3 = arith.constant 3 : index
    %c0_36 = arith.constant 0 : index
    %c0_37 = arith.constant 0 : index
    %70 = vector.load %arg4[%c3, %c0_36, %c0_37] : memref<9x8x8xbf16, #tpu.memory_space<vmem>>, vector<1x8x8xbf16>
    %71 = vector.shape_cast %70 : vector<1x8x8xbf16> to vector<8x8xbf16>
    %cst_38 = arith.constant dense<0.000000e+00> : vector<64x8xf32>
    %72 = tpu.matmul %69, %71, %cst_38 {dimension_numbers = #tpu.dot_dimension_numbers<[1], [0], [0], [1], [0, 0, 1, 1], [], []>} : vector<64x8xbf16>, vector<8x8xbf16>, vector<64x8xf32> -> vector<64x8xf32>
    %73 = arith.addf %64, %72 : vector<64x8xf32>
    %c48_39 = arith.constant 48 : index
    %c0_40 = arith.constant 0 : index
    %74 = vector.load %arg9[%c48_39, %c0_40] : memref<160x8xbf16, #tpu.memory_space<vmem>>, vector<64x8xbf16>
    %c4 = arith.constant 4 : index
    %c0_41 = arith.constant 0 : index
    %c0_42 = arith.constant 0 : index
    %75 = vector.load %arg4[%c4, %c0_41, %c0_42] : memref<9x8x8xbf16, #tpu.memory_space<vmem>>, vector<1x8x8xbf16>
    %76 = vector.shape_cast %75 : vector<1x8x8xbf16> to vector<8x8xbf16>
    %cst_43 = arith.constant dense<0.000000e+00> : vector<64x8xf32>
    %77 = tpu.matmul %74, %76, %cst_43 {dimension_numbers = #tpu.dot_dimension_numbers<[1], [0], [0], [1], [0, 0, 1, 1], [], []>} : vector<64x8xbf16>, vector<8x8xbf16>, vector<64x8xf32> -> vector<64x8xf32>
    %78 = arith.addf %73, %77 : vector<64x8xf32>
    %c50 = arith.constant 50 : index
    %c0_44 = arith.constant 0 : index
    %79 = vector.load %arg9[%c50, %c0_44] : memref<160x8xbf16, #tpu.memory_space<vmem>>, vector<64x8xbf16>
    %cst_45 = arith.constant 0.000000e+00 : bf16
    %80 = vector.broadcast %cst_45 : bf16 to vector<64x8xbf16>
    %81 = vector.shape_cast %42 : vector<64x1xi1> to vector<64x1xi1>
    %82 = vector.broadcast %81 : vector<64x1xi1> to vector<64x8xi1>
    %83 = arith.select %82, %79, %80 : vector<64x8xi1>, vector<64x8xbf16>
    %c5 = arith.constant 5 : index
    %c0_46 = arith.constant 0 : index
    %c0_47 = arith.constant 0 : index
    %84 = vector.load %arg4[%c5, %c0_46, %c0_47] : memref<9x8x8xbf16, #tpu.memory_space<vmem>>, vector<1x8x8xbf16>
    %85 = vector.shape_cast %84 : vector<1x8x8xbf16> to vector<8x8xbf16>
    %cst_48 = arith.constant dense<0.000000e+00> : vector<64x8xf32>
    %86 = tpu.matmul %83, %85, %cst_48 {dimension_numbers = #tpu.dot_dimension_numbers<[1], [0], [0], [1], [0, 0, 1, 1], [], []>} : vector<64x8xbf16>, vector<8x8xbf16>, vector<64x8xf32> -> vector<64x8xf32>
    %87 = arith.addf %78, %86 : vector<64x8xf32>
    %c78 = arith.constant 78 : index
    %c0_49 = arith.constant 0 : index
    %88 = vector.load %arg9[%c78, %c0_49] : memref<160x8xbf16, #tpu.memory_space<vmem>>, vector<64x8xbf16>
    %cst_50 = arith.constant 0.000000e+00 : bf16
    %89 = vector.broadcast %cst_50 : bf16 to vector<64x8xbf16>
    %90 = vector.shape_cast %33 : vector<64x1xi1> to vector<64x1xi1>
    %91 = vector.broadcast %90 : vector<64x1xi1> to vector<64x8xi1>
    %92 = arith.select %91, %88, %89 : vector<64x8xi1>, vector<64x8xbf16>
    %c6 = arith.constant 6 : index
    %c0_51 = arith.constant 0 : index
    %c0_52 = arith.constant 0 : index
    %93 = vector.load %arg4[%c6, %c0_51, %c0_52] : memref<9x8x8xbf16, #tpu.memory_space<vmem>>, vector<1x8x8xbf16>
    %94 = vector.shape_cast %93 : vector<1x8x8xbf16> to vector<8x8xbf16>
    %cst_53 = arith.constant dense<0.000000e+00> : vector<64x8xf32>
    %95 = tpu.matmul %92, %94, %cst_53 {dimension_numbers = #tpu.dot_dimension_numbers<[1], [0], [0], [1], [0, 0, 1, 1], [], []>} : vector<64x8xbf16>, vector<8x8xbf16>, vector<64x8xf32> -> vector<64x8xf32>
    %96 = arith.addf %87, %95 : vector<64x8xf32>
    %c80 = arith.constant 80 : index
    %c0_54 = arith.constant 0 : index
    %97 = vector.load %arg9[%c80, %c0_54] : memref<160x8xbf16, #tpu.memory_space<vmem>>, vector<64x8xbf16>
    %c7 = arith.constant 7 : index
    %c0_55 = arith.constant 0 : index
    %c0_56 = arith.constant 0 : index
    %98 = vector.load %arg4[%c7, %c0_55, %c0_56] : memref<9x8x8xbf16, #tpu.memory_space<vmem>>, vector<1x8x8xbf16>
    %99 = vector.shape_cast %98 : vector<1x8x8xbf16> to vector<8x8xbf16>
    %cst_57 = arith.constant dense<0.000000e+00> : vector<64x8xf32>
    %100 = tpu.matmul %97, %99, %cst_57 {dimension_numbers = #tpu.dot_dimension_numbers<[1], [0], [0], [1], [0, 0, 1, 1], [], []>} : vector<64x8xbf16>, vector<8x8xbf16>, vector<64x8xf32> -> vector<64x8xf32>
    %101 = arith.addf %96, %100 : vector<64x8xf32>
    %c82 = arith.constant 82 : index
    %c0_58 = arith.constant 0 : index
    %102 = vector.load %arg9[%c82, %c0_58] : memref<160x8xbf16, #tpu.memory_space<vmem>>, vector<64x8xbf16>
    %cst_59 = arith.constant 0.000000e+00 : bf16
    %103 = vector.broadcast %cst_59 : bf16 to vector<64x8xbf16>
    %104 = vector.shape_cast %42 : vector<64x1xi1> to vector<64x1xi1>
    %105 = vector.broadcast %104 : vector<64x1xi1> to vector<64x8xi1>
    %106 = arith.select %105, %102, %103 : vector<64x8xi1>, vector<64x8xbf16>
    %c8 = arith.constant 8 : index
    %c0_60 = arith.constant 0 : index
    %c0_61 = arith.constant 0 : index
    %107 = vector.load %arg4[%c8, %c0_60, %c0_61] : memref<9x8x8xbf16, #tpu.memory_space<vmem>>, vector<1x8x8xbf16>
    %108 = vector.shape_cast %107 : vector<1x8x8xbf16> to vector<8x8xbf16>
    %cst_62 = arith.constant dense<0.000000e+00> : vector<64x8xf32>
    %109 = tpu.matmul %106, %108, %cst_62 {dimension_numbers = #tpu.dot_dimension_numbers<[1], [0], [0], [1], [0, 0, 1, 1], [], []>} : vector<64x8xbf16>, vector<8x8xbf16>, vector<64x8xf32> -> vector<64x8xf32>
    %110 = arith.addf %101, %109 : vector<64x8xf32>
    %c0_63 = arith.constant 0 : index
    %c0_64 = arith.constant 0 : index
    %111 = vector.load %arg5[%c0_63, %c0_64] : memref<1x8xf32, #tpu.memory_space<vmem>>, vector<1x8xf32>
    %112 = vector.broadcast %111 : vector<1x8xf32> to vector<64x8xf32>
    %113 = arith.addf %110, %112 : vector<64x8xf32>
    %cst_65 = arith.constant 0.000000e+00 : f32
    %114 = vector.broadcast %cst_65 : f32 to vector<64x8xf32>
    %115 = arith.cmpf oge, %113, %114 : vector<64x8xf32>
    %cst_66 = arith.constant 0.00999999977 : f32
    %116 = vector.broadcast %cst_66 : f32 to vector<64x8xf32>
    %117 = arith.mulf %116, %113 : vector<64x8xf32>
    %118 = arith.select %115, %113, %117 : vector<64x8xi1>, vector<64x8xf32>
    %c0_67 = arith.constant 0 : index
    %c0_68 = arith.constant 0 : index
    %119 = vector.load %arg6[%c0_67, %c0_68] : memref<1x8xf32, #tpu.memory_space<vmem>>, vector<1x8xf32>
    %120 = vector.broadcast %119 : vector<1x8xf32> to vector<64x8xf32>
    %121 = arith.mulf %118, %120 : vector<64x8xf32>
    %c0_69 = arith.constant 0 : index
    %c0_70 = arith.constant 0 : index
    %122 = vector.load %arg7[%c0_69, %c0_70] : memref<1x8xf32, #tpu.memory_space<vmem>>, vector<1x8xf32>
    %123 = vector.broadcast %122 : vector<1x8xf32> to vector<64x8xf32>
    %124 = arith.addf %121, %123 : vector<64x8xf32>
    %125 = arith.truncf %124 : vector<64x8xf32> to vector<64x8xbf16>
    %c0_71 = arith.constant 0 : index
    %c0_72 = arith.constant 0 : index
    %126 = vector.load %arg8[%c0_71, %c0_72] : memref<64x8xbf16, #tpu.memory_space<vmem>>, vector<64x8xbf16>
    tpu.vector_store %arg8[%c0_71, %c0_72], %125 {strides = array<i32>} : memref<64x8xbf16, #tpu.memory_space<vmem>>, vector<64x8xbf16>,
    return
  }
  func.func @transform_0(%arg0: i32) -> (i32, i32) {
    %c0_i32 = arith.constant 0 : i32
    %c0_i32_0 = arith.constant 0 : i32
    return %arg0, %c0_i32 : i32, i32
  }
  func.func @transform_1(%arg0: i32) -> (i32, i32, i32) {
    %c0_i32 = arith.constant 0 : i32
    %c0_i32_0 = arith.constant 0 : i32
    %c0_i32_1 = arith.constant 0 : i32
    return %arg0, %c0_i32, %c0_i32_0 : i32, i32, i32
  }
  func.func @transform_2(%arg0: i32) -> (i32, i32, i32) {
    %c0_i32 = arith.constant 0 : i32
    %c0_i32_0 = arith.constant 0 : i32
    %c0_i32_1 = arith.constant 0 : i32
    return %arg0, %c0_i32, %c0_i32_0 : i32, i32, i32
  }
  func.func @transform_3(%arg0: i32) -> (i32, i32, i32) {
    %c0_i32 = arith.constant 0 : i32
    %c0_i32_0 = arith.constant 0 : i32
    %c0_i32_1 = arith.constant 0 : i32
    %c0_i32_2 = arith.constant 0 : i32
    return %c0_i32, %c0_i32_0, %c0_i32_1 : i32, i32, i32
  }
  func.func @transform_4(%arg0: i32) -> (i32, i32) {
    %c0_i32 = arith.constant 0 : i32
    %c0_i32_0 = arith.constant 0 : i32
    %c0_i32_1 = arith.constant 0 : i32
    return %c0_i32, %c0_i32_0 : i32, i32
  }
  func.func @transform_5(%arg0: i32) -> (i32, i32) {
    %c0_i32 = arith.constant 0 : i32
    %c0_i32_0 = arith.constant 0 : i32
    %c0_i32_1 = arith.constant 0 : i32
    return %c0_i32, %c0_i32_0 : i32, i32
  }
  func.func @transform_6(%arg0: i32) -> (i32, i32) {
    %c0_i32 = arith.constant 0 : i32
    %c0_i32_0 = arith.constant 0 : i32
    %c0_i32_1 = arith.constant 0 : i32
    return %c0_i32, %c0_i32_0 : i32, i32
  }
  func.func @transform_7(%arg0: i32) -> (i32, i32) {
    %c0_i32 = arith.constant 0 : i32
    %c0_i32_0 = arith.constant 0 : i32
    return %arg0, %c0_i32 : i32, i32
  }
}

module attributes {stable_mosaic.version = 11 : i64} {
  func.func @_conv5_res_softpool_kernel(%arg0: i32, %arg1: memref<64x8xbf16, #tpu.memory_space<vmem>>, %arg2: memref<64x8xbf16, #tpu.memory_space<vmem>>, %arg3: memref<64x8xbf16, #tpu.memory_space<vmem>>, %arg4: memref<64x4xbf16, #tpu.memory_space<vmem>>, %arg5: memref<8x8xbf16, #tpu.memory_space<vmem>>, %arg6: memref<8x8xbf16, #tpu.memory_space<vmem>>, %arg7: memref<8x8xbf16, #tpu.memory_space<vmem>>, %arg8: memref<4x8xbf16, #tpu.memory_space<vmem>>, %arg9: memref<1x8xf32, #tpu.memory_space<vmem>>, %arg10: memref<1x8xf32, #tpu.memory_space<vmem>>, %arg11: memref<1x8xf32, #tpu.memory_space<vmem>>, %arg12: memref<1x8xf32, #tpu.memory_space<vmem>>, %arg13: memref<64x8xbf16, #tpu.memory_space<vmem>>, %arg14: memref<16x8xf32, #tpu.memory_space<vmem>>) attributes {dimension_semantics = [#tpu.dimension_semantics<parallel>], iteration_bounds = array<i64: 8>, scalar_prefetch = 0 : i64, scratch_operands = 0 : i64, tpu.core_type = #tpu.core_type<tc>, window_params = [{transform_indices = @transform_0, window_bounds = array<i64: 64, 8>}, {transform_indices = @transform_1, window_bounds = array<i64: 64, 8>}, {transform_indices = @transform_2, window_bounds = array<i64: 64, 8>}, {transform_indices = @transform_3, window_bounds = array<i64: 64, 4>}, {pipeline_mode = #tpu.pipeline_mode<synchronous>, transform_indices = @transform_4, window_bounds = array<i64: 8, 8>}, {pipeline_mode = #tpu.pipeline_mode<synchronous>, transform_indices = @transform_5, window_bounds = array<i64: 8, 8>}, {pipeline_mode = #tpu.pipeline_mode<synchronous>, transform_indices = @transform_6, window_bounds = array<i64: 8, 8>}, {pipeline_mode = #tpu.pipeline_mode<synchronous>, transform_indices = @transform_7, window_bounds = array<i64: 4, 8>}, {pipeline_mode = #tpu.pipeline_mode<synchronous>, transform_indices = @transform_8, window_bounds = array<i64: 1, 8>}, {pipeline_mode = #tpu.pipeline_mode<synchronous>, transform_indices = @transform_9, window_bounds = array<i64: 1, 8>}, {pipeline_mode = #tpu.pipeline_mode<synchronous>, transform_indices = @transform_10, window_bounds = array<i64: 1, 8>}, {pipeline_mode = #tpu.pipeline_mode<synchronous>, transform_indices = @transform_11, window_bounds = array<i64: 1, 8>}, {transform_indices = @transform_12, window_bounds = array<i64: 64, 8>}, {transform_indices = @transform_13, window_bounds = array<i64: 16, 8>}]} {
    %c0 = arith.constant 0 : index
    %c0_0 = arith.constant 0 : index
    %0 = vector.load %arg1[%c0, %c0_0] : memref<64x8xbf16, #tpu.memory_space<vmem>>, vector<64x8xbf16>
    %c0_1 = arith.constant 0 : index
    %c0_2 = arith.constant 0 : index
    %1 = vector.load %arg5[%c0_1, %c0_2] : memref<8x8xbf16, #tpu.memory_space<vmem>>, vector<8x8xbf16>
    %cst = arith.constant dense<0.000000e+00> : vector<64x8xf32>
    %2 = tpu.matmul %0, %1, %cst {dimension_numbers = #tpu.dot_dimension_numbers<[1], [0], [0], [1], [0, 0, 1, 1], [], []>} : vector<64x8xbf16>, vector<8x8xbf16>, vector<64x8xf32> -> vector<64x8xf32>
    %c0_3 = arith.constant 0 : index
    %c0_4 = arith.constant 0 : index
    %3 = vector.load %arg2[%c0_3, %c0_4] : memref<64x8xbf16, #tpu.memory_space<vmem>>, vector<64x8xbf16>
    %c0_5 = arith.constant 0 : index
    %c0_6 = arith.constant 0 : index
    %4 = vector.load %arg6[%c0_5, %c0_6] : memref<8x8xbf16, #tpu.memory_space<vmem>>, vector<8x8xbf16>
    %cst_7 = arith.constant dense<0.000000e+00> : vector<64x8xf32>
    %5 = tpu.matmul %3, %4, %cst_7 {dimension_numbers = #tpu.dot_dimension_numbers<[1], [0], [0], [1], [0, 0, 1, 1], [], []>} : vector<64x8xbf16>, vector<8x8xbf16>, vector<64x8xf32> -> vector<64x8xf32>
    %6 = arith.addf %2, %5 : vector<64x8xf32>
    %c0_8 = arith.constant 0 : index
    %c0_9 = arith.constant 0 : index
    %7 = vector.load %arg3[%c0_8, %c0_9] : memref<64x8xbf16, #tpu.memory_space<vmem>>, vector<64x8xbf16>
    %c0_10 = arith.constant 0 : index
    %c0_11 = arith.constant 0 : index
    %8 = vector.load %arg7[%c0_10, %c0_11] : memref<8x8xbf16, #tpu.memory_space<vmem>>, vector<8x8xbf16>
    %cst_12 = arith.constant dense<0.000000e+00> : vector<64x8xf32>
    %9 = tpu.matmul %7, %8, %cst_12 {dimension_numbers = #tpu.dot_dimension_numbers<[1], [0], [0], [1], [0, 0, 1, 1], [], []>} : vector<64x8xbf16>, vector<8x8xbf16>, vector<64x8xf32> -> vector<64x8xf32>
    %10 = arith.addf %6, %9 : vector<64x8xf32>
    %c0_13 = arith.constant 0 : index
    %c0_14 = arith.constant 0 : index
    %11 = vector.load %arg9[%c0_13, %c0_14] : memref<1x8xf32, #tpu.memory_space<vmem>>, vector<1x8xf32>
    %12 = vector.broadcast %11 : vector<1x8xf32> to vector<64x8xf32>
    %13 = arith.addf %10, %12 : vector<64x8xf32>
    %cst_15 = arith.constant 0.000000e+00 : f32
    %14 = vector.broadcast %cst_15 : f32 to vector<64x8xf32>
    %15 = arith.cmpf oge, %13, %14 : vector<64x8xf32>
    %cst_16 = arith.constant 0.00999999977 : f32
    %16 = vector.broadcast %cst_16 : f32 to vector<64x8xf32>
    %17 = arith.mulf %16, %13 : vector<64x8xf32>
    %18 = arith.select %15, %13, %17 : vector<64x8xi1>, vector<64x8xf32>
    %c0_17 = arith.constant 0 : index
    %c0_18 = arith.constant 0 : index
    %19 = vector.load %arg11[%c0_17, %c0_18] : memref<1x8xf32, #tpu.memory_space<vmem>>, vector<1x8xf32>
    %20 = vector.broadcast %19 : vector<1x8xf32> to vector<64x8xf32>
    %21 = arith.mulf %18, %20 : vector<64x8xf32>
    %c0_19 = arith.constant 0 : index
    %c0_20 = arith.constant 0 : index
    %22 = vector.load %arg12[%c0_19, %c0_20] : memref<1x8xf32, #tpu.memory_space<vmem>>, vector<1x8xf32>
    %23 = vector.broadcast %22 : vector<1x8xf32> to vector<64x8xf32>
    %24 = arith.addf %21, %23 : vector<64x8xf32>
    %c0_21 = arith.constant 0 : index
    %c0_22 = arith.constant 0 : index
    %25 = vector.load %arg4[%c0_21, %c0_22] : memref<64x4xbf16, #tpu.memory_space<vmem>>, vector<64x4xbf16>
    %c0_23 = arith.constant 0 : index
    %c0_24 = arith.constant 0 : index
    %26 = vector.load %arg8[%c0_23, %c0_24] : memref<4x8xbf16, #tpu.memory_space<vmem>>, vector<4x8xbf16>
    %cst_25 = arith.constant dense<0.000000e+00> : vector<64x8xf32>
    %27 = tpu.matmul %25, %26, %cst_25 {dimension_numbers = #tpu.dot_dimension_numbers<[1], [0], [0], [1], [0, 0, 1, 1], [], []>} : vector<64x4xbf16>, vector<4x8xbf16>, vector<64x8xf32> -> vector<64x8xf32>
    %c0_26 = arith.constant 0 : index
    %c0_27 = arith.constant 0 : index
    %28 = vector.load %arg10[%c0_26, %c0_27] : memref<1x8xf32, #tpu.memory_space<vmem>>, vector<1x8xf32>
    %29 = vector.broadcast %28 : vector<1x8xf32> to vector<64x8xf32>
    %30 = arith.addf %27, %29 : vector<64x8xf32>
    %cst_28 = arith.constant 0.000000e+00 : f32
    %31 = vector.broadcast %cst_28 : f32 to vector<64x8xf32>
    %32 = arith.cmpf oge, %30, %31 : vector<64x8xf32>
    %cst_29 = arith.constant 0.00999999977 : f32
    %33 = vector.broadcast %cst_29 : f32 to vector<64x8xf32>
    %34 = arith.mulf %33, %30 : vector<64x8xf32>
    %35 = arith.select %32, %30, %34 : vector<64x8xi1>, vector<64x8xf32>
    %36 = arith.addf %24, %35 : vector<64x8xf32>
    %37 = arith.truncf %36 : vector<64x8xf32> to vector<64x8xbf16>
    %c0_30 = arith.constant 0 : index
    %c0_31 = arith.constant 0 : index
    %38 = vector.load %arg13[%c0_30, %c0_31] : memref<64x8xbf16, #tpu.memory_space<vmem>>, vector<64x8xbf16>
    tpu.vector_store %arg13[%c0_30, %c0_31], %37 {strides = array<i32>} : memref<64x8xbf16, #tpu.memory_space<vmem>>, vector<64x8xbf16>,
    %cst_32 = arith.constant 6.000000e+01 : f32
    %39 = vector.broadcast %cst_32 : f32 to vector<64x8xf32>
    %40 = arith.minimumf %36, %39 : vector<64x8xf32>
    %41 = math.exp %40 : vector<64x8xf32>
    %42 = arith.mulf %36, %41 : vector<64x8xf32>
    %43 = vector.shape_cast %42 : vector<64x8xf32> to vector<32x2x8xf32>
    %44 = vector.extract_strided_slice %43 {offsets = [0, 0, 0], sizes = [32, 1, 8], strides = [1, 1, 1]} : vector<32x2x8xf32> to vector<32x1x8xf32>
    %45 = vector.shape_cast %44 : vector<32x1x8xf32> to vector<32x8xf32>
    %46 = vector.extract_strided_slice %43 {offsets = [0, 1, 0], sizes = [32, 1, 8], strides = [1, 1, 1]} : vector<32x2x8xf32> to vector<32x1x8xf32>
    %47 = vector.shape_cast %46 : vector<32x1x8xf32> to vector<32x8xf32>
    %48 = arith.addf %45, %47 : vector<32x8xf32>
    %49 = vector.shape_cast %48 : vector<32x8xf32> to vector<2x2x8x8xf32>
    %50 = vector.extract_strided_slice %49 {offsets = [0, 0, 0, 0], sizes = [2, 1, 8, 8], strides = [1, 1, 1, 1]} : vector<2x2x8x8xf32> to vector<2x1x8x8xf32>
    %51 = vector.shape_cast %50 : vector<2x1x8x8xf32> to vector<2x8x8xf32>
    %52 = vector.extract_strided_slice %49 {offsets = [0, 1, 0, 0], sizes = [2, 1, 8, 8], strides = [1, 1, 1, 1]} : vector<2x2x8x8xf32> to vector<2x1x8x8xf32>
    %53 = vector.shape_cast %52 : vector<2x1x8x8xf32> to vector<2x8x8xf32>
    %54 = arith.addf %51, %53 : vector<2x8x8xf32>
    %55 = vector.shape_cast %54 : vector<2x8x8xf32> to vector<16x8xf32>
    %56 = vector.shape_cast %41 : vector<64x8xf32> to vector<32x2x8xf32>
    %57 = vector.extract_strided_slice %56 {offsets = [0, 0, 0], sizes = [32, 1, 8], strides = [1, 1, 1]} : vector<32x2x8xf32> to vector<32x1x8xf32>
    %58 = vector.shape_cast %57 : vector<32x1x8xf32> to vector<32x8xf32>
    %59 = vector.extract_strided_slice %56 {offsets = [0, 1, 0], sizes = [32, 1, 8], strides = [1, 1, 1]} : vector<32x2x8xf32> to vector<32x1x8xf32>
    %60 = vector.shape_cast %59 : vector<32x1x8xf32> to vector<32x8xf32>
    %61 = arith.addf %58, %60 : vector<32x8xf32>
    %62 = vector.shape_cast %61 : vector<32x8xf32> to vector<2x2x8x8xf32>
    %63 = vector.extract_strided_slice %62 {offsets = [0, 0, 0, 0], sizes = [2, 1, 8, 8], strides = [1, 1, 1, 1]} : vector<2x2x8x8xf32> to vector<2x1x8x8xf32>
    %64 = vector.shape_cast %63 : vector<2x1x8x8xf32> to vector<2x8x8xf32>
    %65 = vector.extract_strided_slice %62 {offsets = [0, 1, 0, 0], sizes = [2, 1, 8, 8], strides = [1, 1, 1, 1]} : vector<2x2x8x8xf32> to vector<2x1x8x8xf32>
    %66 = vector.shape_cast %65 : vector<2x1x8x8xf32> to vector<2x8x8xf32>
    %67 = arith.addf %64, %66 : vector<2x8x8xf32>
    %68 = vector.shape_cast %67 : vector<2x8x8xf32> to vector<16x8xf32>
    %69 = tpu.reciprocal %68 {approx = true} : vector<16x8xf32> -> vector<16x8xf32>
    %70 = arith.mulf %55, %69 : vector<16x8xf32>
    %c0_33 = arith.constant 0 : index
    %c0_34 = arith.constant 0 : index
    %71 = vector.load %arg14[%c0_33, %c0_34] : memref<16x8xf32, #tpu.memory_space<vmem>>, vector<16x8xf32>
    tpu.vector_store %arg14[%c0_33, %c0_34], %70 {strides = array<i32>} : memref<16x8xf32, #tpu.memory_space<vmem>>, vector<16x8xf32>,
    return
  }
  func.func @transform_0(%arg0: i32) -> (i32, i32) {
    %c0_i32 = arith.constant 0 : i32
    %c0_i32_0 = arith.constant 0 : i32
    return %arg0, %c0_i32 : i32, i32
  }
  func.func @transform_1(%arg0: i32) -> (i32, i32) {
    %c0_i32 = arith.constant 0 : i32
    %c0_i32_0 = arith.constant 0 : i32
    return %arg0, %c0_i32 : i32, i32
  }
  func.func @transform_2(%arg0: i32) -> (i32, i32) {
    %c0_i32 = arith.constant 0 : i32
    %c0_i32_0 = arith.constant 0 : i32
    return %arg0, %c0_i32 : i32, i32
  }
  func.func @transform_3(%arg0: i32) -> (i32, i32) {
    %c0_i32 = arith.constant 0 : i32
    %c0_i32_0 = arith.constant 0 : i32
    return %arg0, %c0_i32 : i32, i32
  }
  func.func @transform_4(%arg0: i32) -> (i32, i32) {
    %c0_i32 = arith.constant 0 : i32
    %c0_i32_0 = arith.constant 0 : i32
    %c0_i32_1 = arith.constant 0 : i32
    return %c0_i32, %c0_i32_0 : i32, i32
  }
  func.func @transform_5(%arg0: i32) -> (i32, i32) {
    %c0_i32 = arith.constant 0 : i32
    %c0_i32_0 = arith.constant 0 : i32
    %c0_i32_1 = arith.constant 0 : i32
    return %c0_i32, %c0_i32_0 : i32, i32
  }
  func.func @transform_6(%arg0: i32) -> (i32, i32) {
    %c0_i32 = arith.constant 0 : i32
    %c0_i32_0 = arith.constant 0 : i32
    %c0_i32_1 = arith.constant 0 : i32
    return %c0_i32, %c0_i32_0 : i32, i32
  }
  func.func @transform_7(%arg0: i32) -> (i32, i32) {
    %c0_i32 = arith.constant 0 : i32
    %c0_i32_0 = arith.constant 0 : i32
    %c0_i32_1 = arith.constant 0 : i32
    return %c0_i32, %c0_i32_0 : i32, i32
  }
  func.func @transform_8(%arg0: i32) -> (i32, i32) {
    %c0_i32 = arith.constant 0 : i32
    %c0_i32_0 = arith.constant 0 : i32
    %c0_i32_1 = arith.constant 0 : i32
    return %c0_i32, %c0_i32_0 : i32, i32
  }
  func.func @transform_9(%arg0: i32) -> (i32, i32) {
    %c0_i32 = arith.constant 0 : i32
    %c0_i32_0 = arith.constant 0 : i32
    %c0_i32_1 = arith.constant 0 : i32
    return %c0_i32, %c0_i32_0 : i32, i32
  }
  func.func @transform_10(%arg0: i32) -> (i32, i32) {
    %c0_i32 = arith.constant 0 : i32
    %c0_i32_0 = arith.constant 0 : i32
    %c0_i32_1 = arith.constant 0 : i32
    return %c0_i32, %c0_i32_0 : i32, i32
  }
  func.func @transform_11(%arg0: i32) -> (i32, i32) {
    %c0_i32 = arith.constant 0 : i32
    %c0_i32_0 = arith.constant 0 : i32
    %c0_i32_1 = arith.constant 0 : i32
    return %c0_i32, %c0_i32_0 : i32, i32
  }
  func.func @transform_12(%arg0: i32) -> (i32, i32) {
    %c0_i32 = arith.constant 0 : i32
    %c0_i32_0 = arith.constant 0 : i32
    return %arg0, %c0_i32 : i32, i32
  }
  func.func @transform_13(%arg0: i32) -> (i32, i32) {
    %c0_i32 = arith.constant 0 : i32
    %c0_i32_0 = arith.constant 0 : i32
    return %arg0, %c0_i32 : i32, i32
  }
}

module attributes {stable_mosaic.version = 11 : i64} {
  func.func @_conv_bn_kernel(%arg0: i32, %arg1: memref<64x8xbf16, #tpu.memory_space<vmem>>, %arg2: memref<1x32x8xbf16, #tpu.memory_space<vmem>>, %arg3: memref<1x32x8xbf16, #tpu.memory_space<vmem>>, %arg4: memref<4x8x8xbf16, #tpu.memory_space<vmem>>, %arg5: memref<1x8xf32, #tpu.memory_space<vmem>>, %arg6: memref<1x8xf32, #tpu.memory_space<vmem>>, %arg7: memref<1x8xf32, #tpu.memory_space<vmem>>, %arg8: memref<64x8xbf16, #tpu.memory_space<vmem>>, %arg9: memref<128x8xbf16, #tpu.memory_space<vmem>>) attributes {dimension_semantics = [#tpu.dimension_semantics<parallel>], iteration_bounds = array<i64: 8>, scalar_prefetch = 0 : i64, scratch_operands = 1 : i64, tpu.core_type = #tpu.core_type<tc>, window_params = [{transform_indices = @transform_0, window_bounds = array<i64: 64, 8>}, {transform_indices = @transform_1, window_bounds = array<i64: 1, 32, 8>}, {transform_indices = @transform_2, window_bounds = array<i64: 1, 32, 8>}, {pipeline_mode = #tpu.pipeline_mode<synchronous>, transform_indices = @transform_3, window_bounds = array<i64: 4, 8, 8>}, {pipeline_mode = #tpu.pipeline_mode<synchronous>, transform_indices = @transform_4, window_bounds = array<i64: 1, 8>}, {pipeline_mode = #tpu.pipeline_mode<synchronous>, transform_indices = @transform_5, window_bounds = array<i64: 1, 8>}, {pipeline_mode = #tpu.pipeline_mode<synchronous>, transform_indices = @transform_6, window_bounds = array<i64: 1, 8>}, {transform_indices = @transform_7, window_bounds = array<i64: 64, 8>}]} {
    %c0 = arith.constant 0 : index
    %c0_0 = arith.constant 0 : index
    %c0_1 = arith.constant 0 : index
    %0 = vector.load %arg2[%c0, %c0_0, %c0_1] : memref<1x32x8xbf16, #tpu.memory_space<vmem>>, vector<1x32x8xbf16>
    %1 = vector.shape_cast %0 : vector<1x32x8xbf16> to vector<32x8xbf16>
    %c0_2 = arith.constant 0 : index
    %c0_3 = arith.constant 0 : index
    %2 = vector.load %arg9[%c0_2, %c0_3] : memref<128x8xbf16, #tpu.memory_space<vmem>>, vector<32x8xbf16>
    tpu.vector_store %arg9[%c0_2, %c0_3], %1 {strides = array<i32>} : memref<128x8xbf16, #tpu.memory_space<vmem>>, vector<32x8xbf16>,
    %c0_4 = arith.constant 0 : index
    %c0_5 = arith.constant 0 : index
    %3 = vector.load %arg1[%c0_4, %c0_5] : memref<64x8xbf16, #tpu.memory_space<vmem>>, vector<64x8xbf16>
    %c32 = arith.constant 32 : index
    %c0_6 = arith.constant 0 : index
    %4 = vector.load %arg9[%c32, %c0_6] : memref<128x8xbf16, #tpu.memory_space<vmem>>, vector<64x8xbf16>
    tpu.vector_store %arg9[%c32, %c0_6], %3 {strides = array<i32>} : memref<128x8xbf16, #tpu.memory_space<vmem>>, vector<64x8xbf16>,
    %c0_7 = arith.constant 0 : index
    %c0_8 = arith.constant 0 : index
    %c0_9 = arith.constant 0 : index
    %5 = vector.load %arg3[%c0_7, %c0_8, %c0_9] : memref<1x32x8xbf16, #tpu.memory_space<vmem>>, vector<1x32x8xbf16>
    %6 = vector.shape_cast %5 : vector<1x32x8xbf16> to vector<32x8xbf16>
    %c96 = arith.constant 96 : index
    %c0_10 = arith.constant 0 : index
    %7 = vector.load %arg9[%c96, %c0_10] : memref<128x8xbf16, #tpu.memory_space<vmem>>, vector<32x8xbf16>
    tpu.vector_store %arg9[%c96, %c0_10], %6 {strides = array<i32>} : memref<128x8xbf16, #tpu.memory_space<vmem>>, vector<32x8xbf16>,
    %8 = tpu.iota {dimensions = array<i32: 0>} : vector<64x1xi32>
    %c16_i32 = arith.constant 16 : i32
    %c0_i32 = arith.constant 0 : i32
    %9 = arith.cmpi eq, %c16_i32, %c0_i32 : i32
    %c1_i32 = arith.constant 1 : i32
    %10 = arith.select %9, %c1_i32, %c16_i32 : i32
    %11 = vector.broadcast %10 : i32 to vector<64x1xi32>
    %12 = arith.remsi %8, %11 : vector<64x1xi32>
    %c0_i32_11 = arith.constant 0 : i32
    %13 = vector.broadcast %c0_i32_11 : i32 to vector<64x1xi32>
    %14 = arith.cmpi ne, %12, %13 : vector<64x1xi32>
    %c0_i32_12 = arith.constant 0 : i32
    %15 = vector.broadcast %c0_i32_12 : i32 to vector<64x1xi32>
    %16 = arith.cmpi slt, %12, %15 : vector<64x1xi32>
    %c0_i32_13 = arith.constant 0 : i32
    %17 = arith.cmpi slt, %10, %c0_i32_13 : i32
    %18 = vector.broadcast %17 : i1 to vector<64x1xi1>
    %19 = vector.broadcast %18 : vector<64x1xi1> to vector<64x1xi1>
    %20 = arith.xori %16, %19 : vector<64x1xi1>
    %21 = arith.andi %20, %14 : vector<64x1xi1>
    %22 = vector.broadcast %10 : i32 to vector<64x1xi32>
    %23 = arith.addi %12, %22 : vector<64x1xi32>
    %24 = arith.select %21, %23, %12 : vector<64x1xi1>, vector<64x1xi32>
    %c-1_i32 = arith.constant -1 : i32
    %25 = vector.broadcast %c-1_i32 : i32 to vector<64x1xi32>
    %26 = arith.addi %24, %25 : vector<64x1xi32>
    %c0_i32_14 = arith.constant 0 : i32
    %27 = vector.broadcast %c0_i32_14 : i32 to vector<64x1xi32>
    %28 = arith.cmpi sge, %26, %27 : vector<64x1xi32>
    %c-1_i32_15 = arith.constant -1 : i32
    %29 = vector.broadcast %c-1_i32_15 : i32 to vector<64x1xi32>
    %30 = arith.addi %24, %29 : vector<64x1xi32>
    %c16_i32_16 = arith.constant 16 : i32
    %31 = vector.broadcast %c16_i32_16 : i32 to vector<64x1xi32>
    %32 = arith.cmpi slt, %30, %31 : vector<64x1xi32>
    %33 = arith.andi %28, %32 : vector<64x1xi1>
    %c1_i32_17 = arith.constant 1 : i32
    %34 = vector.broadcast %c1_i32_17 : i32 to vector<64x1xi32>
    %35 = arith.addi %24, %34 : vector<64x1xi32>
    %c0_i32_18 = arith.constant 0 : i32
    %36 = vector.broadcast %c0_i32_18 : i32 to vector<64x1xi32>
    %37 = arith.cmpi sge, %35, %36 : vector<64x1xi32>
    %c1_i32_19 = arith.constant 1 : i32
    %38 = vector.broadcast %c1_i32_19 : i32 to vector<64x1xi32>
    %39 = arith.addi %24, %38 : vector<64x1xi32>
    %c16_i32_20 = arith.constant 16 : i32
    %40 = vector.broadcast %c16_i32_20 : i32 to vector<64x1xi32>
    %41 = arith.cmpi slt, %39, %40 : vector<64x1xi32>
    %42 = arith.andi %37, %41 : vector<64x1xi1>
    %c15 = arith.constant 15 : index
    %c0_21 = arith.constant 0 : index
    %43 = vector.load %arg9[%c15, %c0_21] : memref<128x8xbf16, #tpu.memory_space<vmem>>, vector<64x8xbf16>
    %cst = arith.constant 0.000000e+00 : bf16
    %44 = vector.broadcast %cst : bf16 to vector<64x8xbf16>
    %45 = vector.shape_cast %33 : vector<64x1xi1> to vector<64x1xi1>
    %46 = vector.broadcast %45 : vector<64x1xi1> to vector<64x8xi1>
    %47 = arith.select %46, %43, %44 : vector<64x8xi1>, vector<64x8xbf16>
    %c0_22 = arith.constant 0 : index
    %c0_23 = arith.constant 0 : index
    %c0_24 = arith.constant 0 : index
    %48 = vector.load %arg4[%c0_22, %c0_23, %c0_24] : memref<4x8x8xbf16, #tpu.memory_space<vmem>>, vector<1x8x8xbf16>
    %49 = vector.shape_cast %48 : vector<1x8x8xbf16> to vector<8x8xbf16>
    %cst_25 = arith.constant dense<0.000000e+00> : vector<64x8xf32>
    %50 = tpu.matmul %47, %49, %cst_25 {dimension_numbers = #tpu.dot_dimension_numbers<[1], [0], [0], [1], [0, 0, 1, 1], [], []>} : vector<64x8xbf16>, vector<8x8xbf16>, vector<64x8xf32> -> vector<64x8xf32>
    %c17 = arith.constant 17 : index
    %c0_26 = arith.constant 0 : index
    %51 = vector.load %arg9[%c17, %c0_26] : memref<128x8xbf16, #tpu.memory_space<vmem>>, vector<64x8xbf16>
    %cst_27 = arith.constant 0.000000e+00 : bf16
    %52 = vector.broadcast %cst_27 : bf16 to vector<64x8xbf16>
    %53 = vector.shape_cast %42 : vector<64x1xi1> to vector<64x1xi1>
    %54 = vector.broadcast %53 : vector<64x1xi1> to vector<64x8xi1>
    %55 = arith.select %54, %51, %52 : vector<64x8xi1>, vector<64x8xbf16>
    %c1 = arith.constant 1 : index
    %c0_28 = arith.constant 0 : index
    %c0_29 = arith.constant 0 : index
    %56 = vector.load %arg4[%c1, %c0_28, %c0_29] : memref<4x8x8xbf16, #tpu.memory_space<vmem>>, vector<1x8x8xbf16>
    %57 = vector.shape_cast %56 : vector<1x8x8xbf16> to vector<8x8xbf16>
    %cst_30 = arith.constant dense<0.000000e+00> : vector<64x8xf32>
    %58 = tpu.matmul %55, %57, %cst_30 {dimension_numbers = #tpu.dot_dimension_numbers<[1], [0], [0], [1], [0, 0, 1, 1], [], []>} : vector<64x8xbf16>, vector<8x8xbf16>, vector<64x8xf32> -> vector<64x8xf32>
    %59 = arith.addf %50, %58 : vector<64x8xf32>
    %c47 = arith.constant 47 : index
    %c0_31 = arith.constant 0 : index
    %60 = vector.load %arg9[%c47, %c0_31] : memref<128x8xbf16, #tpu.memory_space<vmem>>, vector<64x8xbf16>
    %cst_32 = arith.constant 0.000000e+00 : bf16
    %61 = vector.broadcast %cst_32 : bf16 to vector<64x8xbf16>
    %62 = vector.shape_cast %33 : vector<64x1xi1> to vector<64x1xi1>
    %63 = vector.broadcast %62 : vector<64x1xi1> to vector<64x8xi1>
    %64 = arith.select %63, %60, %61 : vector<64x8xi1>, vector<64x8xbf16>
    %c2 = arith.constant 2 : index
    %c0_33 = arith.constant 0 : index
    %c0_34 = arith.constant 0 : index
    %65 = vector.load %arg4[%c2, %c0_33, %c0_34] : memref<4x8x8xbf16, #tpu.memory_space<vmem>>, vector<1x8x8xbf16>
    %66 = vector.shape_cast %65 : vector<1x8x8xbf16> to vector<8x8xbf16>
    %cst_35 = arith.constant dense<0.000000e+00> : vector<64x8xf32>
    %67 = tpu.matmul %64, %66, %cst_35 {dimension_numbers = #tpu.dot_dimension_numbers<[1], [0], [0], [1], [0, 0, 1, 1], [], []>} : vector<64x8xbf16>, vector<8x8xbf16>, vector<64x8xf32> -> vector<64x8xf32>
    %68 = arith.addf %59, %67 : vector<64x8xf32>
    %c49 = arith.constant 49 : index
    %c0_36 = arith.constant 0 : index
    %69 = vector.load %arg9[%c49, %c0_36] : memref<128x8xbf16, #tpu.memory_space<vmem>>, vector<64x8xbf16>
    %cst_37 = arith.constant 0.000000e+00 : bf16
    %70 = vector.broadcast %cst_37 : bf16 to vector<64x8xbf16>
    %71 = vector.shape_cast %42 : vector<64x1xi1> to vector<64x1xi1>
    %72 = vector.broadcast %71 : vector<64x1xi1> to vector<64x8xi1>
    %73 = arith.select %72, %69, %70 : vector<64x8xi1>, vector<64x8xbf16>
    %c3 = arith.constant 3 : index
    %c0_38 = arith.constant 0 : index
    %c0_39 = arith.constant 0 : index
    %74 = vector.load %arg4[%c3, %c0_38, %c0_39] : memref<4x8x8xbf16, #tpu.memory_space<vmem>>, vector<1x8x8xbf16>
    %75 = vector.shape_cast %74 : vector<1x8x8xbf16> to vector<8x8xbf16>
    %cst_40 = arith.constant dense<0.000000e+00> : vector<64x8xf32>
    %76 = tpu.matmul %73, %75, %cst_40 {dimension_numbers = #tpu.dot_dimension_numbers<[1], [0], [0], [1], [0, 0, 1, 1], [], []>} : vector<64x8xbf16>, vector<8x8xbf16>, vector<64x8xf32> -> vector<64x8xf32>
    %77 = arith.addf %68, %76 : vector<64x8xf32>
    %c0_41 = arith.constant 0 : index
    %c0_42 = arith.constant 0 : index
    %78 = vector.load %arg5[%c0_41, %c0_42] : memref<1x8xf32, #tpu.memory_space<vmem>>, vector<1x8xf32>
    %79 = vector.broadcast %78 : vector<1x8xf32> to vector<64x8xf32>
    %80 = arith.addf %77, %79 : vector<64x8xf32>
    %cst_43 = arith.constant 0.000000e+00 : f32
    %81 = vector.broadcast %cst_43 : f32 to vector<64x8xf32>
    %82 = arith.cmpf oge, %80, %81 : vector<64x8xf32>
    %cst_44 = arith.constant 0.00999999977 : f32
    %83 = vector.broadcast %cst_44 : f32 to vector<64x8xf32>
    %84 = arith.mulf %83, %80 : vector<64x8xf32>
    %85 = arith.select %82, %80, %84 : vector<64x8xi1>, vector<64x8xf32>
    %c0_45 = arith.constant 0 : index
    %c0_46 = arith.constant 0 : index
    %86 = vector.load %arg6[%c0_45, %c0_46] : memref<1x8xf32, #tpu.memory_space<vmem>>, vector<1x8xf32>
    %87 = vector.broadcast %86 : vector<1x8xf32> to vector<64x8xf32>
    %88 = arith.mulf %85, %87 : vector<64x8xf32>
    %c0_47 = arith.constant 0 : index
    %c0_48 = arith.constant 0 : index
    %89 = vector.load %arg7[%c0_47, %c0_48] : memref<1x8xf32, #tpu.memory_space<vmem>>, vector<1x8xf32>
    %90 = vector.broadcast %89 : vector<1x8xf32> to vector<64x8xf32>
    %91 = arith.addf %88, %90 : vector<64x8xf32>
    %92 = arith.truncf %91 : vector<64x8xf32> to vector<64x8xbf16>
    %c0_49 = arith.constant 0 : index
    %c0_50 = arith.constant 0 : index
    %93 = vector.load %arg8[%c0_49, %c0_50] : memref<64x8xbf16, #tpu.memory_space<vmem>>, vector<64x8xbf16>
    tpu.vector_store %arg8[%c0_49, %c0_50], %92 {strides = array<i32>} : memref<64x8xbf16, #tpu.memory_space<vmem>>, vector<64x8xbf16>,
    return
  }
  func.func @transform_0(%arg0: i32) -> (i32, i32) {
    %c0_i32 = arith.constant 0 : i32
    %c0_i32_0 = arith.constant 0 : i32
    return %arg0, %c0_i32 : i32, i32
  }
  func.func @transform_1(%arg0: i32) -> (i32, i32, i32) {
    %c0_i32 = arith.constant 0 : i32
    %c0_i32_0 = arith.constant 0 : i32
    %c0_i32_1 = arith.constant 0 : i32
    return %arg0, %c0_i32, %c0_i32_0 : i32, i32, i32
  }
  func.func @transform_2(%arg0: i32) -> (i32, i32, i32) {
    %c0_i32 = arith.constant 0 : i32
    %c0_i32_0 = arith.constant 0 : i32
    %c0_i32_1 = arith.constant 0 : i32
    return %arg0, %c0_i32, %c0_i32_0 : i32, i32, i32
  }
  func.func @transform_3(%arg0: i32) -> (i32, i32, i32) {
    %c0_i32 = arith.constant 0 : i32
    %c0_i32_0 = arith.constant 0 : i32
    %c0_i32_1 = arith.constant 0 : i32
    %c0_i32_2 = arith.constant 0 : i32
    return %c0_i32, %c0_i32_0, %c0_i32_1 : i32, i32, i32
  }
  func.func @transform_4(%arg0: i32) -> (i32, i32) {
    %c0_i32 = arith.constant 0 : i32
    %c0_i32_0 = arith.constant 0 : i32
    %c0_i32_1 = arith.constant 0 : i32
    return %c0_i32, %c0_i32_0 : i32, i32
  }
  func.func @transform_5(%arg0: i32) -> (i32, i32) {
    %c0_i32 = arith.constant 0 : i32
    %c0_i32_0 = arith.constant 0 : i32
    %c0_i32_1 = arith.constant 0 : i32
    return %c0_i32, %c0_i32_0 : i32, i32
  }
  func.func @transform_6(%arg0: i32) -> (i32, i32) {
    %c0_i32 = arith.constant 0 : i32
    %c0_i32_0 = arith.constant 0 : i32
    %c0_i32_1 = arith.constant 0 : i32
    return %c0_i32, %c0_i32_0 : i32, i32
  }
  func.func @transform_7(%arg0: i32) -> (i32, i32) {
    %c0_i32 = arith.constant 0 : i32
    %c0_i32_0 = arith.constant 0 : i32
    return %arg0, %c0_i32 : i32, i32
  }
}

</mosaic_0001>

<bundles_post_ra>
// kernel: resblock_forward.5
= control target key start
LH: loop header
LB: loop body
LE: loop exit
PB: predicated region body
PF: predicated region fallthrough
CT: control target
= control target key end

     0   :  { %s1953_s24 = smov 0   ;;  %s2644_s0 = inlined_call_operand.vmem [shape: bf16[512,8], index: 0, kind: input, shape index: {}]   ;;  %s2645_s1 = inlined_call_operand.vmem [shape: bf16[8,48,8], index: 1, kind: input, shape index: {}]   ;;  %s2646_s2 = inlined_call_operand.vmem [shape: bf16[8,48,8], index: 2, kind: input, shape index: {}]   ;;  %s2647_s3 = inlined_call_operand.vmem [shape: bf16[9,8,8], index: 3, kind: input, shape index: {}]   ;;  %s2648_s4 = inlined_call_operand.vmem [shape: f32[1,8], index: 4, kind: input, shape index: {}]   ;;  %s2649_s5 = inlined_call_operand.vmem [shape: f32[1,8], index: 5, kind: input, shape index: {}]   ;;  %s2650_s6 = inlined_call_operand.vmem [shape: f32[1,8], index: 6, kind: input, shape index: {}]   ;;  %s2651_s7 = inlined_call_operand.vmem [shape: bf16[512,8], index: 7, kind: output, shape index: {}]  }
   0x1 LB: > { %s1959_s25 = sadd.s32 4294967295, %s1909_s24   ;;  %p1773_p0 = scmp.ge.s32.totalorder %s1909_s24, 1  ;;  %s1909_s24 = sphi %s1953_s24, %s17_s24  }
   0x2   : > { %p258_p1 = scmp.lt.s32.totalorder %s1909_s24, 9 }
   0x4   : > { %p259_p2 = pnand %p1773_p0, %p258_p1 }
   0x5   : > { %p306_p3 = scmp.lt.s32.totalorder (!%p259_p2), %s1959_s25, 7  ;;  %s1774_s28 = sshll.u32 (!%p259_p2), %s1959_s25, 3 }
   0x6   : > { %262 = sbr.rel (%p259_p2) target bundleno = 330 (0x14a), region = 48  ;;  %p301_p4 = scmp.lt.s32.totalorder (!%p259_p2), %s1774_s28, 63 }
   0xb   : > { %v1780_v0 = vld [vmem:[%s2647_s3 + $0x4] sm:$0xf]  ;;  %vm2652_vm0 = vcmask 1043456   ;;  %v366_v1 = vlaneseq  ;;  %v1805_v3 = vld [vmem:[%s2647_s3 + $0x8] sm:$0xf]  ;;  %s2785_s25 = smov (!%p306_p3, %s1959_s25), 7 }
   0xc   : > { %v713_v2 = vsel %vm2652_vm0, %v1780_v0, 0  ;;  %v1810_v4 = vld [vmem:[%s2647_s3 + $0xc] sm:$0xf]  ;;  %v1008_v5 = vsel %vm2652_vm0, %v1805_v3, 0  ;;  %v674_v7 = vld [vmem:[%s2647_s3] sm:$0xf] }
   0xd   : > { %1886 = vmatpush.bf16.msra.mxu1 %v713_v2  ;;  %1887 = vmatpush.bf16.msra.mxu2 %v713_v2  ;;  %v1112_v6 = vsel %vm2652_vm0, %v1810_v4, 0  ;;  %v1981_v8 = vshrl.u32 %v366_v1, 7  ;;  %v790_v9 = vsel %vm2652_vm0, %v674_v7, 0  ;;  %v1815_v10 = vld [vmem:[%s2647_s3 + $0x10] sm:$0xf]  ;;  %s1889_s14 = smul.u32 24, %s2785_s25 }
   0xe   : > { %1888 = vmatpush.bf16.msra.mxu3 %v713_v2  ;;  %722 = vmatpush.bf16.msra.mxu0 %v713_v2  ;;  %v1187_v11 = vsel %vm2652_vm0, %v1815_v10, 0  ;;  %vm1911_vm1 = vmmov 1   ;;  %s2787_s28 = smov (!%p301_p4, %s1774_s28), 63  ;;  %vm2653_vm3 = vcmask 60416   ;;  %v1912_v16 = vmov 0  }
   0xf   : > { %v369_v12 = vadd.s32 16, %v1981_v8  ;;  %v379_v13 = vand.u32 15, %v1981_v8  ;;  %vm561_vm2 = vmpackc.low %vm1911_vm1, %vm1911_vm1  ;;  %s310_s17 = scalar_lea.vmem %s2645_s1, %s1889_s14  ;;  %s1999_s20 = scalar_lea.vmem %s2646_s2, %s1889_s14  ;;  %vm2659_vm4 = vcmask 64512   ;;  %vm576_vm5 = vcmask 1042432  }
  0x10   : > { %v569_v17 = vsel %vm561_vm2, 65537, %v1912_v16  ;;  %v329_v18 = vld [vmem:[%s310_s17 + $0x10] sm:$0xf]  ;;  %v330_v19 = vld [vmem:[%s310_s17 + $0x14] sm:$0xf]  ;;  %s1775_s21 = sshll.u32 %s2787_s28, 2  ;;  %v2020_v29 = vunpack.c.l.b16 %v1912_v16  ;;  %v2032_v35 = vunpack.c.h.b16 %v1912_v16 }
  0x11   : > { %1017 = vmatpush.bf16.msrb.mxu2 %v1008_v5  ;;  %799 = vmatpush.bf16.msrb.mxu1 %v790_v9  ;;  %v393_v14 = vand.u32 15, %v369_v12  ;;  %v471_v15 = vadd.s32 4294967294, %v379_v13  ;;  %336 = vst.msk [vmem:[#allocation2 + $0x10] sm:$0xf] %vm2653_vm3, %v329_v18  ;;  %s2008_s25 = scalar_lea.vmem %s2644_s0, %s1775_s21  ;;  %vm577_vm6 = vcmask 1046532   ;;  %v2010_v21 = vrot.slane %v569_v17, 5 }
  0x12   : > { %1121 = vmatpush.bf16.msrb.mxu3 %v1112_v6  ;;  %1196 = vmatpush.bf16.msrb.mxu0 %v1187_v11  ;;  %337 = vst.msk [vmem:[#allocation2 + $0x14] sm:$0xf] %vm2653_vm3, %v330_v19  ;;  %v338_v22 = vld [vmem:[%s2008_s25] sm:$0xf]  ;;  %v339_v23 = vld [vmem:[%s2008_s25 + $0x4] sm:$0xf]  ;;  %vm2038_vm12 = vmor %vm576_vm5, %vm577_vm6 }
  0x13   : > { %v473_v20 = vadd.s32 4294967294, %v393_v14  ;;  %v340_v24 = vld [vmem:[%s2008_s25 + $0x8] sm:$0xf]  ;;  %346 = vst.msk [vmem:[#allocation2 + $0x18] sm:$0xf] %vm2653_vm3, %v338_v22  ;;  %vm479_vm7 = vcmp.ge.s32.totalorder %v471_v15, 0 }
  0x14   : > { %v327_v25 = vld [vmem:[%s310_s17 + $0x8] sm:$0xf]  ;;  %v341_v26 = vld [vmem:[%s2008_s25 + $0xc] sm:$0xf]  ;;  %347 = vst.msk [vmem:[#allocation2 + $0x1c] sm:$0xf] %vm2653_vm3, %v339_v23  ;;  %vm560_vm9 = vmpackc.low %vm479_vm7, %vm479_vm7 }
  0x15   : > { %v328_v27 = vld [vmem:[%s310_s17 + $0xc] sm:$0xf]  ;;  %vm481_vm8 = vcmp.ge.s32.totalorder %v473_v20, 0  ;;  %v326_v28 = vld [vmem:[%s310_s17 + $0x4] sm:$0xf]  ;;  %v2022_v30 = vrot.slane %v569_v17, 7 }
  0x16   : > { %v368_v31 = vadd.s32 8, %v1981_v8  ;;  %v370_v32 = vadd.s32 24, %v1981_v8  ;;  %348 = vst.msk [vmem:[#allocation2 + $0x20] sm:$0xf] %vm2653_vm3, %v340_v24  ;;  %vm562_vm10 = vmpackc.low %vm481_vm8, %vm481_vm8  ;;  %v568_v33 = vsel %vm560_vm9, 65537, %v1912_v16  ;;  %v2029_v34 = vrot.slane %v2010_v21, 4 }
  0x17   : > { %vm862_vm11 = vcmask 1040384   ;;  %349 = vst.msk [vmem:[#allocation2 + $0x24] sm:$0xf] %vm2653_vm3, %v341_v26  ;;  %v570_v36 = vsel %vm562_vm10, 65537, %v1912_v16  ;;  %v579_v38 = vrot.slane %v568_v33, 5  ;;  %vm863_vm13 = vcmask 1044484  }
  0x18   : > { %v386_v39 = vand.u32 15, %v368_v31  ;;  %v400_v40 = vand.u32 15, %v370_v32  ;;  %334 = vst.msk [vmem:[#allocation2 + $0x8] sm:$0xf] %vm2653_vm3, %v327_v25  ;;  %v584_v41 = vrot.slane %v570_v36, 5  ;;  %v2044_v42 = vrot.slane %v2022_v30, 4  ;;  %vm2064_vm1 = vmor %vm862_vm11, %vm863_vm13 }
  0x19   : > { %v888_v43 = vunpack.c.l.b16 %v2022_v30  ;;  %v1875_v44 = vld [vmem:[#allocation2 + $0x10] sm:$0xff]  ;;  %335 = vst.msk [vmem:[#allocation2 + $0xc] sm:$0xf] %vm2653_vm3, %v328_v27  ;;  %v580_v45 = vrot.slane %v579_v38, 4  ;;  %v602_v46 = vunpack.c.l.b16 %v579_v38  ;;  %v603_v47 = vunpack.c.h.b16 %v579_v38 }
  0x1a   : > { %v504_v48 = vadd.s32 2, %v386_v39  ;;  %333 = vst.msk [vmem:[#allocation2 + $0x4] sm:$0xf] %vm2653_vm3, %v326_v28  ;;  %v585_v49 = vsel %vm2038_vm12, %v2029_v34, %v584_v41  ;;  %v586_v50 = vrot.slane %v584_v41, 4  ;;  %v506_v51 = vadd.s32 2, %v400_v40  ;;  %1798 = vmatmul.msk.bf16.vlgmr.msra.gmra.mxu1 %vm2659_vm4, %v1875_v44 }
  0x1b   : > { %v889_v52 = vunpack.c.h.b16 %v2022_v30  ;;  %v582_v53 = vsel %vm2038_vm12, %v580_v45, %v2010_v21  ;;  %vm606_vm14 = vcmp.ne.s32.totalorder %v602_v46, %v2020_v29  ;;  %vm607_vm15 = vcmp.ne.s32.totalorder %v603_v47, %v2032_v35  ;;  %v1876_v55 = vld [vmem:[#allocation2 + $0x18] sm:$0xff]  ;;  %v1047_v1 = vld [vmem:[#allocation2 + $0x14] sm:$0x8]  ;;  %v538_v7 = vld [vmem:[#allocation2 + $0x10] sm:$0xf] }
  0x1c   : > { %v616_v54 = vunpack.c.l.b16 %v585_v49  ;;  %v588_v56 = vsel %vm2038_vm12, %v586_v50, %v2010_v21  ;;  %v609_v57 = vunpack.c.l.b16 %v582_v53  ;;  %v610_v58 = vunpack.c.h.b16 %v582_v53  ;;  %vm2068_vm2 = vmpackc.low %vm607_vm15, %vm606_vm14  ;;  %1799 = vmatmul.msk.bf16.vlgmr.msra.gmra.mxu2 %vm2659_vm4, %v1876_v55  ;;  %v2090_v5 = vld [vmem:[#allocation2 + $0x18] sm:$0xf]  ;;  %v1049_v46 = vld [vmem:[#allocation2 + $0x1c] sm:$0xf] }
  0x1d   : > { %v617_v59 = vunpack.c.h.b16 %v585_v49  ;;  %v623_v63 = vunpack.c.l.b16 %v588_v56  ;;  %v624_v0 = vunpack.c.h.b16 %v588_v56  ;;  %vm520_vm6 = vcmp.lt.s32.totalorder %v504_v48, 16  ;;  %v1050_v55 = vld [vmem:[#allocation2 + $0x20] sm:$0xf] }
  0x1e   : > { %vm2073_vm5 = vcmp.ne.s32.totalorder %v616_v54, %v2020_v29  ;;  %v1877_v2 = vld [vmem:[#allocation2 + $0x20] sm:$0xff]  ;;  %vm613_vm7 = vcmp.ne.s32.totalorder %v609_v57, %v2020_v29  ;;  %vm614_vm8 = vcmp.ne.s32.totalorder %v610_v58, %v2032_v35  ;;  %vm2654_vm10 = vcmask 1044480   ;;  %vm847_vm11 = vmpackc.low %vm520_vm6, %vm520_vm6 }
  0x1f   : > { %vm2081_vm9 = vcmp.ne.s32.totalorder %v617_v59, %v2032_v35  ;;  %vm2086_vm13 = vcmp.ne.s32.totalorder %v888_v43, %v2020_v29  ;;  %v536_v6 = vld [vmem:[#allocation2 + $0x8] sm:$0xf]  ;;  %vm2092_vm14 = vmpackc.low %vm614_vm8, %vm613_vm7  ;;  %v2675_v9 = vmov 0  ;;  %vm627_vm15 = vcmp.ne.s32.totalorder %v623_v63, %v2020_v29  ;;  %1800 = vmatmul.msk.bf16.vlgmr.msra.gmra.mxu3 %vm2659_vm4, %v1877_v2  ;;  %v343_v63 = vld [vmem:[%s2008_s25 + $0x14] sm:$0xf] }
  0x20   : > { %v2676_v9 = vsel %vm2092_vm14, 4294967295, %v2675_v9  ;;  %vm628_vm0 = vcmp.ne.s32.totalorder %v624_v0, %v2032_v35  ;;  %vm522_vm3 = vcmp.lt.s32.totalorder %v506_v51, 16  ;;  %v855_v10 = vsel %vm847_vm11, 65537, %v1912_v16  ;;  %v1874_v11 = vld [vmem:[#allocation2 + $0x8] sm:$0xff]  ;;  %vm2104_vm6 = vmpackc.low %vm2081_vm9, %vm2073_vm5  ;;  %v344_v0 = vld [vmem:[%s2008_s25 + $0x18] sm:$0xf] }
  0x21   : > { %v537_v12 = vld [vmem:[#allocation2 + $0xc] sm:$0xf]  ;;  %v2677_v13 = vmov 0  ;;  %v666_v14 = vsel %vm2092_vm14, %v536_v6, 0  ;;  %v867_v15 = vrot.slane %v855_v10, 7  ;;  %vm2111_vm7 = vcmp.ne.s32.totalorder %v889_v52, %v2032_v35  ;;  %vm2117_vm8 = vmpackc.low %vm628_vm0, %vm627_vm15  ;;  %1797 = vmatmul.msk.bf16.vlgmr.msra.gmra.mxu0 %vm2659_vm4, %v1874_v11 }
  0x22   : > { %v2678_v13 = vsel %vm2104_vm6, 4294967295, %v2677_v13  ;;  %v1056_v18 = vsel %vm2068_vm2, %v1047_v1, 0  ;;  %v535_v19 = vld [vmem:[#allocation2 + $0x4] sm:$0x8]  ;;  %v2681_v20 = vmov 0  ;;  %v667_v22 = vsel %vm2104_vm6, %v537_v12, 0  ;;  %vm849_vm0 = vmpackc.low %vm522_vm3, %vm522_vm3 }
  0x23   : > { %v2682_v20 = vsel %vm2117_vm8, 4294967295, %v2681_v20  ;;  %v754_v23 = vunpack.c.l.b16 %v666_v14  ;;  %v821_v24 = vld [vmem:[#allocation2 + $0x8] sm:$0xe]  ;;  %v1057_v25 = vsel %vm2092_vm14, %v2090_v5, 0  ;;  %v2126_v26 = vunpack.c.l.b16 %v1056_v18  ;;  %vm2145_vm5 = vmpackc.low %vm2111_vm7, %vm2086_vm13  ;;  %v822_v49 = vld [vmem:[#allocation2 + $0xc] sm:$0xf] }
  0x24   : > { %v665_v27 = vsel %vm2068_vm2, %v535_v19, 0  ;;  %v668_v28 = vsel %vm2117_vm8, %v538_v7, 0  ;;  %v755_v31 = vunpack.c.l.b16 %v667_v22  ;;  %v868_v32 = vsel %vm2064_vm1, %v2044_v42, %v867_v15  ;;  %v342_v52 = vld [vmem:[%s2008_s25 + $0x10] sm:$0xf]  ;;  %v1841_v5 = vld [vmem:[%s2647_s3 + $0x18] sm:$0xf] }
  0x25   : > { %v753_v33 = vunpack.c.l.b16 %v665_v27  ;;  %v756_v36 = vunpack.c.l.b16 %v668_v28  ;;  %v2139_v38 = vsel %vm849_vm0, 65537, %v1912_v16  ;;  %v869_v39 = vrot.slane %v867_v15, 4  ;;  %v823_v1 = vld [vmem:[#allocation2 + $0x10] sm:$0xf]  ;;  %v824_v7 = vld [vmem:[#allocation2 + $0x14] sm:$0xf] }
  0x26   : > { %v873_v41 = vrot.slane %v2139_v38, 7  ;;  %v895_v43 = vunpack.c.l.b16 %v868_v32  ;;  %v896_v44 = vunpack.c.h.b16 %v868_v32  ;;  %v951_v45 = vsel %vm2145_vm5, %v821_v24, 0  ;;  %v1846_v11 = vld [vmem:[%s2647_s3 + $0x1c] sm:$0xf]  ;;  %v1836_v18 = vld [vmem:[%s2647_s3 + $0x14] sm:$0xf] }
  0x27   : > { %v762_v47 = vpack.c.b16 %v754_v23, %v753_v33  ;;  %v763_v48 = vpack.c.b16 %v756_v36, %v755_v31  ;;  %v871_v50 = vsel %vm2064_vm1, %v869_v39, %v2022_v30  ;;  %v971_v51 = vunpack.c.l.b16 %v951_v45  ;;  %v1867_v27 = vld [vmem:[%s2647_s3 + $0x20] sm:$0xf] }
  0x28   : > { %v874_v53 = vsel %vm2064_vm1, %v2044_v42, %v873_v41  ;;  %vm899_vm3 = vcmp.ne.s32.totalorder %v895_v43, %v2020_v29  ;;  %vm900_vm9 = vcmp.ne.s32.totalorder %v896_v44, %v2032_v35  ;;  %v902_v54 = vunpack.c.l.b16 %v871_v50 }
  0x29   : > { %vm2685_vm11 = vcmask 60416   ;;  %v768_v56 = vrot.slane %v762_v47, 3  ;;  %v2164_v57 = vrot.slane %v763_v48, 3  ;;  %vm2166_vm13 = vmpackc.low %vm900_vm9, %vm899_vm3  ;;  %v903_v59 = vunpack.c.h.b16 %v871_v50 }
  0x2a   : > { %350 = vst.msk [vmem:[#allocation2 + $0x28] sm:$0xf] %vm2685_vm11, %v342_v52  ;;  %v909_v62 = vunpack.c.l.b16 %v874_v53  ;;  %vm906_vm15 = vcmp.ne.s32.totalorder %v902_v54, %v2020_v29  ;;  %v910_v2 = vunpack.c.h.b16 %v874_v53  ;;  %v952_v3 = vsel %vm2166_vm13, %v822_v49, 0  ;;  %vm2688_vm3 = vmmov %vm2685_vm11 }
  0x2b   : > { %v1058_v4 = vsel %vm2104_vm6, %v1049_v46, 0  ;;  %v770_v6 = vsel %vm2654_vm10, %v768_v56, %v2164_v57  ;;  %vm907_vm7 = vcmp.ne.s32.totalorder %v903_v59, %v2032_v35  ;;  %v972_v10 = vunpack.c.l.b16 %v952_v3  ;;  %351 = vst.msk [vmem:[#allocation2 + $0x2c] sm:$0xf] %vm2688_vm3, %v343_v63  ;;  %vm2691_vm10 = vmmov %vm2688_vm3  ;;  %v1878_v46 = vld [vmem:[#allocation2 + $0x18] sm:$0xff] }
  0x2c   : > { %vm913_vm0 = vcmp.ne.s32.totalorder %v909_v62, %v2020_v29  ;;  %vm2188_vm9 = vmpackc.low %vm907_vm7, %vm906_vm15  ;;  %vm914_vm11 = vcmp.ne.s32.totalorder %v910_v2, %v2032_v35  ;;  %v1059_v14 = vsel %vm2117_vm8, %v1050_v55, 0  ;;  %v1077_v15 = vunpack.c.l.b16 %v1057_v25  ;;  %352 = vst.msk [vmem:[#allocation2 + $0x30] sm:$0xf] %vm2691_vm10, %v344_v0  ;;  %1801 = vmatmul.msk.bf16.vlgmr.msrb.gmra.mxu1 %vm2659_vm4, %v770_v6 }
  0x2d   : > { %v1078_v17 = vunpack.c.l.b16 %v1058_v4  ;;  %vm2200_vm3 = vmpackc.low %vm914_vm11, %vm913_vm0  ;;  %v953_v22 = vsel %vm2188_vm9, %v823_v1, 0  ;;  %v980_v23 = vpack.c.b16 %v972_v10, %v971_v51  ;;  %v1079_v24 = vunpack.c.l.b16 %v1059_v14  ;;  %v825_v4 = vld [vmem:[#allocation2 + $0x18] sm:$0xf]  ;;  %v345_v14 = vld [vmem:[%s2008_s25 + $0x1c] sm:$0xf] }
  0x2e   : > { %vm2694_vm15 = vcmask 1043456   ;;  %v954_v28 = vsel %vm2200_vm3, %v824_v7, 0  ;;  %v973_v31 = vunpack.c.l.b16 %v953_v22  ;;  %v1085_v32 = vpack.c.b16 %v1077_v15, %v2126_v26 }
  0x2f   : > { %v1395_v25 = vsel %vm2694_vm15, %v1841_v5, 0  ;;  %vm2695_vm10 = vmmov %vm2694_vm15  ;;  %v974_v36 = vunpack.c.l.b16 %v954_v28  ;;  %v986_v39 = vrot.slane %v980_v23, 1  ;;  %v1086_v43 = vpack.c.b16 %v1079_v24, %v1078_v17 }
  0x30   : > { %1404 = vmatpush.bf16.msra.mxu2 %v1395_v25  ;;  %v1470_v33 = vsel %vm2695_vm10, %v1846_v11, 0  ;;  %vm2696_vm7 = vmmov %vm2695_vm10  ;;  %v1090_v45 = vrot.slane %v1085_v32, 3  ;;  %v371_v48 = vadd.s32 32, %v1981_v8  ;;  %v372_v49 = vadd.s32 40, %v1981_v8 }
  0x31   : > { %1479 = vmatpush.bf16.msra.mxu3 %v1470_v33  ;;  %v1291_v44 = vsel %vm2696_vm7, %v1836_v18, 0  ;;  %vm2697_vm0 = vmmov %vm2696_vm7  ;;  %v981_v50 = vpack.c.b16 %v974_v36, %v973_v31  ;;  %v2218_v26 = vrot.slane %v1086_v43, 3  ;;  %v875_v51 = vrot.slane %v873_v41, 4  ;;  %1832 = vmatmul.msk.bf16.vlgmr.msrb.gmra.mxu0 %vm2659_vm4, %v1878_v46  ;;  %v539_v33 = vld [vmem:[#allocation2 + $0x14] sm:$0xf] }
  0x32   : > { %1300 = vmatpush.bf16.msra.mxu1 %v1291_v44  ;;  %v1574_v47 = vsel %vm2697_vm0, %v1867_v27, 0  ;;  %v373_v52 = vadd.s32 48, %v1981_v8  ;;  %vm2658_vm11 = vcmask 1046528   ;;  %v407_v53 = vand.u32 15, %v371_v48  ;;  %v1051_v44 = vld [vmem:[#allocation2 + $0x24] sm:$0xf] }
  0x33   : > { %1583 = vmatpush.bf16.msra.mxu0 %v1574_v47  ;;  %v414_v54 = vand.u32 15, %v372_v49  ;;  %v374_v55 = vadd.s32 56, %v1981_v8  ;;  %v2224_v56 = vrot.slane %v981_v50, 1  ;;  %vm2698_vm15 = vcmask 1044480   ;;  %v826_v48 = vld [vmem:[#allocation2 + $0x1c] sm:$0xf] }
  0x34   : > { %v1092_v59 = vsel %vm2698_vm15, %v1090_v45, %v2218_v26  ;;  %v877_v62 = vsel %vm2064_vm1, %v875_v51, %v2022_v30  ;;  %v421_v63 = vand.u32 15, %v373_v52  ;;  %v475_v38 = vadd.s32 4294967294, %v407_v53  ;;  %v540_v49 = vld [vmem:[#allocation2 + $0x18] sm:$0xf]  ;;  %v1052_v51 = vld [vmem:[#allocation2 + $0x28] sm:$0xf] }
  0x35   : > { %1811 = vmatmul.msk.bf16.vlgmr.msrb.gmra.mxu3 %vm2659_vm4, %v1092_v59  ;;  %v508_v41 = vadd.s32 2, %v414_v54  ;;  %v916_v0 = vunpack.c.l.b16 %v877_v62  ;;  %v917_v1 = vunpack.c.h.b16 %v877_v62  ;;  %v988_v8 = vsel %vm2658_vm11, %v986_v39, %v2224_v56  ;;  %v1879_v59 = vld [vmem:[#allocation2 + $0x20] sm:$0xff] }
  0x36   : > { %v477_v2 = vadd.s32 4294967294, %v421_v63  ;;  %v428_v3 = vand.u32 15, %v374_v55  ;;  %1806 = vmatmul.msk.bf16.vlgmr.msrb.gmra.mxu2 %vm2659_vm4, %v988_v8  ;;  %vm483_vm10 = vcmp.ge.s32.totalorder %v475_v38, 0  ;;  %v658_v18 = vunpack.c.l.b16 %v2029_v34 }
  0x37   : > { %vm524_vm7 = vcmp.lt.s32.totalorder %v508_v41, 16  ;;  %vm920_vm0 = vcmp.ne.s32.totalorder %v916_v0, %v2020_v29  ;;  %vm921_vm15 = vcmp.ne.s32.totalorder %v917_v1, %v2032_v35  ;;  %vm564_vm8 = vmpackc.low %vm483_vm10, %vm483_vm10  ;;  %v2706_v62 = vmov 0 }
  0x38   : > { %vm485_vm6 = vcmp.ge.s32.totalorder %v477_v2, 0  ;;  %v510_v5 = vadd.s32 2, %v428_v3  ;;  %v572_v6 = vsel %vm564_vm8, 65537, %v1912_v16  ;;  %vm851_vm14 = vmpackc.low %vm524_vm7, %vm524_vm7  ;;  %vm2701_vm8 = vcmask 60416  }
  0x39   : > { %v590_v7 = vrot.slane %v572_v6, 5  ;;  %v859_v10 = vsel %vm851_vm14, 65537, %v1912_v16  ;;  %vm2240_vm11 = vmpackc.low %vm921_vm15, %vm920_vm0  ;;  %353 = vst.msk [vmem:[#allocation2 + $0x34] sm:$0xf] %vm2701_vm8, %v345_v14  ;;  %v541_v14 = vld [vmem:[#allocation2 + $0x1c] sm:$0xf] }
  0x3a   : > { %vm526_vm4 = vcmp.lt.s32.totalorder %v510_v5, 16  ;;  %v879_v15 = vrot.slane %v859_v10, 7  ;;  %v955_v17 = vsel %vm2240_vm11, %v825_v4, 0  ;;  %vm566_vm10 = vmpackc.low %vm485_vm6, %vm485_vm6 }
  0x3b   : > { %v591_v22 = vsel %vm2038_vm12, %v2029_v34, %v590_v7  ;;  %v592_v23 = vrot.slane %v590_v7, 4  ;;  %v975_v24 = vunpack.c.l.b16 %v955_v17  ;;  %v574_v25 = vsel %vm566_vm10, 65537, %v1912_v16  ;;  %vm853_vm14 = vmpackc.low %vm526_vm4, %vm526_vm4 }
  0x3c   : > { %v630_v27 = vunpack.c.l.b16 %v591_v22  ;;  %v631_v28 = vunpack.c.h.b16 %v591_v22  ;;  %v880_v31 = vsel %vm2064_vm1, %v2044_v42, %v879_v15  ;;  %v596_v32 = vrot.slane %v574_v25, 5 }
  0x3d   : > { %v594_v36 = vsel %vm2038_vm12, %v592_v23, %v2010_v21  ;;  %v923_v39 = vunpack.c.l.b16 %v880_v31  ;;  %v924_v43 = vunpack.c.h.b16 %v880_v31  ;;  %v2260_v45 = vsel %vm853_vm14, 65537, %v1912_v16  ;;  %v542_v23 = vld [vmem:[#allocation2 + $0x20] sm:$0xf] }
  0x3e   : > { %vm634_vm4 = vcmp.ne.s32.totalorder %v630_v27, %v2020_v29  ;;  %vm635_vm6 = vcmp.ne.s32.totalorder %v631_v28, %v2032_v35  ;;  %v637_v46 = vunpack.c.l.b16 %v594_v36  ;;  %v638_v47 = vunpack.c.h.b16 %v594_v36 }
  0x3f   : > { %vm2264_vm7 = vmpackc.low %vm635_vm6, %vm634_vm4  ;;  %vm927_vm0 = vcmp.ne.s32.totalorder %v923_v39, %v2020_v29  ;;  %vm928_vm15 = vcmp.ne.s32.totalorder %v924_v43, %v2032_v35  ;;  %v597_v16 = vsel %vm2038_vm12, %v2029_v34, %v596_v32  ;;  %v598_v52 = vrot.slane %v596_v32, 4  ;;  %v1053_v39 = vld [vmem:[#allocation2 + $0x2c] sm:$0xf] }
  0x40   : > { %vm641_vm10 = vcmp.ne.s32.totalorder %v637_v46, %v2020_v29  ;;  %vm642_vm14 = vcmp.ne.s32.totalorder %v638_v47, %v2032_v35  ;;  %v669_v53 = vsel %vm2264_vm7, %v539_v33, 0  ;;  %vm2277_vm8 = vmpackc.low %vm928_vm15, %vm927_vm0  ;;  %v1060_v55 = vsel %vm2264_vm7, %v1051_v44, 0  ;;  %v1054_v46 = vld [vmem:[#allocation2 + $0x30] sm:$0xf] }
  0x41   : > { %vm2283_vm4 = vmpackc.low %vm642_vm14, %vm641_vm10  ;;  %v757_v63 = vunpack.c.l.b16 %v669_v53  ;;  %v956_v38 = vsel %vm2277_vm8, %v826_v48, 0  ;;  %v1080_v41 = vunpack.c.l.b16 %v1060_v55  ;;  %v600_v0 = vsel %vm2038_vm12, %v598_v52, %v2010_v21 }
  0x42   : > { %v2707_v62 = vsel %vm2283_vm4, 4294967295, %v2706_v62  ;;  %v670_v1 = vsel %vm2283_vm4, %v540_v49, 0  ;;  %v976_v8 = vunpack.c.l.b16 %v956_v38  ;;  %v1061_v2 = vsel %vm2283_vm4, %v1052_v51, 0  ;;  %v827_v51 = vld [vmem:[#allocation2 + $0x20] sm:$0xf] }
  0x43   : > { %v644_v3 = vunpack.c.l.b16 %v597_v16  ;;  %v758_v4 = vunpack.c.l.b16 %v670_v1  ;;  %v1081_v5 = vunpack.c.l.b16 %v1061_v2  ;;  %v645_v6 = vunpack.c.h.b16 %v597_v16  ;;  %v828_v16 = vld [vmem:[#allocation2 + $0x24] sm:$0xf]  ;;  %v1226_v1 = vld [vmem:[#allocation2 + $0x18] sm:$0xe] }
  0x44   : > { %v651_v7 = vunpack.c.l.b16 %v600_v0  ;;  %v982_v10 = vpack.c.b16 %v976_v8, %v975_v24  ;;  %vm2708_vm6 = vcmask 64512   ;;  %v652_v37 = vunpack.c.h.b16 %v600_v0 }
  0x45   : > { %1833 = vmatmul.msk.bf16.gmra.mxu0 %vm2708_vm6, %v1879_v59  ;;  %vm648_vm0 = vcmp.ne.s32.totalorder %v644_v3, %v2020_v29  ;;  %v881_v21 = vrot.slane %v879_v15, 4  ;;  %v764_v17 = vpack.c.b16 %v758_v4, %v757_v63  ;;  %v1087_v22 = vpack.c.b16 %v1081_v5, %v1080_v41  ;;  %v1227_v4 = vld [vmem:[#allocation2 + $0x1c] sm:$0xf] }
  0x46   : > { %vm649_vm12 = vcmp.ne.s32.totalorder %v645_v6, %v2032_v35  ;;  %vm655_vm15 = vcmp.ne.s32.totalorder %v651_v7, %v2020_v29  ;;  %v2300_v25 = vrot.slane %v982_v10, 1  ;;  %v2709_v27 = vmov 0  ;;  %v1228_v7 = vld [vmem:[#allocation2 + $0x20] sm:$0xf]  ;;  %v1880_v10 = vld [vmem:[#allocation2 + $0x28] sm:$0xff] }
  0x47   : > { %vm2302_vm10 = vmpackc.low %vm649_vm12, %vm648_vm0  ;;  %vm656_vm14 = vcmp.ne.s32.totalorder %v652_v37, %v2032_v35  ;;  %v883_v24 = vsel %vm2064_vm1, %v881_v21, %v2022_v30  ;;  %v885_v15 = vrot.slane %v2260_v45, 7  ;;  %v2311_v28 = vrot.slane %v764_v17, 3  ;;  %v1229_v37 = vld [vmem:[#allocation2 + $0x24] sm:$0xf] }
  0x48   : > { %v2710_v27 = vsel %vm2302_vm10, 4294967295, %v2709_v27  ;;  %v2313_v31 = vrot.slane %v1087_v22, 3  ;;  %vm2315_vm6 = vmpackc.low %vm656_vm14, %vm655_vm15  ;;  %v2711_v32 = vmov 0  ;;  %v671_v33 = vsel %vm2302_vm10, %v541_v14, 0 }
  0x49   : > { %v2712_v32 = vsel %vm2315_vm6, 4294967295, %v2711_v32  ;;  %v930_v36 = vunpack.c.l.b16 %v883_v24  ;;  %vm2713_vm0 = vcmask 1046528   ;;  %v672_v30 = vsel %vm2315_vm6, %v542_v23, 0 }
  0x4a   : > { %v990_v43 = vsel %vm2713_vm0, %v2224_v56, %v2300_v25  ;;  %v759_v44 = vunpack.c.l.b16 %v671_v33  ;;  %v886_v45 = vsel %vm2064_vm1, %v2044_v42, %v885_v15  ;;  %vm2714_vm12 = vcmask 1044480  }
  0x4b   : > { %v772_v47 = vsel %vm2714_vm12, %v2164_v57, %v2311_v28  ;;  %vm2715_vm15 = vcmask 64512   ;;  %vm2716_vm14 = vmmov %vm2714_vm12  ;;  %v760_v56 = vunpack.c.l.b16 %v672_v30  ;;  %v931_v49 = vunpack.c.h.b16 %v883_v24  ;;  %v1330_v30 = vld [vmem:[#allocation2 + $0x24] sm:$0x8] }
  0x4c   : > { %1807 = vmatmul.msk.bf16.gmra.mxu2 %vm2715_vm15, %v990_v43  ;;  %v1094_v48 = vsel %vm2716_vm14, %v2218_v26, %v2313_v31  ;;  %vm2717_vm0 = vmmov %vm2715_vm15  ;;  %vm934_vm1 = vcmp.ne.s32.totalorder %v930_v36, %v2020_v29  ;;  %v937_v42 = vunpack.c.l.b16 %v886_v45  ;;  %v938_v60 = vunpack.c.h.b16 %v886_v45  ;;  %v1055_v45 = vld [vmem:[#allocation2 + $0x34] sm:$0x7] }
  0x4d   : > { %1802 = vmatmul.msk.bf16.gmra.mxu1 %vm2717_vm0, %v772_v47  ;;  %vm2718_vm4 = vmmov %vm2717_vm0  ;;  %v1062_v57 = vsel %vm2302_vm10, %v1053_v39, 0  ;;  %vm935_vm12 = vcmp.ne.s32.totalorder %v931_v49, %v2032_v35  ;;  %v1063_v26 = vsel %vm2315_vm6, %v1054_v46, 0  ;;  %v659_v53 = vunpack.c.h.b16 %v2029_v34  ;;  %v1332_v47 = vld [vmem:[#allocation2 + $0x2c] sm:$0xf] }
  0x4e   : > { %1812 = vmatmul.msk.bf16.gmra.mxu3 %vm2718_vm4, %v1094_v48  ;;  %v1082_v52 = vunpack.c.l.b16 %v1062_v57  ;;  %vm2345_vm15 = vmpackc.low %vm935_vm12, %vm934_vm1  ;;  %vm941_vm4 = vcmp.ne.s32.totalorder %v937_v42, %v2020_v29  ;;  %vm942_vm14 = vcmp.ne.s32.totalorder %v938_v60, %v2032_v35  ;;  %v1083_v59 = vunpack.c.l.b16 %v1063_v26  ;;  %v1333_v42 = vld [vmem:[#allocation2 + $0x30] sm:$0xf] }
  0x4f   : > { %v765_v63 = vpack.c.b16 %v760_v56, %v759_v44  ;;  %vm2351_vm0 = vmpackc.low %vm942_vm14, %vm941_vm4  ;;  %v957_v41 = vsel %vm2345_vm15, %v827_v51, 0  ;;  %v887_v0 = vrot.slane %v885_v15, 4  ;;  %vm662_vm1 = vcmp.ne.s32.totalorder %v658_v18, %v2020_v29  ;;  %v543_v18 = vld [vmem:[#allocation2 + $0x24] sm:$0x7]  ;;  %v829_v15 = vld [vmem:[#allocation2 + $0x28] sm:$0x1] }
  0x50   : > { %v958_v8 = vsel %vm2351_vm0, %v828_v16, 0  ;;  %v977_v2 = vunpack.c.l.b16 %v957_v41  ;;  %v1088_v3 = vpack.c.b16 %v1083_v59, %v1082_v52  ;;  %vm663_vm12 = vcmp.ne.s32.totalorder %v659_v53, %v2032_v35  ;;  %v1331_v44 = vld [vmem:[#allocation2 + $0x28] sm:$0xf] }
  0x51   : > { %v978_v5 = vunpack.c.l.b16 %v958_v8  ;;  %v944_v6 = vunpack.c.l.b16 %v887_v0  ;;  %v945_v14 = vunpack.c.h.b16 %v887_v0  ;;  %v1235_v21 = vsel %vm2145_vm5, %v1226_v1, 0  ;;  %vm2372_vm14 = vmpackc.low %vm663_vm12, %vm662_vm1  ;;  %v354_v8 = vld [vmem:[%s1999_s20] sm:$0xf] }
  0x52   : > { %v2365_v17 = vrot.slane %v765_v63, 3  ;;  %v1236_v23 = vsel %vm2166_vm13, %v1227_v4, 0  ;;  %v2370_v34 = vrot.slane %v1088_v3, 3  ;;  %v1237_v33 = vsel %vm2188_vm9, %v1228_v7, 0 }
  0x53   : > { %v983_v22 = vpack.c.b16 %v978_v5, %v977_v2  ;;  %vm948_vm4 = vcmp.ne.s32.totalorder %v944_v6, %v2020_v29  ;;  %vm949_vm6 = vcmp.ne.s32.totalorder %v945_v14, %v2032_v35  ;;  %v1238_v39 = vsel %vm2200_vm3, %v1229_v37, 0  ;;  %v1230_v2 = vld [vmem:[#allocation2 + $0x28] sm:$0xf]  ;;  %v1231_v6 = vld [vmem:[#allocation2 + $0x2c] sm:$0xf] }
  0x54   : > { %vm2381_vm10 = vmpackc.low %vm949_vm6, %vm948_vm4  ;;  %v1255_v43 = vunpack.c.l.b16 %v1235_v21  ;;  %vm2727_vm1 = vcmask 64512   ;;  %v1256_v46 = vunpack.c.l.b16 %v1236_v23  ;;  %v1257_v35 = vunpack.c.l.b16 %v1237_v33  ;;  %v1509_v23 = vld [vmem:[#allocation2 + $0x28] sm:$0xe] }
  0x55   : > { %v2379_v36 = vrot.slane %v983_v22, 1  ;;  %1834 = vmatmul.msk.bf16.gmra.mxu0 %vm2727_vm1, %v1880_v10  ;;  %vm2728_vm12 = vcmask 1044480   ;;  %v673_v56 = vsel %vm2372_vm14, %v543_v18, 0  ;;  %v959_v49 = vsel %vm2381_vm10, %v829_v15, 0  ;;  %v355_v10 = vld [vmem:[%s1999_s20 + $0x4] sm:$0xf] }
  0x56   : > { %v774_v48 = vsel %vm2728_vm12, %v2311_v28, %v2365_v17  ;;  %v1258_v51 = vunpack.c.l.b16 %v1238_v39  ;;  %vm2729_vm6 = vcmask 1046528   ;;  %v1264_v57 = vpack.c.b16 %v1256_v46, %v1255_v43  ;;  %vm2731_vm1 = vmmov %vm2728_vm12  ;;  %v1881_v46 = vld [vmem:[#allocation2 + $0x30] sm:$0xff] }
  0x57   : > { %v992_v60 = vsel %vm2729_vm6, %v2300_v25, %v2379_v36  ;;  %v1339_v16 = vsel %vm2068_vm2, %v1330_v30, 0  ;;  %vm2730_vm4 = vnez %v2676_v9  ;;  %v1096_v26 = vsel %vm2731_vm1, %v2313_v31, %v2370_v34  ;;  %v1510_v30 = vld [vmem:[#allocation2 + $0x2c] sm:$0xf] }
  0x58   : > { %v1340_v28 = vsel %vm2730_vm4, %v1331_v44, 0  ;;  %v1064_v52 = vsel %vm2372_vm14, %v1055_v45, 0  ;;  %v1265_v53 = vpack.c.b16 %v1258_v51, %v1257_v35  ;;  %vm2732_vm12 = vnez %v2678_v13  ;;  %v1511_v44 = vld [vmem:[#allocation2 + $0x30] sm:$0xf]  ;;  %v1512_v45 = vld [vmem:[#allocation2 + $0x34] sm:$0xf] }
  0x59   : > { %v1341_v59 = vsel %vm2732_vm12, %v1332_v47, 0  ;;  %v1269_v25 = vrot.slane %v1264_v57, 1  ;;  %vm2733_vm6 = vnez %v2682_v20  ;;  %v1359_v63 = vunpack.c.l.b16 %v1339_v16 }
  0x5a   : > { %v1342_v61 = vsel %vm2733_vm6, %v1333_v42, 0  ;;  %v1360_v41 = vunpack.c.l.b16 %v1340_v28  ;;  %vm2734_vm2 = vcmask 64512   ;;  %v979_v9 = vunpack.c.l.b16 %v959_v49 }
  0x5b   : > { %v1270_v0 = vrot.slane %v1265_v53, 1  ;;  %v1361_v1 = vunpack.c.l.b16 %v1341_v59  ;;  %v1362_v31 = vunpack.c.l.b16 %v1342_v61  ;;  %vm2735_vm4 = vmmov %vm2734_vm2  ;;  %v761_v3 = vunpack.c.l.b16 %v673_v56  ;;  %v1232_v61 = vld [vmem:[#allocation2 + $0x30] sm:$0xf] }
  0x5c   : > { %1808 = vmatmul.msk.bf16.gmra.mxu2 %vm2734_vm2, %v992_v60  ;;  %vm2736_vm1 = vmmov %vm2734_vm2  ;;  %v1368_v13 = vpack.c.b16 %v1360_v41, %v1359_v63  ;;  %v1084_v4 = vunpack.c.l.b16 %v1064_v52  ;;  %vm2737_vm12 = vcmask 1046528   ;;  %vm2738_vm6 = vcmask 60416   ;;  %v1233_v63 = vld [vmem:[#allocation2 + $0x34] sm:$0xf] }
  0x5d   : > { %1803 = vmatmul.msk.bf16.gmra.mxu1 %vm2735_vm4, %v774_v48  ;;  %v2416_v20 = vsel %vm2737_vm12, %v1269_v25, %v1270_v0  ;;  %v1369_v5 = vpack.c.b16 %v1362_v31, %v1361_v1  ;;  %360 = vst.msk [vmem:[#allocation2 + $0x38] sm:$0xf] %vm2738_vm6, %v354_v8  ;;  %v984_v14 = vpack.c.b16 %v979_v9, %v979_v9  ;;  %v1239_v21 = vsel %vm2240_vm11, %v1230_v2, 0  ;;  %vm2739_vm2 = vmmov %vm2738_vm6  ;;  %v356_v25 = vld [vmem:[%s1999_s20 + $0x8] sm:$0xf] }
  0x5e   : > { %1813 = vmatmul.msk.bf16.gmra.mxu3 %vm2736_vm1, %v1096_v26  ;;  %v1373_v7 = vrot.slane %v1368_v13, 3  ;;  %v1240_v22 = vsel %vm2277_vm8, %v1231_v6, 0  ;;  %361 = vst.msk [vmem:[#allocation2 + $0x3c] sm:$0xf] %vm2739_vm2, %v355_v10  ;;  %v1259_v18 = vunpack.c.l.b16 %v1239_v21  ;;  %v766_v33 = vpack.c.b16 %v761_v3, %v761_v3  ;;  %vm2745_vm6 = vmmov %vm2736_vm1 }
  0x5f   : > { %v2420_v37 = vrot.slane %v1369_v5, 3  ;;  %v1260_v15 = vunpack.c.l.b16 %v1240_v22  ;;  %v1089_v39 = vpack.c.b16 %v1084_v4, %v1084_v4  ;;  %vm2740_vm4 = vcmask 1044480   ;;  %vm2746_vm2 = vmmov %vm2736_vm1  ;;  %v1882_v22 = vld [vmem:[#allocation2 + $0x28] sm:$0xff] }
  0x60   : > { %v993_v47 = vrot.slane %v984_v14, 1  ;;  %v1518_v48 = vsel %vm2145_vm5, %v1509_v23, 0  ;;  %v1519_v56 = vsel %vm2166_vm13, %v1510_v30, 0  ;;  %v1520_v49 = vsel %vm2188_vm9, %v1511_v44, 0  ;;  %vm2741_vm5 = vmmov %vm2737_vm12 }
  0x61   : > { %v1375_v43 = vsel %vm2740_vm4, %v1373_v7, %v2420_v37  ;;  %v1266_v35 = vpack.c.b16 %v1260_v15, %v1259_v18  ;;  %v1521_v51 = vsel %vm2200_vm3, %v1512_v45, 0  ;;  %v775_v60 = vrot.slane %v766_v33, 3  ;;  %vm2742_vm13 = vmmov %vm2740_vm4  ;;  %v1334_v7 = vld [vmem:[#allocation2 + $0x34] sm:$0xf]  ;;  %v358_v33 = vld [vmem:[%s1999_s20 + $0x10] sm:$0xf] }
  0x62   : > { %v1097_v57 = vrot.slane %v1089_v39, 3  ;;  %v1538_v40 = vunpack.c.l.b16 %v1518_v48  ;;  %v1539_v28 = vunpack.c.l.b16 %v1519_v56  ;;  %v1540_v26 = vunpack.c.l.b16 %v1520_v49  ;;  %vm2743_vm9 = vmmov %vm2740_vm4 }
  0x63   : > { %v1272_v42 = vrot.slane %v1266_v35, 1  ;;  %v1541_v58 = vunpack.c.l.b16 %v1521_v51  ;;  %v994_v12 = vsel %vm2741_vm5, %v2379_v36, %v993_v47  ;;  %v776_v19 = vsel %vm2742_vm13, %v2365_v17, %v775_v60  ;;  %vm2744_vm3 = vmmov %vm2736_vm1 }
  0x64   : > { %v1098_v52 = vsel %vm2743_vm9, %v2370_v34, %v1097_v57  ;;  %v1547_v53 = vpack.c.b16 %v1539_v28, %v1538_v40  ;;  %v1241_v36 = vsel %vm2345_vm15, %v1232_v61, 0  ;;  %v1242_v17 = vsel %vm2351_vm0, %v1233_v63, 0  ;;  %v357_v34 = vld [vmem:[%s1999_s20 + $0xc] sm:$0xf]  ;;  %v1513_v8 = vld [vmem:[#allocation2 + $0x38] sm:$0xf]  ;;  %vm2750_vm13 = vmmov %vm2746_vm2  ;;  %s2581_s20 = scalar_lea.vmem %s2651_s7, %s1775_s21 }
  0x65   : > { %1835 = vmatmul.msk.bf16.gmra.mxu0 %vm2736_vm1, %v1881_v46  ;;  %v2439_v16 = vsel %vm2737_vm12, %v1270_v0, %v1272_v42  ;;  %v1548_v59 = vpack.c.b16 %v1541_v58, %v1540_v26  ;;  %vm2747_vm4 = vcmask 60416   ;;  %v1261_v41 = vunpack.c.l.b16 %v1241_v36  ;;  %v1514_v13 = vld [vmem:[#allocation2 + $0x3c] sm:$0xf]  ;;  %vm2749_vm12 = vmmov %vm2741_vm5  ;;  %v1335_v10 = vld [vmem:[#allocation2 + $0x38] sm:$0xf] }
  0x66   : > { %362 = vst.msk [vmem:[#allocation2 + $0x40] sm:$0xf] %vm2747_vm4, %v356_v25  ;;  %v1262_v9 = vunpack.c.l.b16 %v1242_v17  ;;  %vm2748_vm1 = vmmov %vm2747_vm4  ;;  %v1552_v0 = vrot.slane %v1547_v53, 1  ;;  %v1522_v4 = vsel %vm2240_vm11, %v1513_v8, 0  ;;  %v1523_v5 = vsel %vm2277_vm8, %v1514_v13, 0  ;;  %v1883_v57 = vld [vmem:[#allocation2 + $0x30] sm:$0xff] }
  0x67   : > { %363 = vst.msk [vmem:[#allocation2 + $0x44] sm:$0xf] %vm2748_vm1, %v357_v34  ;;  %v1553_v1 = vrot.slane %v1548_v59, 1  ;;  %v1542_v14 = vunpack.c.l.b16 %v1522_v4  ;;  %v1543_v21 = vunpack.c.l.b16 %v1523_v5  ;;  %v1343_v23 = vsel %vm2264_vm7, %v1334_v7, 0  ;;  %vm2752_vm11 = vmmov %vm2746_vm2  ;;  %v1234_v45 = vld [vmem:[#allocation2 + $0x38] sm:$0x1] }
  0x68   : > { %v1267_v31 = vpack.c.b16 %v1262_v9, %v1261_v41  ;;  %vm2751_vm9 = vnez %v2707_v62  ;;  %vm2753_vm8 = vmmov %vm2746_vm2  ;;  %v1363_v18 = vunpack.c.l.b16 %v1343_v23  ;;  %v1243_v35 = vsel %vm2381_vm10, %v1234_v45, 0  ;;  %v1336_v48 = vld [vmem:[#allocation2 + $0x3c] sm:$0xf] }
  0x69   : > { %v1554_v3 = vsel %vm2749_vm12, %v1552_v0, %v1553_v1  ;;  %v1344_v11 = vsel %vm2751_vm9, %v1335_v10, 0  ;;  %v1549_v54 = vpack.c.b16 %v1543_v21, %v1542_v14  ;;  %vm2756_vm7 = vmmov %vm2741_vm5  ;;  %v1263_v47 = vunpack.c.l.b16 %v1243_v35 }
  0x6a   : > { %v1274_v2 = vrot.slane %v1267_v31, 1  ;;  %v1364_v15 = vunpack.c.l.b16 %v1344_v11  ;;  %vm2757_vm4 = vcmask 1044480   ;;  %vm2761_vm12 = vmmov %vm2741_vm5 }
  0x6b   : > { %v1555_v39 = vrot.slane %v1549_v54, 1  ;;  %vm2764_vm9 = vmmov %vm2756_vm7 }
  0x6c   : > { %1809 = vmatmul.msk.bf16.gmra.mxu2 %vm2744_vm3, %v994_v12  ;;  %v1275_v6 = vsel %vm2741_vm5, %v1272_v42, %v1274_v2  ;;  %vm2754_vm3 = vmmov %vm2746_vm2  ;;  %v1370_v30 = vpack.c.b16 %v1364_v15, %v1363_v18  ;;  %v1268_v42 = vpack.c.b16 %v1263_v47, %v1263_v47 }
  0x6d   : > { %1804 = vmatmul.msk.bf16.gmra.mxu1 %vm2745_vm6, %v776_v19  ;;  %vm2755_vm6 = vmmov %vm2748_vm1  ;;  %v1515_v50 = vld [vmem:[#allocation2 + $0x40] sm:$0xf]  ;;  %v1556_v62 = vsel %vm2756_vm7, %v1553_v1, %v1555_v39 }
  0x6e   : > { %1814 = vmatmul.msk.bf16.gmra.mxu3 %vm2746_vm2, %v1098_v52  ;;  %364 = vst.msk [vmem:[#allocation2 + $0x48] sm:$0xf] %vm2755_vm6, %v358_v33  ;;  %v1516_v44 = vld [vmem:[#allocation2 + $0x44] sm:$0xf]  ;;  %v1376_v46 = vrot.slane %v1370_v30, 3  ;;  %v1276_v40 = vrot.slane %v1268_v42, 1  ;;  %vm2760_vm1 = vmmov %vm2746_vm2 }
  0x6f   : > { %v1337_v56 = vld [vmem:[#allocation2 + $0x40] sm:$0xf]  ;;  %vm2762_vm5 = vmmov %vm2760_vm1  ;;  %v1338_v59 = vld [vmem:[#allocation2 + $0x44] sm:$0x7] }
  0x70   : > { %v1377_v60 = vsel %vm2757_vm4, %v2420_v37, %v1376_v46  ;;  %v1277_v26 = vsel %vm2761_vm12, %v1274_v2, %v1276_v40  ;;  %v1347_v63 = vsel %vm2372_vm14, %v1338_v59, 0  ;;  %vm2768_vm6 = vmmov %vm2760_vm1  ;;  %v1885_v13 = vld [vmem:[#allocation2 + $0x40] sm:$0xff] }
  0x71   : > { %vm2769_vm7 = vmmov %vm2760_vm1  ;;  %v1367_v17 = vunpack.c.l.b16 %v1347_v63 }
  0x72   : > { %vm2772_vm14 = vmmov %vm2757_vm4 }
  0x73   : > { %v1372_v34 = vpack.c.b16 %v1367_v17, %v1367_v17 }
  0x75   : > { %1868 = vmatmul.msk.bf16.vlgmr.msra.gmra.mxu0 %vm2750_vm13, %v1554_v3  ;;  %vm2763_vm13 = vmmov %vm2760_vm1  ;;  %v1380_v1 = vrot.slane %v1372_v34, 3 }
  0x7c   : > { %1842 = vmatmul.msk.bf16.vlgmr.msra.gmra.mxu2 %vm2752_vm11, %v1375_v43  ;;  %v1524_v43 = vsel %vm2345_vm15, %v1515_v50, 0  ;;  %vm2758_vm15 = vnez %v2710_v27  ;;  %v1517_v27 = vld [vmem:[#allocation2 + $0x48] sm:$0x1]  ;;  %vm2765_vm11 = vmmov %vm2760_vm1 }
  0x7d   : > { %1837 = vmatmul.msk.bf16.vlgmr.msra.gmra.mxu1 %vm2753_vm8, %v2416_v20  ;;  %v1525_v20 = vsel %vm2351_vm0, %v1516_v44, 0  ;;  %v1544_v49 = vunpack.c.l.b16 %v1524_v43  ;;  %v1345_v55 = vsel %vm2758_vm15, %v1336_v48, 0  ;;  %vm2759_vm0 = vnez %v2712_v32  ;;  %vm2766_vm8 = vmmov %vm2757_vm4 }
  0x7e   : > { %1863 = vmatmul.msk.bf16.vlgmr.msra.gmra.mxu3 %vm2754_vm3, %v1882_v22  ;;  %v1545_v51 = vunpack.c.l.b16 %v1525_v20  ;;  %v1346_v38 = vsel %vm2759_vm0, %v1337_v56, 0  ;;  %v1365_v58 = vunpack.c.l.b16 %v1345_v55  ;;  %v1526_v53 = vsel %vm2381_vm10, %v1517_v27, 0  ;;  %vm2767_vm3 = vmmov %vm2760_vm1 }
  0x7f   : > { %v1366_v37 = vunpack.c.l.b16 %v1346_v38  ;;  %v1546_v25 = vunpack.c.l.b16 %v1526_v53  ;;  %vm2770_vm10 = vmmov %vm2764_vm9 }
  0x80   : > { %v1550_v28 = vpack.c.b16 %v1545_v51, %v1544_v49  ;;  %vm2773_vm4 = vmmov %vm2760_vm1 }
  0x81   : > { %v1371_v19 = vpack.c.b16 %v1366_v37, %v1365_v58  ;;  %v1551_v36 = vpack.c.b16 %v1546_v25, %v1546_v25  ;;  %vm2774_vm15 = vmmov %vm2760_vm1 }
  0x82   : > { %v1557_v12 = vrot.slane %v1550_v28, 1  ;;  %vm2775_vm0 = vmmov %vm2760_vm1 }
  0x83   : > { %v1378_v32 = vrot.slane %v1371_v19, 3  ;;  %v1559_v29 = vrot.slane %v1551_v36, 1  ;;  %v2559_v36 = vld [vmem:[%s2648_s4] ss:$0 sm:$0xff] }
  0x84   : > { %v1558_v52 = vsel %vm2764_vm9, %v1555_v39, %v1557_v12 }
  0x85   : > { %1869 = vmatmul.msk.bf16.gmra.mxu0 %vm2746_vm2, %v1556_v62  ;;  %v1379_v61 = vsel %vm2766_vm8, %v1376_v46, %v1378_v32  ;;  %v1560_v0 = vsel %vm2770_vm10, %v1557_v12, %v1559_v29  ;;  %vm2771_vm2 = vmmov %vm2760_vm1  ;;  %v1381_v8 = vsel %vm2772_vm14, %v1378_v32, %v1380_v1 }
  0x8c   : > { %1843 = vmatmul.msk.bf16.gmra.mxu2 %vm2760_vm1, %v1377_v60 }
  0x8d   : > { %1838 = vmatmul.msk.bf16.gmra.mxu1 %vm2762_vm5, %v2439_v16  ;;  %v1884_v16 = vld [vmem:[#allocation2 + $0x38] sm:$0xff]  ;;  %vm2776_vm5 = vcmask 60416  }
  0x8e   : > { %1864 = vmatmul.msk.bf16.gmra.mxu3 %vm2763_vm13, %v1883_v57  ;;  %vm2777_vm9 = vmmov %vm2776_vm5 }
  0x8f   : > { %vm2778_vm8 = vmmov %vm2776_vm5 }
  0x90   : > { %vm2780_vm10 = vmmov %vm2776_vm5 }
  0x91   : > { %vm2781_vm14 = vmmov %vm2776_vm5 }
  0x95   : > { %1870 = vmatmul.msk.bf16.gmra.mxu0 %vm2765_vm11, %v1558_v52 }
  0x97   : > { %v729_v41 = vpop.f32.mrf.mxu1 }
  0x9c   : > { %1844 = vmatmul.msk.bf16.gmra.mxu2 %vm2767_vm3, %v1379_v61 }
  0x9d   : > { %1839 = vmatmul.msk.bf16.gmra.mxu1 %vm2768_vm6, %v1275_v6  ;;  %vm2779_vm6 = vmmov %vm2776_vm5 }
  0x9e   : > { %1865 = vmatmul.msk.bf16.gmra.mxu3 %vm2769_vm7, %v1884_v16  ;;  %v724_v9 = vpop.f32.mrf.mxu0 }
  0x9f   : > { %v2506_v31 = vpop.f32.mrf.mxu2  ;;  %v2512_v2 = vpop.f32.mrf.mxu1 }
  0xa2   : > { %v2508_v24 = vpop.f32.mrf.mxu3 }
  0xa5   : > { %1871 = vmatmul.msk.bf16.gmra.mxu0 %vm2771_vm2, %v1560_v0 }
  0xa6   : > { %v726_v3 = vpop.f32.mrf.mxu0 }
  0xa7   : > { %v2518_v5 = vpop.f32.mrf.mxu2 }
  0xa9   : > { %v801_v7 = vpop.f32.mrf.mxu1 }
  0xaa   : > { %v2516_v4 = vpop.f32.mrf.mxu3  ;;  %v802_v57 = vadd.f32 %v801_v7, %v724_v9 }
  0xac   : > { %1845 = vmatmul.msk.bf16.gmra.mxu2 %vm2773_vm4, %v1381_v8  ;;  %v2565_v8 = vld [vmem:[%s2649_s5] ss:$0 sm:$0xff] }
  0xad   : > { %1840 = vmatmul.msk.bf16.gmra.mxu1 %vm2774_vm15, %v1277_v26  ;;  %vm2782_vm15 = vmmov %vm2776_vm5 }
  0xae   : > { %1866 = vmatmul.msk.bf16.gmra.mxu3 %vm2775_vm0, %v1885_v13  ;;  %v1198_v6 = vpop.f32.mrf.mxu0  ;;  %vm2783_vm0 = vmmov %vm2776_vm5 }
  0xb1   : > { %v803_v22 = vpop.f32.mrf.mxu1 }
  0xb2   : > { %v804_v37 = vadd.f32 %v803_v22, %v726_v3 }
  0xb6   : > { %v1200_v21 = vpop.f32.mrf.mxu0 }
  0xb8   : > { %v1123_v10 = vpop.f32.mrf.mxu3 }
  0xb9   : > { %v1019_v14 = vpop.f32.mrf.mxu2 }
  0xba   : > { %v1039_v38 = vadd.f32 %v1019_v14, %v802_v57 }
  0xbc   : > { %v1143_v26 = vadd.f32 %v1123_v10, %v1039_v38  ;;  %v2570_v10 = vld [vmem:[%s2650_s6] ss:$0 sm:$0xff] }
  0xbe   : > { %v1218_v27 = vadd.f32 %v1198_v6, %v1143_v26 }
  0xc0   : > { %v1125_v54 = vpop.f32.mrf.mxu3 }
  0xc1   : > { %v1021_v11 = vpop.f32.mrf.mxu2 }
  0xc2   : > { %v2520_v23 = vpop.f32.mrf.mxu0  ;;  %v1040_v19 = vadd.f32 %v1021_v11, %v804_v37 }
  0xc4   : > { %v1144_v59 = vadd.f32 %v1125_v54, %v1040_v19 }
  0xc6   : > { %v1219_v9 = vadd.f32 %v1200_v21, %v1144_v59 }
  0xca   : > { %v806_v18 = vpop.f32.mrf.mxu1  ;;  %v2522_v15 = vpop.f32.mrf.mxu0 }
  0xcb   : > { %v807_v16 = vadd.f32 %v806_v18, %v729_v41 }
  0xcf   : > { %v1024_v33 = vpop.f32.mrf.mxu2 }
  0xd0   : > { %v1041_v29 = vadd.f32 %v1024_v33, %v807_v16 }
  0xd1   : > { %v1128_v39 = vpop.f32.mrf.mxu3 }
  0xd2   : > { %v808_v30 = vpop.f32.mrf.mxu1  ;;  %v2524_v50 = vpop.f32.mrf.mxu0  ;;  %v1145_v41 = vadd.f32 %v1128_v39, %v1041_v29 }
  0xd3   : > { %v809_v21 = vadd.f32 %v808_v30, %v2512_v2 }
  0xd4   : > { %v1220_v57 = vadd.f32 %v2520_v23, %v1145_v41 }
  0xd7   : > { %v1026_v44 = vpop.f32.mrf.mxu2 }
  0xd8   : > { %v1042_v33 = vadd.f32 %v1026_v44, %v809_v21 }
  0xd9   : > { %v1130_v62 = vpop.f32.mrf.mxu3 }
  0xda   : > { %v2526_v45 = vpop.f32.mrf.mxu1  ;;  %v2528_v46 = vpop.f32.mrf.mxu0  ;;  %v1146_v37 = vadd.f32 %v1130_v62, %v1042_v33 }
  0xdb   : > { %v812_v23 = vadd.f32 %v2526_v45, %v2506_v31 }
  0xdc   : > { %v1221_v62 = vadd.f32 %v2522_v15, %v1146_v37 }
  0xdf   : > { %v2530_v43 = vpop.f32.mrf.mxu2 }
  0xe1   : > { %v2532_v20 = vpop.f32.mrf.mxu3 }
  0xe2   : > { %v2534_v35 = vpop.f32.mrf.mxu1  ;;  %v2536_v47 = vpop.f32.mrf.mxu0 }
  0xe7   : > { %v2538_v48 = vpop.f32.mrf.mxu2 }
  0xe9   : > { %v2540_v56 = vpop.f32.mrf.mxu3 }
  0xea   : > { %v2542_v49 = vpop.f32.mrf.mxu1  ;;  %v2544_v51 = vpop.f32.mrf.mxu0 }
  0xef   : > { %v2546_v42 = vpop.f32.mrf.mxu2 }
  0xf1   : > { %v2548_v60 = vpop.f32.mrf.mxu3 }
  0xf2   : > { %v2550_v55 = vpop.f32.mrf.mxu1  ;;  %v1585_v40 = vpop.f32.mrf.mxu0 }
  0xf7   : > { %v2552_v28 = vpop.f32.mrf.mxu2 }
  0xf9   : > { %v2554_v58 = vpop.f32.mrf.mxu3 }
  0xfa   : > { %v1302_v12 = vpop.f32.mrf.mxu1  ;;  %v1587_v53 = vpop.f32.mrf.mxu0 }
  0xfb   : > { %v1322_v52 = vadd.f32 %v1302_v12, %v1218_v27 }
  0xff   : > { %v1406_v32 = vpop.f32.mrf.mxu2 }
 0x100   : > { %v1426_v25 = vadd.f32 %v1406_v32, %v1322_v52 }
 0x101   : > { %v1481_v61 = vpop.f32.mrf.mxu3 }
 0x102   : > { %v1501_v63 = vadd.f32 %v1481_v61, %v1426_v25  ;;  %v1304_v17 = vpop.f32.mrf.mxu1  ;;  %v1590_v14 = vpop.f32.mrf.mxu0  ;;  %v1043_v25 = vadd.f32 %v2530_v43, %v812_v23  ;;  %v814_v43 = vadd.f32 %v2534_v35, %v2518_v5 }
 0x103   : > { %v1323_v1 = vadd.f32 %v1304_v17, %v1219_v9 }
 0x104   : > { %v1605_v34 = vadd.f32 %v1585_v40, %v1501_v63  ;;  %v1147_v31 = vadd.f32 %v2532_v20, %v1043_v25 }
 0x106   : > { %v1617_v0 = vadd.f32 %v2559_v36, %v1605_v34  ;;  %v1222_v20 = vadd.f32 %v2524_v50, %v1147_v31 }
 0x107   : > { %v1408_v13 = vpop.f32.mrf.mxu2 }
 0x108   : > { %vm1625_vm1 = vcmp.ge.f32.partialorder %v1617_v0, 0.0  ;;  %v1633_v3 = vmul.f32 0.01, %v1617_v0  ;;  %v1427_v6 = vadd.f32 %v1408_v13, %v1323_v1 }
 0x109   : > { %v1483_v7 = vpop.f32.mrf.mxu3 }
 0x10a   : > { %v1641_v22 = vsel %vm1625_vm1, %v1617_v0, %v1633_v3  ;;  %v1502_v11 = vadd.f32 %v1483_v7, %v1427_v6  ;;  %v1307_v54 = vpop.f32.mrf.mxu1  ;;  %v1592_v59 = vpop.f32.mrf.mxu0  ;;  %v1044_v3 = vadd.f32 %v2538_v48, %v814_v43  ;;  %v817_v48 = vadd.f32 %v2542_v49, %v2508_v24 }
 0x10b   : > { %v1653_v18 = vmul.f32 %v2565_v8, %v1641_v22  ;;  %v1324_v30 = vadd.f32 %v1307_v54, %v1220_v57 }
 0x10c   : > { %v1606_v39 = vadd.f32 %v1587_v53, %v1502_v11  ;;  %v1148_v5 = vadd.f32 %v2540_v56, %v1044_v3 }
 0x10d   : > { %v1665_v38 = vadd.f32 %v2570_v10, %v1653_v18 }
 0x10e   : > { %v1618_v2 = vadd.f32 %v2559_v36, %v1606_v39  ;;  %v1223_v56 = vadd.f32 %v2528_v46, %v1148_v5 }
 0x10f   : > { %v1673_v40 = vpack.c.bf16 %v1665_v38, %v1665_v38  ;;  %v1411_v26 = vpop.f32.mrf.mxu2 }
 0x110   : > { %vm1626_vm12 = vcmp.ge.f32.partialorder %v1618_v2, 0.0  ;;  %v1634_v44 = vmul.f32 0.01, %v1618_v2  ;;  %v1428_v12 = vadd.f32 %v1411_v26, %v1324_v30 }
 0x111   : > { %v1486_v19 = vpop.f32.mrf.mxu3  ;;  %1681 = vst.msk [vmem:[%s2581_s20] sm:$0xf] %vm2776_vm5, %v1673_v40 }
 0x112   : > { %v1642_v27 = vsel %vm1626_vm12, %v1618_v2, %v1634_v44  ;;  %v1503_v52 = vadd.f32 %v1486_v19, %v1428_v12  ;;  %v1309_v32 = vpop.f32.mrf.mxu1  ;;  %v1045_v2 = vadd.f32 %v2546_v42, %v817_v48  ;;  %v819_v42 = vadd.f32 %v2550_v55, %v2516_v4 }
 0x113   : > { %v1654_v53 = vmul.f32 %v2565_v8, %v1642_v27  ;;  %v1325_v17 = vadd.f32 %v1309_v32, %v1221_v62 }
 0x114   : > { %v1607_v61 = vadd.f32 %v1590_v14, %v1503_v52  ;;  %v1595_v14 = vpop.f32.mrf.mxu0  ;;  %v1149_v24 = vadd.f32 %v2548_v60, %v1045_v2 }
 0x115   : > { %v1666_v16 = vadd.f32 %v2570_v10, %v1654_v53 }
 0x116   : > { %v1619_v63 = vadd.f32 %v2559_v36, %v1607_v61  ;;  %v1224_v60 = vadd.f32 %v2536_v47, %v1149_v24 }
 0x117   : > { %v1674_v29 = vpack.c.bf16 %v1666_v16, %v1666_v16  ;;  %v1413_v34 = vpop.f32.mrf.mxu2 }
 0x118   : > { %vm1627_vm13 = vcmp.ge.f32.partialorder %v1619_v63, 0.0  ;;  %v1635_v45 = vmul.f32 0.01, %v1619_v63  ;;  %v1429_v9 = vadd.f32 %v1413_v34, %v1325_v17 }
 0x119   : > { %v1488_v0 = vpop.f32.mrf.mxu3  ;;  %1682 = vst.msk [vmem:[%s2581_s20 + $0x4] sm:$0xf] %vm2777_vm9, %v1674_v29 }
 0x11a   : > { %v1643_v1 = vsel %vm1627_vm13, %v1619_v63, %v1635_v45  ;;  %v1504_v15 = vadd.f32 %v1488_v0, %v1429_v9  ;;  %v1312_v13 = vpop.f32.mrf.mxu1 }
 0x11b   : > { %v1655_v41 = vmul.f32 %v2565_v8, %v1643_v1  ;;  %v1326_v22 = vadd.f32 %v1312_v13, %v1222_v20 }
 0x11c   : > { %v1608_v6 = vadd.f32 %v1592_v59, %v1504_v15  ;;  %v1597_v12 = vpop.f32.mrf.mxu0  ;;  %v1046_v59 = vadd.f32 %v2552_v28, %v819_v42 }
 0x11d   : > { %v1667_v7 = vadd.f32 %v2570_v10, %v1655_v41 }
 0x11e   : > { %v1620_v21 = vadd.f32 %v2559_v36, %v1608_v6  ;;  %v1150_v4 = vadd.f32 %v2554_v58, %v1046_v59 }
 0x11f   : > { %v1675_v11 = vpack.c.bf16 %v1667_v7, %v1667_v7  ;;  %v1416_v54 = vpop.f32.mrf.mxu2 }
 0x120   : > { %vm1628_vm11 = vcmp.ge.f32.partialorder %v1620_v21, 0.0  ;;  %v1636_v35 = vmul.f32 0.01, %v1620_v21  ;;  %v1430_v18 = vadd.f32 %v1416_v54, %v1326_v22  ;;  %v1225_v43 = vadd.f32 %v2544_v51, %v1150_v4 }
 0x121   : > { %v1491_v33 = vpop.f32.mrf.mxu3  ;;  %1683 = vst.msk [vmem:[%s2581_s20 + $0x8] sm:$0xf] %vm2778_vm8, %v1675_v11 }
 0x122   : > { %v1644_v50 = vsel %vm1628_vm11, %v1620_v21, %v1636_v35  ;;  %v1505_v39 = vadd.f32 %v1491_v33, %v1430_v18  ;;  %v1314_v57 = vpop.f32.mrf.mxu1 }
 0x123   : > { %v1656_v38 = vmul.f32 %v2565_v8, %v1644_v50  ;;  %v1327_v37 = vadd.f32 %v1314_v57, %v1223_v56 }
 0x124   : > { %v1609_v30 = vadd.f32 %v1595_v14, %v1505_v39  ;;  %v1600_v28 = vpop.f32.mrf.mxu0 }
 0x125   : > { %v1668_v40 = vadd.f32 %v2570_v10, %v1656_v38 }
 0x126   : > { %v1621_v26 = vadd.f32 %v2559_v36, %v1609_v30 }
 0x127   : > { %v1676_v44 = vpack.c.bf16 %v1668_v40, %v1668_v40  ;;  %v1418_v19 = vpop.f32.mrf.mxu2 }
 0x128   : > { %vm1629_vm3 = vcmp.ge.f32.partialorder %v1621_v26, 0.0  ;;  %v1637_v49 = vmul.f32 0.01, %v1621_v26  ;;  %v1431_v23 = vadd.f32 %v1418_v19, %v1327_v37 }
 0x129   : > { %v1493_v27 = vpop.f32.mrf.mxu3  ;;  %1684 = vst.msk [vmem:[%s2581_s20 + $0xc] sm:$0xf] %vm2779_vm6, %v1676_v44 }
 0x12a   : > { %v1645_v46 = vsel %vm1629_vm3, %v1621_v26, %v1637_v49  ;;  %v1506_v52 = vadd.f32 %v1493_v27, %v1431_v23  ;;  %v1317_v32 = vpop.f32.mrf.mxu1 }
 0x12b   : > { %v1657_v53 = vmul.f32 %v2565_v8, %v1645_v46  ;;  %v1328_v16 = vadd.f32 %v1317_v32, %v1224_v60 }
 0x12c   : > { %v1610_v25 = vadd.f32 %v1597_v12, %v1506_v52  ;;  %v1602_v51 = vpop.f32.mrf.mxu0 }
 0x12d   : > { %v1669_v61 = vadd.f32 %v2570_v10, %v1657_v53 }
 0x12e   : > { %v1622_v62 = vadd.f32 %v2559_v36, %v1610_v25 }
 0x12f   : > { %v1677_v63 = vpack.c.bf16 %v1669_v61, %v1669_v61  ;;  %v1421_v17 = vpop.f32.mrf.mxu2 }
 0x130   : > { %vm1630_vm7 = vcmp.ge.f32.partialorder %v1622_v62, 0.0  ;;  %v1638_v55 = vmul.f32 0.01, %v1622_v62  ;;  %v1432_v29 = vadd.f32 %v1421_v17, %v1328_v16 }
 0x131   : > { %v1496_v34 = vpop.f32.mrf.mxu3  ;;  %1685 = vst.msk [vmem:[%s2581_s20 + $0x10] sm:$0xf] %vm2780_vm10, %v1677_v63 }
 0x132   : > { %v1646_v31 = vsel %vm1630_vm7, %v1622_v62, %v1638_v55  ;;  %v1507_v45 = vadd.f32 %v1496_v34, %v1432_v29  ;;  %v1319_v9 = vpop.f32.mrf.mxu1 }
 0x133   : > { %v1658_v47 = vmul.f32 %v2565_v8, %v1646_v31  ;;  %v1329_v15 = vadd.f32 %v1319_v9, %v1225_v43 }
 0x134   : > { %v1611_v0 = vadd.f32 %v1600_v28, %v1507_v45 }
 0x135   : > { %v1670_v1 = vadd.f32 %v2570_v10, %v1658_v47 }
 0x136   : > { %v1623_v58 = vadd.f32 %v2559_v36, %v1611_v0 }
 0x137   : > { %v1678_v13 = vpack.c.bf16 %v1670_v1, %v1670_v1  ;;  %v1423_v41 = vpop.f32.mrf.mxu2 }
 0x138   : > { %vm1631_vm2 = vcmp.ge.f32.partialorder %v1623_v58, 0.0  ;;  %v1639_v3 = vmul.f32 0.01, %v1623_v58  ;;  %v1433_v6 = vadd.f32 %v1423_v41, %v1329_v15 }
 0x139   : > { %1686 = vst.msk [vmem:[%s2581_s20 + $0x14] sm:$0xf] %vm2781_vm14, %v1678_v13  ;;  %v1498_v20 = vpop.f32.mrf.mxu3 }
 0x13a   : > { %v1647_v7 = vsel %vm1631_vm2, %v1623_v58, %v1639_v3  ;;  %v1508_v14 = vadd.f32 %v1498_v20, %v1433_v6 }
 0x13b   : > { %v1659_v21 = vmul.f32 %v2565_v8, %v1647_v7 }
 0x13c   : > { %v1612_v22 = vadd.f32 %v1602_v51, %v1508_v14 }
 0x13d   : > { %v1671_v11 = vadd.f32 %v2570_v10, %v1659_v21 }
 0x13e   : > { %v1624_v54 = vadd.f32 %v2559_v36, %v1612_v22 }
 0x13f   : > { %v1679_v5 = vpack.c.bf16 %v1671_v11, %v1671_v11 }
 0x140   : > { %vm1632_vm4 = vcmp.ge.f32.partialorder %v1624_v54, 0.0  ;;  %v1640_v35 = vmul.f32 0.01, %v1624_v54 }
 0x141   : > { %1687 = vst.msk [vmem:[%s2581_s20 + $0x18] sm:$0xf] %vm2782_vm15, %v1679_v5 }
 0x142   : > { %v1648_v18 = vsel %vm1632_vm4, %v1624_v54, %v1640_v35 }
 0x143   : > { %v1660_v33 = vmul.f32 %v2565_v8, %v1648_v18 }
 0x145   : > { %v1672_v48 = vadd.f32 %v2570_v10, %v1660_v33 }
 0x147   : > { %v1680_v50 = vpack.c.bf16 %v1672_v48, %v1672_v48 }
 0x149   : > { %1688 = vst.msk [vmem:[%s2581_s20 + $0x1c] sm:$0xf] %vm2783_vm0, %v1680_v50 }
 0x14a PF: > { %s17_s24 = sadd.s32 1, %s1909_s24  }
 0x14b   : > { %p14_p5 = scmp.ge.s32.totalorder %s17_s24, 10  }
 0x14d   :  { %16 = sbr.rel (!%p14_p5) target bundleno = 1 (0x1), region = 92 }

// kernel: resblock_forward.4
= control target key start
LH: loop header
LB: loop body
LE: loop exit
PB: predicated region body
PF: predicated region fallthrough
CT: control target
= control target key end

     0   :  { %s2236_s24 = smov 0   ;;  %s2913_s0 = inlined_call_operand.vmem [shape: bf16[512,4], index: 0, kind: input, shape index: {}]   ;;  %s2914_s1 = inlined_call_operand.vmem [shape: bf16[8,32,4], index: 1, kind: input, shape index: {}]   ;;  %s2915_s2 = inlined_call_operand.vmem [shape: bf16[8,32,4], index: 2, kind: input, shape index: {}]   ;;  %s2916_s3 = inlined_call_operand.vmem [shape: bf16[9,4,8], index: 3, kind: input, shape index: {}]   ;;  %s2917_s4 = inlined_call_operand.vmem [shape: f32[1,8], index: 4, kind: input, shape index: {}]   ;;  %s2918_s5 = inlined_call_operand.vmem [shape: f32[1,8], index: 5, kind: input, shape index: {}]   ;;  %s2919_s6 = inlined_call_operand.vmem [shape: f32[1,8], index: 6, kind: input, shape index: {}]   ;;  %s2920_s7 = inlined_call_operand.vmem [shape: bf16[512,8], index: 7, kind: output, shape index: {}]  }
   0x1 LB: > { %s2049_s25 = sadd.s32 4294967295, %s2192_s24   ;;  %p2053_p0 = scmp.ge.s32.totalorder %s2192_s24, 1  ;;  %s2192_s24 = sphi %s2236_s24, %s17_s24  }
   0x2   : > { %p258_p1 = scmp.lt.s32.totalorder %s2192_s24, 9 }
   0x4   : > { %p259_p2 = pnand %p2053_p0, %p258_p1 }
   0x5   : > { %s2054_s28 = sshll.u32 (!%p259_p2), %s2049_s25, 3  ;;  %p306_p4 = scmp.lt.s32.totalorder (!%p259_p2), %s2049_s25, 7 }
   0x6   : > { %262 = sbr.rel (%p259_p2) target bundleno = 352 (0x160), region = 48  ;;  %p301_p3 = scmp.lt.s32.totalorder (!%p259_p2), %s2054_s28, 63 }
   0xb   : > { %v2062_v0 = vld [vmem:[%s2916_s3 + $0x2] sm:$0x3]  ;;  %vm758_vm0 = vcmask 1041408   ;;  %v358_v1 = vlaneseq  ;;  %v2087_v3 = vld [vmem:[%s2916_s3 + $0x4] sm:$0x3]  ;;  %vm2194_vm1 = vmmov 1  }
   0xc   : > { %v760_v2 = vsel %vm758_vm0, %v2062_v0, 0  ;;  %v1165_v4 = vsel %vm758_vm0, %v2087_v3, 0  ;;  %v2092_v5 = vld [vmem:[%s2916_s3 + $0x6] sm:$0x3]  ;;  %v722_v6 = vld [vmem:[%s2916_s3] sm:$0x3]  ;;  %vm553_vm2 = vmpackc.low %vm2194_vm1, %vm2194_vm1 }
   0xd   : > { %2170 = vmatpush.bf16.msra.mxu1 %v760_v2  ;;  %2171 = vmatpush.bf16.msra.mxu2 %v760_v2  ;;  %v2258_v7 = vshrl.u32 %v358_v1, 7  ;;  %s3051_s28 = smov (!%p301_p3, %s2054_s28), 63  ;;  %v1304_v8 = vsel %vm758_vm0, %v2092_v5, 0  ;;  %v872_v9 = vsel %vm758_vm0, %v722_v6, 0  ;;  %v2097_v10 = vld [vmem:[%s2916_s3 + $0x8] sm:$0x3] }
   0xe   : > { %2172 = vmatpush.bf16.msra.mxu3 %v760_v2  ;;  %769 = vmatpush.bf16.msra.mxu0 %v760_v2  ;;  %s3053_s25 = smov (!%p306_p4, %s2049_s25), 7  ;;  %v1378_v11 = vsel %vm758_vm0, %v2097_v10, 0  ;;  %v2195_v14 = vmov 0   ;;  %s2055_s14 = sshll.u32 %s3051_s28, 2  ;;  %vm2921_vm3 = vcmask 27648   ;;  %vm2922_vm4 = vcmask 31744  }
   0xf   : > { %v360_v12 = vadd.s32 8, %v2258_v7  ;;  %v362_v13 = vadd.s32 24, %v2258_v7  ;;  %v2274_v15 = vsel %vm553_vm2, 65537, %v2195_v14  ;;  %s2282_s17 = scalar_lea.vmem %s2913_s0, %s2055_s14  ;;  %s2156_s18 = sshll.u32 %s3053_s25, 4  ;;  %vm944_vm5 = vsmask.f32 256 }
  0x10   : > { %v581_v16 = vshll.u32 %v2274_v15, 16  ;;  %v585_v17 = vshrl.u32 %v2274_v15, 16  ;;  %v334_v18 = vld [vmem:[%s2282_s17] sm:$0xf]  ;;  %v335_v19 = vld [vmem:[%s2282_s17 + $0x4] sm:$0xf]  ;;  %s310_s21 = scalar_lea.vmem %s2914_s1, %s2156_s18  ;;  %s2304_s25 = scalar_lea.vmem %s2915_s2, %s2156_s18  ;;  %v2309_v33 = vunpack.c.l.b16 %v2195_v14  ;;  %v2312_v34 = vunpack.c.h.b16 %v2195_v14 }
  0x11   : > { %1174 = vmatpush.bf16.msrb.mxu2 %v1165_v4  ;;  %881 = vmatpush.bf16.msrb.mxu1 %v872_v9  ;;  %v336_v20 = vld [vmem:[%s2282_s17 + $0x8] sm:$0xf]  ;;  %342 = vst.msk [vmem:[#allocation2 + $0x10] sm:$0xf] %vm2921_vm3, %v334_v18  ;;  %v337_v21 = vld [vmem:[%s2282_s17 + $0xc] sm:$0xf] }
  0x12   : > { %1313 = vmatpush.bf16.msrb.mxu3 %v1304_v8  ;;  %1387 = vmatpush.bf16.msrb.mxu0 %v1378_v11  ;;  %v378_v22 = vand.u32 15, %v360_v12  ;;  %v392_v23 = vand.u32 15, %v362_v13  ;;  %343 = vst.msk [vmem:[#allocation2 + $0x14] sm:$0xf] %vm2921_vm3, %v335_v19  ;;  %v338_v24 = vld [vmem:[%s2282_s17 + $0x10] sm:$0xf] }
  0x13   : > { %344 = vst.msk [vmem:[#allocation2 + $0x18] sm:$0xf] %vm2921_vm3, %v336_v20  ;;  %v339_v25 = vld [vmem:[%s2282_s17 + $0x14] sm:$0xf]  ;;  %v326_v26 = vld [vmem:[%s310_s21 + $0x4] sm:$0xf] }
  0x14   : > { %345 = vst.msk [vmem:[#allocation2 + $0x1c] sm:$0xf] %vm2921_vm3, %v337_v21  ;;  %v327_v27 = vld [vmem:[%s310_s21 + $0x8] sm:$0xf]  ;;  %v496_v28 = vadd.s32 1, %v378_v22  ;;  %v498_v29 = vadd.s32 1, %v392_v23 }
  0x15   : > { %346 = vst.msk [vmem:[#allocation2 + $0x20] sm:$0xf] %vm2921_vm3, %v338_v24  ;;  %v950_v30 = vrot.slane %v585_v17, 7  ;;  %v361_v31 = vadd.s32 16, %v2258_v7  ;;  %v328_v32 = vld [vmem:[%s310_s21 + $0xc] sm:$0xf]  ;;  %s2850_s21 = scalar_lea.vmem %s2920_s7, %s2055_s14 }
  0x16   : > { %347 = vst.msk [vmem:[#allocation2 + $0x24] sm:$0xf] %vm2921_vm3, %v339_v25  ;;  %vm512_vm6 = vcmp.lt.s32.totalorder %v496_v28, 16  ;;  %vm514_vm7 = vcmp.lt.s32.totalorder %v498_v29, 16  ;;  %v2314_v35 = vrot.slane %v585_v17, 4  ;;  %v371_v53 = vand.u32 15, %v2258_v7 }
  0x17   : > { %v2316_v36 = vor.u32 %v950_v30, %v581_v16  ;;  %331 = vst.msk [vmem:[#allocation2 + $0x4] sm:$0xf] %vm2921_vm3, %v326_v26  ;;  %vm929_vm8 = vmpackc.low %vm512_vm6, %vm512_vm6  ;;  %vm945_vm9 = vsmask.f32 4368  ;;  %v2123_v37 = vld [vmem:[%s2916_s3 + $0xc] sm:$0x3] }
  0x18   : > { %332 = vst.msk [vmem:[#allocation2 + $0x8] sm:$0xf] %vm2921_vm3, %v327_v27  ;;  %vm931_vm10 = vmpackc.low %vm514_vm7, %vm514_vm7  ;;  %v937_v39 = vsel %vm929_vm8, 65537, %v2195_v14  ;;  %v2324_v40 = vrot.slane %v950_v30, 4  ;;  %v1648_v46 = vsel %vm758_vm0, %v2123_v37, 0  ;;  %v385_v54 = vand.u32 15, %v361_v31 }
  0x19   : > { %v2159_v38 = vld [vmem:[#allocation2 + $0x10] sm:$0xff]  ;;  %v1018_v41 = vunpack.c.l.b16 %v2316_v36  ;;  %v1019_v42 = vunpack.c.h.b16 %v2316_v36  ;;  %333 = vst.msk [vmem:[#allocation2 + $0xc] sm:$0xf] %vm2921_vm3, %v328_v32  ;;  %v939_v43 = vsel %vm931_vm10, 65537, %v2195_v14  ;;  %v956_v44 = vshrl.u32 %v937_v39, 16  ;;  %vm2348_vm13 = vmor %vm944_vm5, %vm945_vm9 }
  0x1a   : > { %v959_v45 = vshll.u32 %v937_v39, 16  ;;  %2080 = vmatmul.msk.bf16.vlgmr.msra.gmra.mxu1 %vm2922_vm4, %v2159_v38  ;;  %v974_v48 = vshrl.u32 %v939_v43, 16  ;;  %v977_v49 = vshll.u32 %v939_v43, 16  ;;  %v2343_v55 = vrot.slane %v581_v16, 5  ;;  %v905_v17 = vld [vmem:[#allocation2 + $0x10] sm:$0xf] }
  0x1b   : > { %v2160_v47 = vld [vmem:[#allocation2 + $0x18] sm:$0xff]  ;;  %vm2333_vm11 = vcmp.ne.s32.totalorder %v1018_v41, %v2309_v33  ;;  %vm2338_vm12 = vcmp.ne.s32.totalorder %v1019_v42, %v2312_v34  ;;  %v958_v52 = vrot.slane %v956_v44, 7  ;;  %v463_v61 = vadd.s32 4294967295, %v371_v53  ;;  %v906_v19 = vld [vmem:[#allocation2 + $0x14] sm:$0xf] }
  0x1c   : > { %2081 = vmatmul.msk.bf16.vlgmr.msra.gmra.mxu2 %vm2922_vm4, %v2160_v47  ;;  %v2352_v58 = vrot.slane %v974_v48, 7  ;;  %v465_v62 = vadd.s32 4294967295, %v385_v54  ;;  %vm2360_vm14 = vmpackc.low %vm2338_vm12, %vm2333_vm11  ;;  %vm568_vm15 = vsmask.f32 3328  ;;  %vm569_vm1 = vsmask.f32 7440 }
  0x1d   : > { %v2161_v56 = vld [vmem:[#allocation2 + $0x20] sm:$0xff]  ;;  %v961_v59 = vor.u32 %v959_v45, %v958_v52  ;;  %v963_v60 = vrot.slane %v958_v52, 4  ;;  %1657 = vmatpush.bf16.msra.mxu2 %v1648_v46  ;;  %v588_v1 = vor.u32 %v2314_v35, %v2343_v55  ;;  %vm471_vm2 = vcmp.ge.s32.totalorder %v463_v61, 0  ;;  %v2128_v32 = vld [vmem:[%s2916_s3 + $0xe] sm:$0x3] }
  0x1e   : > { %2082 = vmatmul.msk.bf16.vlgmr.msra.gmra.mxu3 %vm2922_vm4, %v2161_v56  ;;  %v979_v63 = vor.u32 %v977_v49, %v2352_v58  ;;  %vm473_vm5 = vcmp.ge.s32.totalorder %v465_v62, 0  ;;  %vm552_vm6 = vmpackc.low %vm471_vm2, %vm471_vm2  ;;  %v2950_v22 = vmov 0  ;;  %v2952_v27 = vmov 0  ;;  %v527_v53 = vld [vmem:[#allocation2 + $0x4] sm:$0x8] }
  0x1f   : > { %v903_v2 = vld [vmem:[#allocation2 + $0x8] sm:$0xf]  ;;  %v962_v3 = vsel %vm2348_vm13, %v2324_v40, %v961_v59  ;;  %v971_v4 = vsel %vm2348_vm13, %v963_v60, %v2316_v36  ;;  %vm554_vm10 = vmpackc.low %vm473_vm5, %vm473_vm5  ;;  %v560_v21 = vsel %vm552_vm6, 65537, %v2195_v14  ;;  %vm2923_vm5 = vsmask.f32 7424 }
  0x20   : > { %v2158_v5 = vld [vmem:[#allocation2 + $0x8] sm:$0xff]  ;;  %v980_v6 = vsel %vm2348_vm13, %v2324_v40, %v979_v63  ;;  %v1025_v8 = vunpack.c.l.b16 %v962_v3  ;;  %v1026_v9 = vunpack.c.h.b16 %v962_v3  ;;  %v1032_v10 = vunpack.c.l.b16 %v971_v4 }
  0x21   : > { %v904_v11 = vld [vmem:[#allocation2 + $0xc] sm:$0xf]  ;;  %v1033_v12 = vunpack.c.h.b16 %v971_v4  ;;  %v1039_v13 = vunpack.c.l.b16 %v980_v6  ;;  %v1040_v15 = vunpack.c.h.b16 %v980_v6  ;;  %v1081_v16 = vsel %vm2360_vm14, %v903_v2, 0  ;;  %2079 = vmatmul.msk.bf16.vlgmr.msra.gmra.mxu0 %vm2922_vm4, %v2158_v5 }
  0x22   : > { %vm1029_vm7 = vcmp.ne.s32.totalorder %v1025_v8, %v2309_v33  ;;  %vm1030_vm8 = vcmp.ne.s32.totalorder %v1026_v9, %v2312_v34  ;;  %vm1036_vm9 = vcmp.ne.s32.totalorder %v1032_v10, %v2309_v33  ;;  %v1101_v18 = vunpack.c.l.b16 %v1081_v16  ;;  %v1204_v56 = vld [vmem:[#allocation2 + $0xc] sm:$0x8] }
  0x23   : > { %vm2383_vm11 = vmpackc.low %vm1030_vm8, %vm1029_vm7  ;;  %vm1037_vm12 = vcmp.ne.s32.totalorder %v1033_v12, %v2312_v34  ;;  %vm1043_vm2 = vcmp.ne.s32.totalorder %v1039_v13, %v2309_v33  ;;  %vm1044_vm3 = vcmp.ne.s32.totalorder %v1040_v15, %v2312_v34  ;;  %v562_v24 = vsel %vm554_vm10, 65537, %v2195_v14  ;;  %v529_v10 = vld [vmem:[#allocation2 + $0xc] sm:$0xf]  ;;  %v2118_v13 = vld [vmem:[%s2916_s3 + $0xa] sm:$0x3] }
  0x24   : > { %vm2391_vm4 = vmpackc.low %vm1037_vm12, %vm1036_vm9  ;;  %v1082_v23 = vsel %vm2383_vm11, %v904_v11, 0  ;;  %v572_v25 = vshll.u32 %v560_v21, 16  ;;  %v575_v26 = vshrl.u32 %v560_v21, 16  ;;  %v2404_v30 = vrot.slane %v588_v1, 4  ;;  %v528_v15 = vld [vmem:[#allocation2 + $0x8] sm:$0xf] }
  0x25   : > { %v2951_v22 = vsel %vm2391_vm4, 4294967295, %v2950_v22  ;;  %vm2398_vm7 = vmpackc.low %vm1044_vm3, %vm1043_vm2  ;;  %v1083_v28 = vsel %vm2391_vm4, %v905_v17, 0  ;;  %v1102_v29 = vunpack.c.l.b16 %v1082_v23  ;;  %v591_v31 = vshll.u32 %v562_v24, 16  ;;  %v1206_v17 = vld [vmem:[#allocation2 + $0x14] sm:$0xf] }
  0x26   : > { %v2953_v27 = vsel %vm2398_vm7, 4294967295, %v2952_v27  ;;  %v1084_v35 = vsel %vm2398_vm7, %v906_v19, 0  ;;  %v1103_v37 = vunpack.c.l.b16 %v1083_v28  ;;  %vm2413_vm3 = vmor %vm568_vm15, %vm569_vm1  ;;  %v574_v39 = vrot.slane %v572_v25, 5  ;;  %v2149_v25 = vld [vmem:[%s2916_s3 + $0x10] sm:$0x3] }
  0x27   : > { %v577_v41 = vrot.slane %v575_v26, 4  ;;  %v1104_v42 = vunpack.c.l.b16 %v1084_v35  ;;  %v1110_v43 = vpack.c.b16 %v1102_v29, %v1101_v18  ;;  %v593_v44 = vrot.slane %v591_v31, 5  ;;  %v2162_v18 = vld [vmem:[#allocation2 + $0x10] sm:$0xff] }
  0x28   : > { %v595_v45 = vshrl.u32 %v562_v24, 16  ;;  %v650_v47 = vunpack.c.l.b16 %v574_v39  ;;  %v651_v48 = vunpack.c.h.b16 %v574_v39  ;;  %v1722_v49 = vsel %vm758_vm0, %v2128_v32, 0  ;;  %v1205_v24 = vld [vmem:[#allocation2 + $0x10] sm:$0xf] }
  0x29   : > { %v578_v46 = vor.u32 %v577_v41, %v574_v39  ;;  %v2418_v50 = vpack.c.b16 %v1104_v42, %v1103_v37  ;;  %v1117_v51 = vshrl.u32 %v1110_v43, 16  ;;  %v1119_v52 = vshll.u32 %v1110_v43, 16  ;;  %1731 = vmatpush.bf16.msra.mxu3 %v1722_v49  ;;  %v530_v42 = vld [vmem:[#allocation2 + $0x10] sm:$0xf] }
  0x2a   : > { %v594_v54 = vsel %vm2413_vm3, %v2404_v30, %v593_v44  ;;  %v597_v60 = vrot.slane %v595_v45, 4  ;;  %vm654_vm15 = vcmp.ne.s32.totalorder %v650_v47, %v2309_v33  ;;  %vm655_vm1 = vcmp.ne.s32.totalorder %v651_v48, %v2312_v34  ;;  %v1207_v45 = vld [vmem:[#allocation2 + $0x18] sm:$0xf] }
  0x2b   : > { %v579_v59 = vrot.slane %v578_v46, 4  ;;  %v1121_v61 = vrot.slane %v1119_v52, 1  ;;  %v1124_v62 = vshll.u32 %v2418_v50, 16  ;;  %vm2426_vm6 = vmpackc.low %vm655_vm1, %vm654_vm15  ;;  %v664_v1 = vunpack.c.l.b16 %v594_v54 }
  0x2c   : > { %v665_v2 = vunpack.c.h.b16 %v594_v54  ;;  %v598_v4 = vor.u32 %v597_v60, %v593_v44  ;;  %v713_v5 = vsel %vm2426_vm6, %v527_v53, 0  ;;  %v1213_v6 = vsel %vm2426_vm6, %v1204_v56, 0 }
  0x2d   : > { %v584_v3 = vsel %vm2413_vm3, %v579_v59, %v2343_v55  ;;  %v1122_v8 = vor.u32 %v1121_v61, %v1117_v51  ;;  %v2437_v9 = vrot.slane %v1124_v62, 1  ;;  %vm668_vm8 = vcmp.ne.s32.totalorder %v664_v1, %v2309_v33 }
  0x2e   : > { %v657_v11 = vunpack.c.l.b16 %v584_v3  ;;  %v658_v12 = vunpack.c.h.b16 %v584_v3  ;;  %v599_v16 = vrot.slane %v598_v4, 4  ;;  %vm669_vm9 = vcmp.ne.s32.totalorder %v665_v2, %v2312_v34 }
  0x2f   : > { %v1127_v19 = vsel %vm2923_vm5, %v1122_v8, %v2437_v9  ;;  %vm2448_vm2 = vmpackc.low %vm669_vm9, %vm668_vm8  ;;  %v800_v23 = vunpack.c.l.b16 %v713_v5  ;;  %vm2960_vm15 = vcmask 31744   ;;  %v1233_v31 = vunpack.c.l.b16 %v1213_v6 }
  0x30   : > { %vm661_vm10 = vcmp.ne.s32.totalorder %v657_v11, %v2309_v33  ;;  %vm662_vm12 = vcmp.ne.s32.totalorder %v658_v12, %v2312_v34  ;;  %2088 = vmatmul.msk.bf16.vlgmr.msrb.gmra.mxu2 %vm2960_vm15, %v1127_v19  ;;  %v604_v26 = vsel %vm2413_vm3, %v599_v16, %v2343_v55  ;;  %v715_v29 = vsel %vm2448_vm2, %v529_v10, 0  ;;  %vm2963_vm8 = vmmov %vm2960_vm15 }
  0x31   : > { %vm2459_vm1 = vmpackc.low %vm662_vm12, %vm661_vm10  ;;  %v1509_v32 = vsel %vm758_vm0, %v2118_v13, 0  ;;  %v671_v35 = vunpack.c.l.b16 %v604_v26  ;;  %v672_v37 = vunpack.c.h.b16 %v604_v26  ;;  %v1215_v41 = vsel %vm2448_vm2, %v1206_v17, 0  ;;  %2114 = vmatmul.msk.bf16.vlgmr.msrb.gmra.mxu0 %vm2963_vm8, %v2162_v18  ;;  %v340_v18 = vld [vmem:[%s2282_s17 + $0x18] sm:$0xf] }
  0x32   : > { %v714_v39 = vsel %vm2459_vm1, %v528_v15, 0  ;;  %1518 = vmatpush.bf16.msra.mxu1 %v1509_v32  ;;  %v802_v44 = vunpack.c.l.b16 %v715_v29  ;;  %v1214_v46 = vsel %vm2459_vm1, %v1205_v24, 0  ;;  %v1853_v47 = vsel %vm758_vm0, %v2149_v25, 0 }
  0x33   : > { %v801_v43 = vunpack.c.l.b16 %v714_v39  ;;  %vm675_vm9 = vcmp.ne.s32.totalorder %v671_v35, %v2309_v33  ;;  %vm676_vm10 = vcmp.ne.s32.totalorder %v672_v37, %v2312_v34  ;;  %v1234_v48 = vunpack.c.l.b16 %v1214_v46  ;;  %1862 = vmatpush.bf16.msra.mxu0 %v1853_v47 }
  0x34   : > { %v364_v49 = vadd.s32 40, %v2258_v7  ;;  %vm2477_vm12 = vmpackc.low %vm676_vm10, %vm675_vm9  ;;  %v1235_v53 = vunpack.c.l.b16 %v1215_v41  ;;  %v981_v54 = vrot.slane %v2352_v58, 4  ;;  %v363_v56 = vadd.s32 32, %v2258_v7  ;;  %v907_v41 = vld [vmem:[#allocation2 + $0x18] sm:$0xf] }
  0x35   : > { %v809_v52 = vpack.c.b16 %v801_v43, %v800_v23  ;;  %v716_v59 = vsel %vm2477_vm12, %v530_v42, 0  ;;  %vm2926_vm0 = vsmask.f32 4352  ;;  %v1216_v60 = vsel %vm2477_vm12, %v1207_v45, 0 }
  0x36   : > { %v1242_v61 = vpack.c.b16 %v1234_v48, %v1233_v31  ;;  %v406_v62 = vand.u32 15, %v364_v49  ;;  %v803_v1 = vunpack.c.l.b16 %v716_v59  ;;  %v1236_v4 = vunpack.c.l.b16 %v1216_v60  ;;  %v2163_v49 = vld [vmem:[#allocation2 + $0x18] sm:$0xff] }
  0x37   : > { %v816_v2 = vshrl.u32 %v809_v52, 16  ;;  %v819_v3 = vshll.u32 %v809_v52, 16  ;;  %v989_v58 = vsel %vm2348_vm13, %v981_v54, %v2316_v36  ;;  %vm2966_vm9 = vcmask 27648  }
  0x38   : > { %v1248_v5 = vshrl.u32 %v1242_v61, 16  ;;  %v1251_v6 = vshll.u32 %v1242_v61, 16  ;;  %v500_v8 = vadd.s32 1, %v406_v62  ;;  %v810_v10 = vpack.c.b16 %v803_v1, %v802_v44  ;;  %348 = vst.msk [vmem:[#allocation2 + $0x28] sm:$0xf] %vm2966_vm9, %v340_v18 }
  0x39   : > { %v818_v11 = vrot.slane %v816_v2, 3  ;;  %v821_v12 = vrot.slane %v819_v3, 4  ;;  %v1243_v13 = vpack.c.b16 %v1236_v4, %v1235_v53  ;;  %v1046_v17 = vunpack.c.l.b16 %v989_v58 }
  0x3a   : > { %v1250_v15 = vrot.slane %v1248_v5, 3  ;;  %v1253_v16 = vrot.slane %v1251_v6, 4  ;;  %vm516_vm15 = vcmp.lt.s32.totalorder %v500_v8, 16  ;;  %v824_v23 = vshrl.u32 %v810_v10, 16 }
  0x3b   : > { %v822_v19 = vor.u32 %v821_v12, %v818_v11  ;;  %v827_v24 = vshll.u32 %v810_v10, 16  ;;  %v1256_v25 = vshrl.u32 %v1243_v13, 16  ;;  %vm933_vm8 = vmpackc.low %vm516_vm15, %vm516_vm15  ;;  %v1259_v29 = vshll.u32 %v1243_v13, 16  ;;  %v908_v10 = vld [vmem:[#allocation2 + $0x1c] sm:$0xf] }
  0x3c   : > { %v1254_v26 = vor.u32 %v1253_v16, %v1250_v15  ;;  %v941_v31 = vsel %vm933_vm8, 65537, %v2195_v14  ;;  %v1047_v32 = vunpack.c.h.b16 %v989_v58  ;;  %v826_v35 = vrot.slane %v824_v23, 3 }
  0x3d   : > { %v829_v37 = vrot.slane %v827_v24, 4  ;;  %v1258_v39 = vrot.slane %v1256_v25, 3  ;;  %v992_v42 = vshrl.u32 %v941_v31, 16  ;;  %v1261_v43 = vrot.slane %v1259_v29, 4  ;;  %v909_v25 = vld [vmem:[#allocation2 + $0x20] sm:$0xf] }
  0x3e   : > { %v995_v44 = vshll.u32 %v941_v31, 16  ;;  %vm1050_vm10 = vcmp.ne.s32.totalorder %v1046_v17, %v2309_v33  ;;  %vm1051_vm5 = vcmp.ne.s32.totalorder %v1047_v32, %v2312_v34  ;;  %v2967_v47 = vmov 0 }
  0x3f   : > { %v2495_v45 = vor.u32 %v829_v37, %v826_v35  ;;  %v994_v46 = vrot.slane %v992_v42, 7  ;;  %vm2497_vm15 = vmpackc.low %vm1051_vm5, %vm1050_vm10  ;;  %v399_v48 = vand.u32 15, %v363_v56  ;;  %v2501_v52 = vor.u32 %v1261_v43, %v1258_v39 }
  0x40   : > { %v2968_v47 = vsel %vm2497_vm15, 4294967295, %v2967_v47  ;;  %v1085_v53 = vsel %vm2497_vm15, %v907_v41, 0  ;;  %v366_v54 = vadd.s32 56, %v2258_v7  ;;  %v365_v59 = vadd.s32 48, %v2258_v7 }
  0x41   : > { %v831_v60 = vsel %vm2926_vm0, %v822_v19, %v2495_v45  ;;  %v997_v61 = vor.u32 %v995_v44, %v994_v46  ;;  %v467_v62 = vadd.s32 4294967295, %v399_v48  ;;  %vm2969_vm5 = vcmask 31744   ;;  %v531_v48 = vld [vmem:[#allocation2 + $0x14] sm:$0xf] }
  0x42   : > { %2083 = vmatmul.msk.bf16.vlgmr.msrb.gmra.mxu1 %vm2969_vm5, %v831_v60  ;;  %v1263_v56 = vsel %vm2926_vm0, %v1254_v26, %v2501_v52  ;;  %v420_v1 = vand.u32 15, %v366_v54  ;;  %v999_v2 = vrot.slane %v994_v46, 4  ;;  %v413_v3 = vand.u32 15, %v365_v59  ;;  %vm2970_vm8 = vmmov %vm2969_vm5  ;;  %v1208_v60 = vld [vmem:[#allocation2 + $0x1c] sm:$0xf] }
  0x43   : > { %2093 = vmatmul.msk.bf16.vlgmr.msrb.gmra.mxu3 %vm2970_vm8, %v1263_v56  ;;  %v998_v4 = vsel %vm2348_vm13, %v2324_v40, %v997_v61  ;;  %v1105_v7 = vunpack.c.l.b16 %v1085_v53  ;;  %vm475_vm9 = vcmp.ge.s32.totalorder %v467_v62, 0  ;;  %vm2971_vm10 = vmmov %vm2969_vm5  ;;  %v2972_v18 = vmov 0 }
  0x44   : > { %2115 = vmatmul.msk.bf16.gmra.mxu0 %vm2971_vm10, %v2163_v49  ;;  %v1053_v5 = vunpack.c.l.b16 %v998_v4  ;;  %v1054_v6 = vunpack.c.h.b16 %v998_v4  ;;  %vm556_vm15 = vmpackc.low %vm475_vm9, %vm475_vm9  ;;  %v502_v8 = vadd.s32 1, %v420_v1  ;;  %v1007_v58 = vsel %vm2348_vm13, %v999_v2, %v2316_v36 }
  0x45   : > { %v564_v11 = vsel %vm556_vm15, 65537, %v2195_v14  ;;  %v1060_v12 = vunpack.c.l.b16 %v1007_v58  ;;  %v1061_v13 = vunpack.c.h.b16 %v1007_v58  ;;  %v469_v15 = vadd.s32 4294967295, %v413_v3  ;;  %v532_v3 = vld [vmem:[#allocation2 + $0x18] sm:$0xf] }
  0x46   : > { %vm1057_vm5 = vcmp.ne.s32.totalorder %v1053_v5, %v2309_v33  ;;  %vm1058_vm8 = vcmp.ne.s32.totalorder %v1054_v6, %v2312_v34  ;;  %v611_v16 = vshll.u32 %v564_v11, 16  ;;  %v615_v17 = vshrl.u32 %v564_v11, 16  ;;  %v2164_v6 = vld [vmem:[#allocation2 + $0x20] sm:$0xff] }
  0x47   : > { %vm2523_vm10 = vmpackc.low %vm1058_vm8, %vm1057_vm5  ;;  %vm518_vm9 = vcmp.lt.s32.totalorder %v502_v8, 16  ;;  %vm1064_vm0 = vcmp.ne.s32.totalorder %v1060_v12, %v2309_v33  ;;  %vm1065_vm7 = vcmp.ne.s32.totalorder %v1061_v13, %v2312_v34  ;;  %vm477_vm15 = vcmp.ge.s32.totalorder %v469_v15, 0  ;;  %v1209_v8 = vld [vmem:[#allocation2 + $0x20] sm:$0xf] }
  0x48   : > { %v2973_v18 = vsel %vm2523_vm10, 4294967295, %v2972_v18  ;;  %v1086_v36 = vsel %vm2523_vm10, %v908_v10, 0  ;;  %v1128_v19 = vshrl.u32 %v2418_v50, 16  ;;  %v613_v23 = vrot.slane %v611_v16, 5  ;;  %vm935_vm4 = vmpackc.low %vm518_vm9, %vm518_vm9  ;;  %v341_v50 = vld [vmem:[%s2282_s17 + $0x1c] sm:$0xf] }
  0x49   : > { %v617_v24 = vrot.slane %v615_v17, 4  ;;  %v1106_v26 = vunpack.c.l.b16 %v1086_v36  ;;  %v943_v29 = vsel %vm935_vm4, 65537, %v2195_v14  ;;  %vm2533_vm5 = vmpackc.low %vm1065_vm7, %vm1064_vm0  ;;  %v2974_v31 = vmov 0 }
  0x4a   : > { %v2975_v31 = vsel %vm2533_vm5, 4294967295, %v2974_v31  ;;  %v614_v32 = vsel %vm2413_vm3, %v2404_v30, %v613_v23  ;;  %v1010_v37 = vshrl.u32 %v943_v29, 16  ;;  %v1013_v39 = vshll.u32 %v943_v29, 16  ;;  %vm558_vm8 = vmpackc.low %vm477_vm15, %vm477_vm15 }
  0x4b   : > { %v618_v35 = vor.u32 %v617_v24, %v613_v23  ;;  %v1112_v41 = vpack.c.b16 %v1106_v26, %v1105_v7  ;;  %v678_v42 = vunpack.c.l.b16 %v614_v32  ;;  %v679_v43 = vunpack.c.h.b16 %v614_v32  ;;  %v910_v24 = vld [vmem:[#allocation2 + $0x24] sm:$0xf] }
  0x4c   : > { %v1087_v44 = vsel %vm2533_vm5, %v909_v25, 0  ;;  %vm2976_vm4 = vcmask 27648   ;;  %v1130_v46 = vor.u32 %v1128_v19, %v2437_v9  ;;  %v2545_v53 = vrot.slane %v1010_v37, 7 }
  0x4d   : > { %349 = vst.msk [vmem:[#allocation2 + $0x2c] sm:$0xf] %vm2976_vm4, %v341_v50  ;;  %v619_v49 = vrot.slane %v618_v35, 4  ;;  %v566_v54 = vsel %vm558_vm8, 65537, %v2195_v14  ;;  %v1132_v59 = vshll.u32 %v1112_v41, 16  ;;  %vm682_vm7 = vcmp.ne.s32.totalorder %v678_v42, %v2309_v33 }
  0x4e   : > { %vm683_vm0 = vcmp.ne.s32.totalorder %v679_v43, %v2312_v34  ;;  %v1107_v61 = vunpack.c.l.b16 %v1087_v44  ;;  %v2977_v56 = vmov 0  ;;  %v1015_v9 = vor.u32 %v1013_v39, %v2545_v53 }
  0x4f   : > { %v624_v62 = vsel %vm2413_vm3, %v619_v49, %v2343_v55  ;;  %vm2553_vm9 = vmpackc.low %vm683_vm0, %vm682_vm7  ;;  %v631_v1 = vshll.u32 %v566_v54, 16  ;;  %v635_v2 = vshrl.u32 %v566_v54, 16  ;;  %v1134_v14 = vrot.slane %v1132_v59, 1 }
  0x50   : > { %v2978_v56 = vsel %vm2553_vm9, 4294967295, %v2977_v56  ;;  %v685_v4 = vunpack.c.l.b16 %v624_v62  ;;  %v686_v7 = vunpack.c.h.b16 %v624_v62  ;;  %v717_v5 = vsel %vm2553_vm9, %v531_v48, 0  ;;  %v533_v48 = vld [vmem:[#allocation2 + $0x1c] sm:$0xf] }
  0x51   : > { %v1217_v58 = vsel %vm2553_vm9, %v1208_v60, 0  ;;  %v1016_v10 = vsel %vm2348_vm13, %v2324_v40, %v1015_v9  ;;  %v1136_v11 = vshrl.u32 %v1112_v41, 16  ;;  %v633_v12 = vrot.slane %v631_v1, 5 }
  0x52   : > { %vm2979_vm15 = vsmask.f32 7424  ;;  %vm689_vm8 = vcmp.ne.s32.totalorder %v685_v4, %v2309_v33  ;;  %vm690_vm4 = vcmp.ne.s32.totalorder %v686_v7, %v2312_v34  ;;  %v804_v15 = vunpack.c.l.b16 %v717_v5 }
  0x53   : > { %v1135_v13 = vsel %vm2979_vm15, %v1130_v46, %v1134_v14  ;;  %vm2980_vm7 = vcmask 31744   ;;  %vm2569_vm0 = vmpackc.low %vm690_vm4, %vm689_vm8  ;;  %v2981_v16 = vmov 0  ;;  %v1237_v17 = vunpack.c.l.b16 %v1217_v58 }
  0x54   : > { %2089 = vmatmul.msk.bf16.gmra.mxu2 %vm2980_vm7, %v1135_v13  ;;  %v2982_v16 = vsel %vm2569_vm0, 4294967295, %v2981_v16  ;;  %v1067_v36 = vunpack.c.l.b16 %v1016_v10  ;;  %v1068_v19 = vunpack.c.h.b16 %v1016_v10  ;;  %v634_v40 = vsel %vm2413_vm3, %v2404_v30, %v633_v12  ;;  %vm2983_vm13 = vmmov %vm2980_vm7 }
  0x55   : > { %v718_v57 = vsel %vm2569_vm0, %v532_v3, 0  ;;  %v1218_v23 = vsel %vm2569_vm0, %v1209_v8, 0  ;;  %v637_v25 = vrot.slane %v635_v2, 4  ;;  %v692_v26 = vunpack.c.l.b16 %v634_v40  ;;  %2116 = vmatmul.msk.bf16.gmra.mxu0 %vm2983_vm13, %v2164_v6  ;;  %v1210_v2 = vld [vmem:[#allocation2 + $0x24] sm:$0xf] }
  0x56   : > { %v805_v29 = vunpack.c.l.b16 %v718_v57  ;;  %v1238_v32 = vunpack.c.l.b16 %v1218_v23  ;;  %vm1071_vm15 = vcmp.ne.s32.totalorder %v1067_v36, %v2309_v33  ;;  %vm1072_vm8 = vcmp.ne.s32.totalorder %v1068_v19, %v2312_v34 }
  0x57   : > { %vm2583_vm4 = vmpackc.low %vm1072_vm8, %vm1071_vm15  ;;  %v2984_v35 = vmov 0  ;;  %v638_v37 = vor.u32 %v637_v25, %v633_v12  ;;  %v693_v39 = vunpack.c.h.b16 %v634_v40  ;;  %vm2588_vm7 = vcmp.ne.s32.totalorder %v692_v26, %v2309_v33  ;;  %v911_v40 = vld [vmem:[#allocation2 + $0x28] sm:$0x1]  ;;  %v535_v26 = vld [vmem:[#allocation2 + $0x24] sm:$0xf] }
  0x58   : > { %v2985_v35 = vsel %vm2583_vm4, 4294967295, %v2984_v35  ;;  %v1017_v41 = vrot.slane %v2545_v53, 4  ;;  %v811_v42 = vpack.c.b16 %v805_v29, %v804_v15  ;;  %v1244_v43 = vpack.c.b16 %v1238_v32, %v1237_v17  ;;  %v1211_v17 = vld [vmem:[#allocation2 + $0x28] sm:$0xf]  ;;  %v1212_v29 = vld [vmem:[#allocation2 + $0x2c] sm:$0xf] }
  0x59   : > { %v1088_v44 = vsel %vm2583_vm4, %v910_v24, 0  ;;  %v1138_v46 = vor.u32 %v1136_v11, %v1134_v14  ;;  %v639_v54 = vrot.slane %v638_v37, 4  ;;  %vm697_vm13 = vcmp.ne.s32.totalorder %v693_v39, %v2312_v34  ;;  %v2165_v32 = vld [vmem:[#allocation2 + $0x28] sm:$0xff] }
  0x5a   : > { %v1108_v49 = vunpack.c.l.b16 %v1088_v44  ;;  %v706_v59 = vunpack.c.l.b16 %v2404_v30  ;;  %v833_v60 = vshrl.u32 %v811_v42, 16  ;;  %v836_v62 = vshll.u32 %v811_v42, 16  ;;  %vm2599_vm15 = vmpackc.low %vm697_vm13, %vm2588_vm7  ;;  %v1549_v42 = vld [vmem:[#allocation2 + $0x18] sm:$0xf] }
  0x5b   : > { %v1265_v9 = vshrl.u32 %v1244_v43, 16  ;;  %v1268_v1 = vshll.u32 %v1244_v43, 16  ;;  %v2988_v53 = vmov 0  ;;  %v644_v14 = vsel %vm2413_vm3, %v639_v54, %v2343_v55  ;;  %v534_v55 = vld [vmem:[#allocation2 + $0x20] sm:$0xf] }
  0x5c   : > { %v2989_v53 = vsel %vm2599_vm15, 4294967295, %v2988_v53  ;;  %v2603_v3 = vpack.c.b16 %v1108_v49, %v1107_v61  ;;  %v719_v4 = vsel %vm2599_vm15, %v533_v48, 0  ;;  %v1074_v7 = vunpack.c.l.b16 %v1017_v41  ;;  %v1550_v49 = vld [vmem:[#allocation2 + $0x1c] sm:$0xf]  ;;  %v1551_v54 = vld [vmem:[#allocation2 + $0x20] sm:$0xf] }
  0x5d   : > { %v835_v5 = vrot.slane %v833_v60, 3  ;;  %v838_v6 = vrot.slane %v836_v62, 4  ;;  %v1267_v8 = vrot.slane %v1265_v9, 3  ;;  %v1270_v58 = vrot.slane %v1268_v1, 4 }
  0x5e   : > { %v1140_v10 = vshll.u32 %v2603_v3, 16  ;;  %v699_v11 = vunpack.c.l.b16 %v644_v14  ;;  %v700_v12 = vunpack.c.h.b16 %v644_v14  ;;  %v1219_v61 = vsel %vm2599_vm15, %v1210_v2, 0 }
  0x5f   : > { %v2613_v13 = vor.u32 %v838_v6, %v835_v5  ;;  %v2615_v15 = vor.u32 %v1270_v58, %v1267_v8  ;;  %v806_v38 = vunpack.c.l.b16 %v719_v4  ;;  %v1075_v36 = vunpack.c.h.b16 %v1017_v41  ;;  %v1548_v41 = vld [vmem:[#allocation2 + $0x14] sm:$0x8] }
  0x60   : > { %v1142_v19 = vrot.slane %v1140_v10, 1  ;;  %vm703_vm3 = vcmp.ne.s32.totalorder %v699_v11, %v2309_v33  ;;  %vm704_vm8 = vcmp.ne.s32.totalorder %v700_v12, %v2312_v34  ;;  %vm1078_vm7 = vcmp.ne.s32.totalorder %v1074_v7, %v2309_v33 }
  0x61   : > { %vm2990_vm13 = vsmask.f32 4352  ;;  %vm2626_vm4 = vmpackc.low %vm704_vm8, %vm703_vm3  ;;  %v1239_v25 = vunpack.c.l.b16 %v1219_v61  ;;  %vm1079_vm5 = vcmp.ne.s32.totalorder %v1075_v36, %v2312_v34  ;;  %vm2994_vm10 = vcmask 31744  }
  0x62   : > { %v840_v57 = vsel %vm2990_vm13, %v2495_v45, %v2613_v13  ;;  %vm2991_vm15 = vmmov %vm2990_vm13  ;;  %vm2996_vm9 = vsmask.f32 7424  ;;  %v720_v37 = vsel %vm2626_vm4, %v534_v55, 0  ;;  %v707_v50 = vunpack.c.h.b16 %v2404_v30 }
  0x63   : > { %v1272_v23 = vsel %vm2991_vm15, %v2501_v52, %v2615_v15  ;;  %2084 = vmatmul.msk.bf16.gmra.mxu1 %vm2994_vm10, %v840_v57  ;;  %vm2995_vm0 = vmmov %vm2994_vm10  ;;  %v1143_v45 = vsel %vm2996_vm9, %v1138_v46, %v1142_v19  ;;  %v1220_v52 = vsel %vm2626_vm4, %v1211_v17, 0  ;;  %v807_v43 = vunpack.c.l.b16 %v720_v37 }
  0x64   : > { %2094 = vmatmul.msk.bf16.gmra.mxu3 %vm2995_vm0, %v1272_v23  ;;  %vm2638_vm15 = vmpackc.low %vm1079_vm5, %vm1078_vm7  ;;  %v1240_v44 = vunpack.c.l.b16 %v1220_v52  ;;  %v1144_v46 = vshrl.u32 %v2603_v3, 16  ;;  %vm710_vm10 = vcmp.ne.s32.totalorder %v706_v59, %v2309_v33  ;;  %vm711_vm5 = vcmp.ne.s32.totalorder %v707_v50, %v2312_v34 }
  0x65   : > { %v1089_v48 = vsel %vm2638_vm15, %v911_v40, 0  ;;  %v1557_v62 = vsel %vm2426_vm6, %v1548_v41, 0  ;;  %vm2999_vm9 = vmmov %vm2995_vm0  ;;  %v812_v30 = vpack.c.b16 %v807_v43, %v806_v38  ;;  %v1558_v2 = vsel %vm2459_vm1, %v1549_v42, 0  ;;  %v1417_v43 = vld [vmem:[#allocation2 + $0x10] sm:$0xf] }
  0x66   : > { %v1109_v60 = vunpack.c.l.b16 %v1089_v48  ;;  %2090 = vmatmul.msk.bf16.gmra.mxu2 %vm2999_vm9, %v1143_v45  ;;  %v1245_v9 = vpack.c.b16 %v1240_v44, %v1239_v25  ;;  %vm2651_vm0 = vmpackc.low %vm711_vm5, %vm710_vm10  ;;  %v1559_v3 = vsel %vm2448_vm2, %v1550_v49, 0  ;;  %v1560_v59 = vsel %vm2477_vm12, %v1551_v54, 0  ;;  %v1418_v44 = vld [vmem:[#allocation2 + $0x14] sm:$0xf]  ;;  %v1761_v49 = vld [vmem:[#allocation2 + $0x18] sm:$0xf] }
  0x67   : > { %v721_v34 = vsel %vm2651_vm0, %v535_v26, 0  ;;  %v1221_v63 = vsel %vm2651_vm0, %v1212_v29, 0  ;;  %vm3002_vm6 = vmmov %vm2999_vm9  ;;  %v842_v14 = vshrl.u32 %v812_v30, 16  ;;  %v845_v4 = vshll.u32 %v812_v30, 16 }
  0x68   : > { %v1114_v33 = vpack.c.b16 %v1109_v60, %v1109_v60  ;;  %2117 = vmatmul.msk.bf16.gmra.mxu0 %vm3002_vm6, %v2165_v32  ;;  %v1274_v7 = vshrl.u32 %v1245_v9, 16  ;;  %v1277_v28 = vshll.u32 %v1245_v9, 16  ;;  %v808_v6 = vunpack.c.l.b16 %v721_v34  ;;  %vm3003_vm2 = vmmov %vm2990_vm13 }
  0x69   : > { %v1241_v21 = vunpack.c.l.b16 %v1221_v63  ;;  %v1577_v8 = vunpack.c.l.b16 %v1557_v62  ;;  %v844_v58 = vrot.slane %v842_v14, 3  ;;  %v847_v10 = vrot.slane %v845_v4, 4  ;;  %vm3004_vm1 = vmmov %vm3003_vm2  ;;  %v1762_v62 = vld [vmem:[#allocation2 + $0x1c] sm:$0xf] }
  0x6a   : > { %v1148_v5 = vshll.u32 %v1114_v33, 16  ;;  %v1276_v11 = vrot.slane %v1274_v7, 3  ;;  %v1279_v12 = vrot.slane %v1277_v28, 4  ;;  %v813_v61 = vpack.c.b16 %v808_v6, %v808_v6  ;;  %vm3005_vm12 = vmmov %vm3002_vm6  ;;  %v1420_v14 = vld [vmem:[#allocation2 + $0x1c] sm:$0xf] }
  0x6b   : > { %v1246_v55 = vpack.c.b16 %v1241_v21, %v1241_v21  ;;  %v1578_v38 = vunpack.c.l.b16 %v1558_v2  ;;  %v2666_v17 = vor.u32 %v847_v10, %v844_v58  ;;  %v1579_v51 = vunpack.c.l.b16 %v1559_v3  ;;  %vm3006_vm3 = vmmov %vm3002_vm6  ;;  %v1764_v3 = vld [vmem:[#allocation2 + $0x24] sm:$0xf] }
  0x6c   : > { %v2668_v36 = vor.u32 %v1279_v12, %v1276_v11  ;;  %v1580_v40 = vunpack.c.l.b16 %v1560_v59  ;;  %v1146_v57 = vor.u32 %v1144_v46, %v1142_v19  ;;  %v1150_v23 = vrot.slane %v1148_v5, 1  ;;  %v1419_v46 = vld [vmem:[#allocation2 + $0x18] sm:$0xf]  ;;  %vm3008_vm7 = vmmov %vm3006_vm3  ;;  %v1552_v10 = vld [vmem:[#allocation2 + $0x24] sm:$0xf] }
  0x6d   : > { %v851_v25 = vshrl.u32 %v813_v61, 16  ;;  %v1586_v26 = vpack.c.b16 %v1578_v38, %v1577_v8  ;;  %v849_v29 = vsel %vm3003_vm2, %v2613_v13, %v2666_v17  ;;  %v854_v32 = vshll.u32 %v813_v61, 16  ;;  %v1763_v13 = vld [vmem:[#allocation2 + $0x20] sm:$0xf]  ;;  %vm3011_vm5 = vmmov %vm3004_vm1 }
  0x6e   : > { %v1283_v45 = vshrl.u32 %v1246_v55, 16  ;;  %v1587_v37 = vpack.c.b16 %v1580_v40, %v1579_v51  ;;  %v1281_v52 = vsel %vm3004_vm1, %v2615_v15, %v2668_v36  ;;  %v1286_v50 = vshll.u32 %v1246_v55, 16  ;;  %v1553_v55 = vld [vmem:[#allocation2 + $0x28] sm:$0xf] }
  0x6f   : > { %v1592_v41 = vshrl.u32 %v1586_v26, 16  ;;  %v1595_v42 = vshll.u32 %v1586_v26, 16  ;;  %vm3007_vm8 = vsmask.f32 7424  ;;  %v853_v15 = vrot.slane %v851_v25, 3 }
  0x70   : > { %v1600_v19 = vshrl.u32 %v1587_v37, 16  ;;  %v1603_v48 = vshll.u32 %v1587_v37, 16  ;;  %v1151_v30 = vsel %vm3007_vm8, %v1146_v57, %v1150_v23  ;;  %v856_v33 = vrot.slane %v854_v32, 4  ;;  %v1421_v57 = vld [vmem:[#allocation2 + $0x20] sm:$0xf] }
  0x71   : > { %v1594_v54 = vrot.slane %v1592_v41, 3  ;;  %v1597_v60 = vrot.slane %v1595_v42, 4  ;;  %v1285_v34 = vrot.slane %v1283_v45, 3  ;;  %v1288_v63 = vrot.slane %v1286_v50, 4  ;;  %v1422_v26 = vld [vmem:[#allocation2 + $0x24] sm:$0xf] }
  0x72   : > { %v1602_v9 = vrot.slane %v1600_v19, 3  ;;  %v1605_v2 = vrot.slane %v1603_v48, 4  ;;  %v1426_v7 = vsel %vm2360_vm14, %v1417_v43, 0  ;;  %v1427_v28 = vsel %vm2383_vm11, %v1418_v44, 0  ;;  %v1765_v19 = vld [vmem:[#allocation2 + $0x28] sm:$0xf] }
  0x73   : > { %2085 = vmatmul.msk.bf16.gmra.mxu1 %vm3005_vm12, %v849_v29  ;;  %v1598_v59 = vor.u32 %v1597_v60, %v1594_v54  ;;  %v1770_v5 = vsel %vm2360_vm14, %v1761_v49, 0  ;;  %vm3009_vm13 = vnez %v2951_v22  ;;  %v1771_v21 = vsel %vm2383_vm11, %v1762_v62, 0  ;;  %v350_v48 = vld [vmem:[%s2304_s25] sm:$0xf]  ;;  %v1766_v60 = vld [vmem:[#allocation2 + $0x2c] sm:$0xf]  ;;  %vm3017_vm12 = vmmov %vm3004_vm1 }
  0x74   : > { %2095 = vmatmul.msk.bf16.gmra.mxu3 %vm3006_vm3, %v1281_v52  ;;  %v2679_v4 = vor.u32 %v1605_v2, %v1602_v9  ;;  %v1428_v6 = vsel %vm3009_vm13, %v1419_v46, 0  ;;  %v1772_v8 = vsel %vm3009_vm13, %v1763_v13, 0  ;;  %vm3010_vm10 = vnez %v2953_v27  ;;  %vm3018_vm3 = vmmov %vm3007_vm8 }
  0x75   : > { %v1773_v58 = vsel %vm3010_vm10, %v1764_v3, 0  ;;  %v1429_v0 = vsel %vm3010_vm10, %v1420_v14, 0  ;;  %v1790_v12 = vunpack.c.l.b16 %v1770_v5  ;;  %v1791_v61 = vunpack.c.l.b16 %v1771_v21  ;;  %vm3020_vm13 = vmmov %vm3008_vm7 }
  0x76   : > { %2091 = vmatmul.msk.bf16.gmra.mxu2 %vm3008_vm7, %v1151_v30  ;;  %v1607_v11 = vsel %vm3011_vm5, %v1598_v59, %v2679_v4  ;;  %v1446_v38 = vunpack.c.l.b16 %v1426_v7  ;;  %v1447_v51 = vunpack.c.l.b16 %v1427_v28  ;;  %v1792_v20 = vunpack.c.l.b16 %v1772_v8  ;;  %vm3021_vm10 = vmmov %vm3008_vm7  ;;  %v1423_v8 = vld [vmem:[#allocation2 + $0x28] sm:$0xf] }
  0x77   : > { %v1793_v40 = vunpack.c.l.b16 %v1773_v58  ;;  %v857_v22 = vor.u32 %v856_v33, %v853_v15  ;;  %v1799_v23 = vpack.c.b16 %v1791_v61, %v1790_v12  ;;  %vm3012_vm14 = vnez %v2978_v56  ;;  %vm3022_vm5 = vmmov %vm3008_vm7  ;;  %v1424_v58 = vld [vmem:[#allocation2 + $0x2c] sm:$0xf] }
  0x78   : > { %v1561_v25 = vsel %vm3012_vm14, %v1552_v10, 0  ;;  %v1289_v29 = vor.u32 %v1288_v63, %v1285_v34  ;;  %v1448_v32 = vunpack.c.l.b16 %v1428_v6  ;;  %vm3013_vm11 = vnez %v2982_v16  ;;  %v351_v63 = vld [vmem:[%s2304_s25 + $0x4] sm:$0xf] }
  0x79   : > { %v2702_v45 = vpack.c.b16 %v1793_v40, %v1792_v20  ;;  %v1562_v27 = vsel %vm3013_vm11, %v1553_v55, 0  ;;  %v1449_v37 = vunpack.c.l.b16 %v1429_v0  ;;  %v1805_v52 = vshrl.u32 %v1799_v23, 16  ;;  %v1554_v55 = vld [vmem:[#allocation2 + $0x2c] sm:$0xf] }
  0x7a   : > { %v1807_v50 = vshll.u32 %v1799_v23, 16  ;;  %vm3014_vm9 = vnez %v2968_v47  ;;  %v1455_v42 = vpack.c.b16 %v1447_v51, %v1446_v38  ;;  %v1581_v56 = vunpack.c.l.b16 %v1561_v25 }
  0x7b   : > { %v1430_v41 = vsel %vm3014_vm9, %v1421_v57, 0  ;;  %v1812_v43 = vshll.u32 %v2702_v45, 16  ;;  %vm3015_vm6 = vnez %v2973_v18  ;;  %v1582_v49 = vunpack.c.l.b16 %v1562_v27 }
  0x7c   : > { %v1431_v44 = vsel %vm3015_vm6, %v1422_v26, 0  ;;  %v1809_v46 = vrot.slane %v1807_v50, 1  ;;  %v1450_v16 = vunpack.c.l.b16 %v1430_v41  ;;  %vm3016_vm2 = vcmask 27648  }
  0x7d   : > { %v1451_v54 = vunpack.c.l.b16 %v1431_v44  ;;  %354 = vst.msk [vmem:[#allocation2 + $0x30] sm:$0xf] %vm3016_vm2, %v350_v48  ;;  %v1814_v62 = vrot.slane %v1812_v43, 1  ;;  %v858_v13 = vsel %vm3004_vm1, %v2666_v17, %v857_v22  ;;  %v1774_v9 = vsel %vm3014_vm9, %v1765_v19, 0  ;;  %vm3019_vm8 = vmmov %vm3016_vm2  ;;  %v2166_v48 = vld [vmem:[#allocation2 + $0x18] sm:$0xff] }
  0x7e   : > { %v1810_v30 = vor.u32 %v1809_v46, %v1805_v52  ;;  %v1290_v2 = vsel %vm3017_vm12, %v2668_v36, %v1289_v29  ;;  %v2719_v3 = vpack.c.b16 %v1449_v37, %v1448_v32  ;;  %v1775_v33 = vsel %vm3015_vm6, %v1766_v60, 0  ;;  %355 = vst.msk [vmem:[#allocation2 + $0x34] sm:$0xf] %vm3019_vm8, %v351_v63  ;;  %vm3026_vm6 = vmmov %vm3018_vm3  ;;  %v352_v60 = vld [vmem:[%s2304_s25 + $0x8] sm:$0xf] }
  0x7f   : > { %v1457_v15 = vpack.c.b16 %v1451_v54, %v1450_v16  ;;  %v1794_v34 = vunpack.c.l.b16 %v1774_v9  ;;  %v1463_v59 = vshll.u32 %v1455_v42, 16  ;;  %v1588_v7 = vpack.c.b16 %v1582_v49, %v1581_v56  ;;  %vm3027_vm2 = vmmov %vm3018_vm3 }
  0x80   : > { %v1815_v14 = vsel %vm3018_vm3, %v1810_v30, %v1814_v62  ;;  %v1795_v17 = vunpack.c.l.b16 %v1775_v33  ;;  %v1461_v36 = vshrl.u32 %v1455_v42, 16  ;;  %v1468_v28 = vshll.u32 %v2719_v3, 16  ;;  %vm3029_vm1 = vmmov %vm3019_vm8 }
  0x81   : > { %2150 = vmatmul.msk.bf16.vlgmr.msra.gmra.mxu0 %vm3008_vm7, %v1815_v14  ;;  %v1465_v18 = vrot.slane %v1463_v59, 1  ;;  %v1609_v5 = vshrl.u32 %v1588_v7, 16  ;;  %v1612_v6 = vshll.u32 %v1588_v7, 16  ;;  %v1476_v21 = vshll.u32 %v1457_v15, 16  ;;  %356 = vst.msk [vmem:[#allocation2 + $0x38] sm:$0xf] %vm3029_vm1, %v352_v60  ;;  %vm3030_vm12 = vmmov %vm3022_vm5 }
  0x82   : > { %v2729_v47 = vpack.c.b16 %v1795_v17, %v1794_v34  ;;  %v1816_v10 = vshrl.u32 %v2702_v45, 16  ;;  %vm3023_vm14 = vnez %v2975_v31  ;;  %vm3024_vm11 = vnez %v2985_v35  ;;  %vm3031_vm3 = vmmov %vm3022_vm5 }
  0x83   : > { %2086 = vmatmul.msk.bf16.gmra.mxu1 %vm3020_vm13, %v858_v13  ;;  %v1432_v12 = vsel %vm3023_vm14, %v1423_v8, 0  ;;  %v1433_v61 = vsel %vm3024_vm11, %v1424_v58, 0  ;;  %v1480_v40 = vshrl.u32 %v1457_v15, 16  ;;  %v1470_v57 = vrot.slane %v1468_v28, 1  ;;  %vm3032_vm8 = vmmov %vm3031_vm3  ;;  %v2167_v58 = vld [vmem:[#allocation2 + $0x20] sm:$0xff] }
  0x84   : > { %2096 = vmatmul.msk.bf16.gmra.mxu3 %vm3021_vm10, %v1290_v2  ;;  %v1820_v0 = vshll.u32 %v2729_v47, 16  ;;  %v1555_v38 = vld [vmem:[#allocation2 + $0x30] sm:$0xf]  ;;  %v1452_v51 = vunpack.c.l.b16 %v1432_v12  ;;  %v1453_v20 = vunpack.c.l.b16 %v1433_v61  ;;  %v1611_v25 = vrot.slane %v1609_v5, 3  ;;  %vm3034_vm13 = vmmov %vm3031_vm3 }
  0x85   : > { %v1767_v22 = vld [vmem:[#allocation2 + $0x30] sm:$0xf]  ;;  %v1768_v23 = vld [vmem:[#allocation2 + $0x34] sm:$0xf]  ;;  %v1614_v26 = vrot.slane %v1612_v6, 4  ;;  %v1478_v29 = vrot.slane %v1476_v21, 1  ;;  %v1818_v45 = vor.u32 %v1816_v10, %v1814_v62  ;;  %vm3025_vm9 = vnez %v2989_v53  ;;  %vm3035_vm10 = vmmov %vm3027_vm2 }
  0x86   : > { %2124 = vmatmul.msk.bf16.vlgmr.msra.gmra.mxu2 %vm3022_vm5, %v1607_v11  ;;  %v1466_v11 = vor.u32 %v1465_v18, %v1461_v36  ;;  %v1458_v32 = vpack.c.b16 %v1453_v20, %v1452_v51  ;;  %v1822_v27 = vrot.slane %v1820_v0, 1  ;;  %v1563_v37 = vsel %vm3025_vm9, %v1554_v55, 0  ;;  %v1425_v15 = vld [vmem:[#allocation2 + $0x30] sm:$0x1]  ;;  %v1556_v14 = vld [vmem:[#allocation2 + $0x34] sm:$0xf]  ;;  %vm3036_vm5 = vmmov %vm3027_vm2 }
  0x87   : > { %v1564_v52 = vsel %vm2626_vm4, %v1555_v38, 0  ;;  %v1482_v50 = vor.u32 %v1480_v40, %v1478_v29  ;;  %v1776_v42 = vsel %vm3023_vm14, %v1767_v22, 0  ;;  %v1777_v43 = vsel %vm3024_vm11, %v1768_v23, 0  ;;  %vm3028_vm4 = vmmov %vm3027_vm2 }
  0x88   : > { %v1484_v41 = vshll.u32 %v1458_v32, 16  ;;  %v1583_v56 = vunpack.c.l.b16 %v1563_v37  ;;  %v1584_v44 = vunpack.c.l.b16 %v1564_v52  ;;  %v1615_v46 = vor.u32 %v1614_v26, %v1611_v25  ;;  %v1769_v7 = vld [vmem:[#allocation2 + $0x38] sm:$0x1]  ;;  %vm3037_vm14 = vmmov %vm3027_vm2 }
  0x89   : > { %v1823_v53 = vsel %vm3026_vm6, %v1818_v45, %v1822_v27  ;;  %v1796_v49 = vunpack.c.l.b16 %v1776_v42  ;;  %v1797_v16 = vunpack.c.l.b16 %v1777_v43  ;;  %v1471_v24 = vsel %vm3027_vm2, %v1466_v11, %v1470_v57  ;;  %vm3038_vm11 = vmmov %vm3031_vm3 }
  0x8a   : > { %v1486_v19 = vrot.slane %v1484_v41, 1  ;;  %v1589_v31 = vpack.c.b16 %v1584_v44, %v1583_v56  ;;  %vm3033_vm7 = vsmask.f32 4352  ;;  %v1472_v13 = vshrl.u32 %v2719_v3, 16  ;;  %vm3039_vm9 = vmmov %vm3031_vm3  ;;  %v2169_v56 = vld [vmem:[#allocation2 + $0x30] sm:$0xff] }
  0x8b   : > { %v1616_v35 = vsel %vm3033_vm7, %v2679_v4, %v1615_v46  ;;  %v1802_v62 = vpack.c.b16 %v1797_v16, %v1796_v49  ;;  %v1824_v2 = vshrl.u32 %v2729_v47, 16  ;;  %v1434_v34 = vsel %vm2638_vm15, %v1425_v15, 0  ;;  %vm3041_vm6 = vmmov %vm3033_vm7 }
  0x8c   : > { %v1487_v54 = vsel %vm3028_vm4, %v1482_v50, %v1486_v19  ;;  %v1618_v30 = vshrl.u32 %v1589_v31, 16  ;;  %v1621_v9 = vshll.u32 %v1589_v31, 16  ;;  %v1454_v63 = vunpack.c.l.b16 %v1434_v34 }
  0x8d   : > { %v1828_v33 = vshll.u32 %v1802_v62, 16  ;;  %v1488_v59 = vshrl.u32 %v1458_v32, 16  ;;  %v1474_v17 = vor.u32 %v1472_v13, %v1470_v57  ;;  %v1826_v28 = vor.u32 %v1824_v2, %v1822_v27  ;;  %v2168_v32 = vld [vmem:[#allocation2 + $0x28] sm:$0xff] }
  0x8e   : > { %v1459_v4 = vpack.c.b16 %v1454_v63, %v1454_v63  ;;  %v1620_v36 = vrot.slane %v1618_v30, 3  ;;  %v1623_v18 = vrot.slane %v1621_v9, 4  ;;  %v1565_v3 = vsel %vm2651_vm0, %v1556_v14, 0  ;;  %vm3040_vm0 = vmmov %vm3031_vm3 }
  0x8f   : > { %v1830_v5 = vrot.slane %v1828_v33, 1  ;;  %v1490_v6 = vor.u32 %v1488_v59, %v1486_v19  ;;  %v1778_v47 = vsel %vm2638_vm15, %v1769_v7, 0  ;;  %v1585_v12 = vunpack.c.l.b16 %v1565_v3  ;;  %vm3042_vm15 = vmmov %vm3040_vm0 }
  0x90   : > { %v1492_v21 = vshll.u32 %v1459_v4, 16  ;;  %v1624_v10 = vor.u32 %v1623_v18, %v1620_v36  ;;  %v1798_v61 = vunpack.c.l.b16 %v1778_v47  ;;  %v1479_v55 = vsel %vm3036_vm5, %v1474_v17, %v1478_v29  ;;  %vm3043_vm4 = vmmov %vm3040_vm0 }
  0x91   : > { %2151 = vmatmul.msk.bf16.gmra.mxu0 %vm3030_vm12, %v1823_v53  ;;  %v1831_v0 = vsel %vm3035_vm10, %v1826_v28, %v1830_v5  ;;  %v1590_v1 = vpack.c.b16 %v1585_v12, %v1585_v12  ;;  %v1832_v57 = vshrl.u32 %v1802_v62, 16  ;;  %vm3044_vm1 = vmmov %vm3040_vm0  ;;  %vm1960_vm5 = vcmask 60416  }
  0x92   : > { %v1494_v8 = vrot.slane %v1492_v21, 1  ;;  %v1625_v39 = vsel %vm3041_vm6, %v1615_v46, %v1624_v10  ;;  %v1803_v51 = vpack.c.b16 %v1798_v61, %v1798_v61  ;;  %vm3045_vm12 = vmmov %vm3040_vm0 }
  0x93   : > { %2119 = vmatmul.msk.bf16.vlgmr.msra.gmra.mxu1 %vm3031_vm3, %v1471_v24  ;;  %v1627_v40 = vshrl.u32 %v1590_v1, 16  ;;  %v1630_v11 = vshll.u32 %v1590_v1, 16  ;;  %v1834_v26 = vor.u32 %v1832_v57, %v1830_v5  ;;  %vm3046_vm3 = vmmov %vm3041_vm6 }
  0x94   : > { %2145 = vmatmul.msk.bf16.vlgmr.msra.gmra.mxu3 %vm3032_vm8, %v2166_v48  ;;  %v1495_v38 = vsel %vm3037_vm14, %v1490_v6, %v1494_v8  ;;  %v1836_v22 = vshll.u32 %v1803_v51, 16  ;;  %vm3047_vm8 = vmmov %vm3040_vm0 }
  0x95   : > { %v1629_v23 = vrot.slane %v1627_v40, 3  ;;  %v1632_v25 = vrot.slane %v1630_v11, 4  ;;  %vm3048_vm7 = vmmov %vm3040_vm0 }
  0x96   : > { %2125 = vmatmul.msk.bf16.gmra.mxu2 %vm3034_vm13, %v1616_v35  ;;  %v1838_v29 = vrot.slane %v1836_v22, 1  ;;  %vm3049_vm13 = vmmov %vm3040_vm0 }
  0x97   : > { %v1633_v45 = vor.u32 %v1632_v25, %v1629_v23  ;;  %v776_v41 = vpop.f32.mrf.mxu1 }
  0x98   : > { %v1839_v27 = vsel %vm3027_vm2, %v1834_v26, %v1838_v29  ;;  %v2829_v26 = vld [vmem:[%s2917_s4] ss:$0 sm:$0xff] }
  0x99   : > { %v1634_v52 = vsel %vm3046_vm3, %v1624_v10, %v1633_v45 }
  0x9e   : > { %v771_v20 = vpop.f32.mrf.mxu0 }
  0x9f   : > { %v2779_v50 = vpop.f32.mrf.mxu2  ;;  %v778_v19 = vpop.f32.mrf.mxu1 }
  0xa1   : > { %2152 = vmatmul.msk.bf16.gmra.mxu0 %vm3038_vm11, %v1831_v0  ;;  %v2784_v44 = vpop.f32.mrf.mxu3 }
  0xa3   : > { %2120 = vmatmul.msk.bf16.gmra.mxu1 %vm3039_vm9, %v1479_v55 }
  0xa4   : > { %2146 = vmatmul.msk.bf16.gmra.mxu3 %vm3040_vm0, %v2167_v58 }
  0xa6   : > { %2126 = vmatmul.msk.bf16.gmra.mxu2 %vm3042_vm15, %v1625_v39  ;;  %v773_v37 = vpop.f32.mrf.mxu0 }
  0xa7   : > { %v2782_v43 = vpop.f32.mrf.mxu2 }
  0xa9   : > { %v2788_v53 = vpop.f32.mrf.mxu3 }
  0xae   : > { %v1389_v42 = vpop.f32.mrf.mxu0 }
  0xb1   : > { %2153 = vmatmul.msk.bf16.gmra.mxu0 %vm3043_vm4, %v1839_v27 }
  0xb3   : > { %2121 = vmatmul.msk.bf16.gmra.mxu1 %vm3044_vm1, %v1487_v54  ;;  %v1176_v46 = vpop.f32.mrf.mxu2 }
  0xb4   : > { %2147 = vmatmul.msk.bf16.gmra.mxu3 %vm3045_vm12, %v2168_v32 }
  0xb6   : > { %2127 = vmatmul.msk.bf16.gmra.mxu2 %vm3047_vm8, %v1634_v52  ;;  %v1391_v48 = vpop.f32.mrf.mxu0 }
  0xbb   : > { %v1178_v24 = vpop.f32.mrf.mxu2 }
  0xbf   : > { %v883_v49 = vpop.f32.mrf.mxu1 }
  0xc0   : > { %v884_v6 = vadd.f32 %v883_v49, %v771_v20 }
  0xc1   : > { %v2790_v16 = vpop.f32.mrf.mxu0 }
  0xc2   : > { %v1196_v47 = vadd.f32 %v1176_v46, %v884_v6 }
  0xc3   : > { %2122 = vmatmul.msk.bf16.gmra.mxu1 %vm3048_vm7, %v1495_v38 }
  0xc4   : > { %2148 = vmatmul.msk.bf16.gmra.mxu3 %vm3049_vm13, %v2169_v56 }
  0xc6   : > { %v1315_v54 = vpop.f32.mrf.mxu3 }
  0xc7   : > { %v885_v60 = vpop.f32.mrf.mxu1  ;;  %v1335_v0 = vadd.f32 %v1315_v54, %v1196_v47 }
  0xc8   : > { %v886_v12 = vadd.f32 %v885_v60, %v773_v37 }
  0xc9   : > { %v2792_v31 = vpop.f32.mrf.mxu0  ;;  %v1409_v38 = vadd.f32 %v1389_v42, %v1335_v0 }
  0xca   : > { %v1197_v55 = vadd.f32 %v1178_v24, %v886_v12 }
  0xce   : > { %v1317_v62 = vpop.f32.mrf.mxu3 }
  0xcf   : > { %v1336_v40 = vadd.f32 %v1317_v62, %v1197_v55 }
  0xd1   : > { %v1410_v29 = vadd.f32 %v1391_v48, %v1336_v40  ;;  %v2840_v48 = vld [vmem:[%s2919_s6] ss:$0 sm:$0xff] }
  0xd2   : > { %v2794_v15 = vpop.f32.mrf.mxu0 }
  0xd7   : > { %v1181_v35 = vpop.f32.mrf.mxu2 }
  0xda   : > { %v2798_v34 = vpop.f32.mrf.mxu0 }
  0xdf   : > { %v1183_v30 = vpop.f32.mrf.mxu2 }
  0xe0   : > { %v888_v13 = vpop.f32.mrf.mxu1 }
  0xe1   : > { %v889_v20 = vadd.f32 %v888_v13, %v776_v41  ;;  %v2835_v41 = vld [vmem:[%s2918_s5] ss:$0 sm:$0xff] }
  0xe3   : > { %v1198_v23 = vadd.f32 %v1181_v35, %v889_v20 }
  0xe5   : > { %v2806_v17 = vpop.f32.mrf.mxu0 }
  0xe7   : > { %v1320_v9 = vpop.f32.mrf.mxu3 }
  0xe8   : > { %v890_v2 = vpop.f32.mrf.mxu1  ;;  %v1337_v52 = vadd.f32 %v1320_v9, %v1198_v23 }
  0xe9   : > { %v2796_v33 = vpop.f32.mrf.mxu2  ;;  %v891_v46 = vadd.f32 %v890_v2, %v778_v19 }
  0xea   : > { %v1411_v13 = vadd.f32 %v2790_v16, %v1337_v52 }
  0xeb   : > { %v1199_v60 = vadd.f32 %v1183_v30, %v891_v46 }
  0xed   : > { %v2816_v5 = vpop.f32.mrf.mxu0 }
  0xef   : > { %v1322_v63 = vpop.f32.mrf.mxu3 }
  0xf0   : > { %v2800_v59 = vpop.f32.mrf.mxu1 }
  0xf1   : > { %v2802_v14 = vpop.f32.mrf.mxu2  ;;  %v894_v12 = vadd.f32 %v2800_v59, %v2779_v50 }
  0xf7   : > { %v2804_v7 = vpop.f32.mrf.mxu3 }
  0xf8   : > { %v2808_v4 = vpop.f32.mrf.mxu1 }
  0xf9   : > { %v2810_v36 = vpop.f32.mrf.mxu2 }
  0xfe   : > { %v1864_v10 = vpop.f32.mrf.mxu0 }
  0xff   : > { %v2812_v18 = vpop.f32.mrf.mxu3 }
 0x100   : > { %v2814_v28 = vpop.f32.mrf.mxu1 }
 0x101   : > { %v2818_v3 = vpop.f32.mrf.mxu2 }
 0x106   : > { %v1866_v57 = vpop.f32.mrf.mxu0 }
 0x107   : > { %v2820_v21 = vpop.f32.mrf.mxu3 }
 0x108   : > { %v2822_v8 = vpop.f32.mrf.mxu1 }
 0x109   : > { %v1659_v58 = vpop.f32.mrf.mxu2 }
 0x10e   : > { %v1869_v54 = vpop.f32.mrf.mxu0 }
 0x10f   : > { %v2824_v61 = vpop.f32.mrf.mxu3 }
 0x110   : > { %v1520_v39 = vpop.f32.mrf.mxu1 }
 0x111   : > { %v1540_v1 = vadd.f32 %v1520_v39, %v1409_v38  ;;  %v1661_v51 = vpop.f32.mrf.mxu2  ;;  %v1200_v38 = vadd.f32 %v2796_v33, %v894_v12 }
 0x113   : > { %v1679_v11 = vadd.f32 %v1659_v58, %v1540_v1  ;;  %v1339_v23 = vadd.f32 %v2804_v7, %v1200_v38 }
 0x117   : > { %v1733_v22 = vpop.f32.mrf.mxu3 }
 0x118   : > { %v1753_v25 = vadd.f32 %v1733_v22, %v1679_v11  ;;  %v1522_v32 = vpop.f32.mrf.mxu1 }
 0x119   : > { %v1541_v27 = vadd.f32 %v1522_v32, %v1410_v29  ;;  %v1664_v37 = vpop.f32.mrf.mxu2  ;;  %v896_v32 = vadd.f32 %v2808_v4, %v2782_v43 }
 0x11a   : > { %v1884_v45 = vadd.f32 %v1864_v10, %v1753_v25  ;;  %v1338_v10 = vadd.f32 %v1322_v63, %v1199_v60 }
 0x11b   : > { %v1680_v56 = vadd.f32 %v1661_v51, %v1541_v27  ;;  %v1201_v27 = vadd.f32 %v2802_v14, %v896_v32 }
 0x11c   : > { %v1896_v42 = vadd.f32 %v2829_v26, %v1884_v45  ;;  %v1412_v51 = vadd.f32 %v2792_v31, %v1338_v10 }
 0x11d   : > { %v1340_v4 = vadd.f32 %v2812_v18, %v1201_v27 }
 0x11e   : > { %vm1904_vm10 = vcmp.ge.f32.partialorder %v1896_v42, 0.0  ;;  %v1912_v49 = vmul.f32 0.01, %v1896_v42 }
 0x11f   : > { %v1735_v24 = vpop.f32.mrf.mxu3  ;;  %v1414_v18 = vadd.f32 %v2798_v34, %v1340_v4 }
 0x120   : > { %v1920_v35 = vsel %vm1904_vm10, %v1896_v42, %v1912_v49  ;;  %v1754_v62 = vadd.f32 %v1735_v24, %v1680_v56  ;;  %v1525_v6 = vpop.f32.mrf.mxu1  ;;  %v1413_v42 = vadd.f32 %v2794_v15, %v1339_v23 }
 0x121   : > { %v1932_v9 = vmul.f32 %v2835_v41, %v1920_v35  ;;  %v1542_v19 = vadd.f32 %v1525_v6, %v1411_v13  ;;  %v1666_v2 = vpop.f32.mrf.mxu2 }
 0x122   : > { %v1885_v47 = vadd.f32 %v1866_v57, %v1754_v62  ;;  %v1871_v57 = vpop.f32.mrf.mxu0  ;;  %v899_v62 = vadd.f32 %v2814_v28, %v2784_v44 }
 0x123   : > { %v1944_v58 = vadd.f32 %v2840_v48, %v1932_v9  ;;  %v1681_v16 = vadd.f32 %v1664_v37, %v1542_v19 }
 0x124   : > { %v1897_v30 = vadd.f32 %v2829_v26, %v1885_v47  ;;  %v1202_v9 = vadd.f32 %v2810_v36, %v899_v62  ;;  %v901_v36 = vadd.f32 %v2822_v8, %v2788_v53 }
 0x125   : > { %v1952_v0 = vpack.c.bf16 %v1944_v58, %v1944_v58 }
 0x126   : > { %vm1905_vm14 = vcmp.ge.f32.partialorder %v1897_v30, 0.0  ;;  %v1913_v55 = vmul.f32 0.01, %v1897_v30  ;;  %v1341_v44 = vadd.f32 %v2820_v21, %v1202_v9  ;;  %v1203_v38 = vadd.f32 %v2818_v3, %v901_v36 }
 0x127   : > { %1961 = vst.msk [vmem:[%s2850_s21] sm:$0xf] %vm1960_vm5, %v1952_v0  ;;  %v1738_v63 = vpop.f32.mrf.mxu3 }
 0x128   : > { %v1921_v39 = vsel %vm1905_vm14, %v1897_v30, %v1913_v55  ;;  %v1755_v1 = vadd.f32 %v1738_v63, %v1681_v16  ;;  %v1527_v11 = vpop.f32.mrf.mxu1  ;;  %v1415_v21 = vadd.f32 %v2806_v17, %v1341_v44  ;;  %v1342_v8 = vadd.f32 %v2824_v61, %v1203_v38 }
 0x129   : > { %v1933_v40 = vmul.f32 %v2835_v41, %v1921_v39  ;;  %v1543_v22 = vadd.f32 %v1527_v11, %v1412_v51  ;;  %v1669_v59 = vpop.f32.mrf.mxu2 }
 0x12a   : > { %v1886_v20 = vadd.f32 %v1869_v54, %v1755_v1  ;;  %v1874_v43 = vpop.f32.mrf.mxu0 }
 0x12b   : > { %v1945_v50 = vadd.f32 %v2840_v48, %v1933_v40  ;;  %v1682_v29 = vadd.f32 %v1666_v2, %v1543_v22 }
 0x12c   : > { %v1898_v25 = vadd.f32 %v2829_v26, %v1886_v20 }
 0x12d   : > { %v1953_v33 = vpack.c.bf16 %v1945_v50, %v1945_v50 }
 0x12e   : > { %vm1906_vm11 = vcmp.ge.f32.partialorder %v1898_v25, 0.0  ;;  %v1914_v31 = vmul.f32 0.01, %v1898_v25 }
 0x12f   : > { %1962 = vst.msk [vmem:[%s2850_s21 + $0x4] sm:$0xf] %vm1960_vm5, %v1953_v33  ;;  %v1740_v45 = vpop.f32.mrf.mxu3 }
 0x130   : > { %v1922_v37 = vsel %vm1906_vm11, %v1898_v25, %v1914_v31  ;;  %v1756_v52 = vadd.f32 %v1740_v45, %v1682_v29  ;;  %v1530_v56 = vpop.f32.mrf.mxu1  ;;  %v1416_v29 = vadd.f32 %v2816_v5, %v1342_v8 }
 0x131   : > { %v1934_v7 = vmul.f32 %v2835_v41, %v1922_v37  ;;  %v1544_v49 = vadd.f32 %v1530_v56, %v1413_v42  ;;  %v1671_v14 = vpop.f32.mrf.mxu2 }
 0x132   : > { %v1887_v46 = vadd.f32 %v1871_v57, %v1756_v52  ;;  %v1876_v12 = vpop.f32.mrf.mxu0 }
 0x133   : > { %v1946_v24 = vadd.f32 %v2840_v48, %v1934_v7  ;;  %v1683_v60 = vadd.f32 %v1669_v59, %v1544_v49 }
 0x134   : > { %v1899_v54 = vadd.f32 %v2829_v26, %v1887_v46 }
 0x135   : > { %v1954_v35 = vpack.c.bf16 %v1946_v24, %v1946_v24 }
 0x136   : > { %vm1907_vm9 = vcmp.ge.f32.partialorder %v1899_v54, 0.0  ;;  %v1915_v15 = vmul.f32 0.01, %v1899_v54 }
 0x137   : > { %1963 = vst.msk [vmem:[%s2850_s21 + $0x8] sm:$0xf] %vm1960_vm5, %v1954_v35  ;;  %v1743_v13 = vpop.f32.mrf.mxu3 }
 0x138   : > { %v1923_v6 = vsel %vm1907_vm9, %v1899_v54, %v1915_v15  ;;  %v1757_v47 = vadd.f32 %v1743_v13, %v1683_v60  ;;  %v1532_v2 = vpop.f32.mrf.mxu1 }
 0x139   : > { %v1935_v19 = vmul.f32 %v2835_v41, %v1923_v6  ;;  %v1545_v10 = vadd.f32 %v1532_v2, %v1414_v18  ;;  %v1674_v63 = vpop.f32.mrf.mxu2 }
 0x13a   : > { %v1888_v58 = vadd.f32 %v1874_v43, %v1757_v47  ;;  %v1879_v3 = vpop.f32.mrf.mxu0 }
 0x13b   : > { %v1947_v30 = vadd.f32 %v2840_v48, %v1935_v19  ;;  %v1684_v16 = vadd.f32 %v1671_v14, %v1545_v10 }
 0x13c   : > { %v1900_v28 = vadd.f32 %v2829_v26, %v1888_v58 }
 0x13d   : > { %v1955_v0 = vpack.c.bf16 %v1947_v30, %v1947_v30 }
 0x13e   : > { %vm1908_vm0 = vcmp.ge.f32.partialorder %v1900_v28, 0.0  ;;  %v1916_v55 = vmul.f32 0.01, %v1900_v28 }
 0x13f   : > { %1964 = vst.msk [vmem:[%s2850_s21 + $0xc] sm:$0xf] %vm1960_vm5, %v1955_v0  ;;  %v1745_v34 = vpop.f32.mrf.mxu3 }
 0x140   : > { %v1924_v39 = vsel %vm1908_vm0, %v1900_v28, %v1916_v55  ;;  %v1758_v1 = vadd.f32 %v1745_v34, %v1684_v16  ;;  %v1535_v40 = vpop.f32.mrf.mxu1 }
 0x141   : > { %v1936_v51 = vmul.f32 %v2835_v41, %v1924_v39  ;;  %v1546_v57 = vadd.f32 %v1535_v40, %v1415_v21  ;;  %v1676_v31 = vpop.f32.mrf.mxu2 }
 0x142   : > { %v1889_v11 = vadd.f32 %v1876_v12, %v1758_v1  ;;  %v1881_v24 = vpop.f32.mrf.mxu0 }
 0x143   : > { %v1948_v53 = vadd.f32 %v2840_v48, %v1936_v51  ;;  %v1685_v22 = vadd.f32 %v1674_v63, %v1546_v57 }
 0x144   : > { %v1901_v20 = vadd.f32 %v2829_v26, %v1889_v11 }
 0x145   : > { %v1956_v50 = vpack.c.bf16 %v1948_v53, %v1948_v53 }
 0x146   : > { %vm1909_vm6 = vcmp.ge.f32.partialorder %v1901_v20, 0.0  ;;  %v1917_v59 = vmul.f32 0.01, %v1901_v20 }
 0x147   : > { %1965 = vst.msk [vmem:[%s2850_s21 + $0x10] sm:$0xf] %vm1960_vm5, %v1956_v50  ;;  %v1748_v17 = vpop.f32.mrf.mxu3 }
 0x148   : > { %v1925_v23 = vsel %vm1909_vm6, %v1901_v20, %v1917_v59  ;;  %v1759_v25 = vadd.f32 %v1748_v17, %v1685_v22  ;;  %v1537_v32 = vpop.f32.mrf.mxu1 }
 0x149   : > { %v1937_v33 = vmul.f32 %v2835_v41, %v1925_v23  ;;  %v1547_v45 = vadd.f32 %v1537_v32, %v1416_v29 }
 0x14a   : > { %v1890_v61 = vadd.f32 %v1879_v3, %v1759_v25 }
 0x14b   : > { %v1949_v27 = vadd.f32 %v2840_v48, %v1937_v33  ;;  %v1686_v52 = vadd.f32 %v1676_v31, %v1547_v45 }
 0x14c   : > { %v1902_v37 = vadd.f32 %v2829_v26, %v1890_v61 }
 0x14d   : > { %v1957_v42 = vpack.c.bf16 %v1949_v27, %v1949_v27 }
 0x14e   : > { %vm1910_vm15 = vcmp.ge.f32.partialorder %v1902_v37, 0.0  ;;  %v1918_v7 = vmul.f32 0.01, %v1902_v37 }
 0x14f   : > { %1966 = vst.msk [vmem:[%s2850_s21 + $0x14] sm:$0xf] %vm1960_vm5, %v1957_v42  ;;  %v1750_v56 = vpop.f32.mrf.mxu3 }
 0x150   : > { %v1926_v5 = vsel %vm1910_vm15, %v1902_v37, %v1918_v7  ;;  %v1760_v46 = vadd.f32 %v1750_v56, %v1686_v52 }
 0x151   : > { %v1938_v49 = vmul.f32 %v2835_v41, %v1926_v5 }
 0x152   : > { %v1891_v43 = vadd.f32 %v1881_v24, %v1760_v46 }
 0x153   : > { %v1950_v4 = vadd.f32 %v2840_v48, %v1938_v49 }
 0x154   : > { %v1903_v54 = vadd.f32 %v2829_v26, %v1891_v43 }
 0x155   : > { %v1958_v60 = vpack.c.bf16 %v1950_v4, %v1950_v4 }
 0x156   : > { %vm1911_vm2 = vcmp.ge.f32.partialorder %v1903_v54, 0.0  ;;  %v1919_v35 = vmul.f32 0.01, %v1903_v54 }
 0x157   : > { %1967 = vst.msk [vmem:[%s2850_s21 + $0x18] sm:$0xf] %vm1960_vm5, %v1958_v60 }
 0x158   : > { %v1927_v14 = vsel %vm1911_vm2, %v1903_v54, %v1919_v35 }
 0x159   : > { %v1939_v62 = vmul.f32 %v2835_v41, %v1927_v14 }
 0x15b   : > { %v1951_v15 = vadd.f32 %v2840_v48, %v1939_v62 }
 0x15d   : > { %v1959_v13 = vpack.c.bf16 %v1951_v15, %v1951_v15 }
 0x15f   : > { %1968 = vst.msk [vmem:[%s2850_s21 + $0x1c] sm:$0xf] %vm1960_vm5, %v1959_v13 }
 0x160 PF: > { %s17_s24 = sadd.s32 1, %s2192_s24  }
 0x161   : > { %p14_p5 = scmp.ge.s32.totalorder %s17_s24, 10  }
 0x163   :  { %16 = sbr.rel (!%p14_p5) target bundleno = 1 (0x1), region = 92 }

// kernel: resblock_forward.7
= control target key start
LH: loop header
LB: loop body
LE: loop exit
PB: predicated region body
PF: predicated region fallthrough
CT: control target
= control target key end

     0   :  { %s1906_s25 = smov 0   ;;  %s2234_s0 = inlined_call_operand.vmem [shape: bf16[512,8], index: 0, kind: input, shape index: {}]   ;;  %s2235_s1 = inlined_call_operand.vmem [shape: bf16[512,8], index: 1, kind: input, shape index: {}]   ;;  %s2236_s2 = inlined_call_operand.vmem [shape: bf16[512,8], index: 2, kind: input, shape index: {}]   ;;  %s2237_s3 = inlined_call_operand.vmem [shape: bf16[512,4], index: 3, kind: input, shape index: {}]   ;;  %s2238_s4 = inlined_call_operand.vmem [shape: bf16[8,8], index: 4, kind: input, shape index: {}]   ;;  %s2239_s5 = inlined_call_operand.vmem [shape: bf16[8,8], index: 5, kind: input, shape index: {}]   ;;  %s2240_s6 = inlined_call_operand.vmem [shape: bf16[8,8], index: 6, kind: input, shape index: {}]   ;;  %s2241_s7 = inlined_call_operand.vmem [shape: bf16[4,8], index: 7, kind: input, shape index: {}]   ;;  %s2242_s8 = inlined_call_operand.vmem [shape: f32[1,8], index: 8, kind: input, shape index: {}]   ;;  %s2243_s9 = inlined_call_operand.vmem [shape: f32[1,8], index: 9, kind: input, shape index: {}]   ;;  %s2244_s10 = inlined_call_operand.vmem [shape: f32[1,8], index: 10, kind: input, shape index: {}]   ;;  %s2245_s11 = inlined_call_operand.vmem [shape: f32[1,8], index: 11, kind: input, shape index: {}]   ;;  %s2246_s12 = inlined_call_operand.vmem [shape: bf16[512,8], index: 12, kind: output, shape index: {0}]   ;;  %s2247_s13 = inlined_call_operand.vmem [shape: f32[128,8], index: 13, kind: output, shape index: {1}]  }
   0x1 LB: > { %s1589_s26 = sadd.s32 4294967295, %s1834_s25   ;;  %p1593_p0 = scmp.ge.s32.totalorder %s1834_s25, 1  ;;  %s1834_s25 = sphi %s1906_s25, %s24_s25  }
   0x2   : > { %p424_p1 = scmp.lt.s32.totalorder %s1834_s25, 9 }
   0x4   : > { %p425_p2 = pnand %p1593_p0, %p424_p1 }
   0x5   : > { %s1594_s18 = sshll.u32 (!%p425_p2), %s1589_s26, 3 }
   0x6   : > { %428 = sbr.rel (%p425_p2) target bundleno = 277 (0x115), region = 68  ;;  %p489_p3 = scmp.lt.s32.totalorder (!%p425_p2), %s1594_s18, 63 }
   0xb   : > { %v542_v0 = vld [vmem:[%s2239_s5] sm:$0xf]  ;;  %vm576_vm0 = vcmask 1043456   ;;  %vm860_vm1 = vcmask 1041408   ;;  %s2249_s18 = smov (!%p489_p3, %s1594_s18), 63  ;;  %vm563_vm2 = vcmask 64512  }
   0xc   : > { %v533_v1 = vld [vmem:[%s2238_s4] sm:$0xf]  ;;  %v578_v2 = vsel %vm576_vm0, %v542_v0, 0  ;;  %s1928_s19 = sshll.u32 %s2249_s18, 2  ;;  %vm847_vm3 = vcmask 31744   ;;  %vm933_vm6 = vcmask 60416  }
   0xd   : > { %v642_v3 = vsel %vm576_vm0, %v533_v1, 0  ;;  %v681_v4 = vld [vmem:[%s2240_s6] sm:$0xf]  ;;  %587 = vmatpush.bf16.msra.mxu0 %v578_v2  ;;  %s498_s22 = scalar_lea.vmem %s2235_s1, %s1928_s19  ;;  %s492_s27 = scalar_lea.vmem %s2234_s0, %s1928_s19  ;;  %vm1438_vm15 = vcmask 1041409  }
   0xe   : > { %v822_v5 = vld [vmem:[%s2241_s7] sm:$0x3]  ;;  %651 = vmatpush.bf16.msra.mxu1 %v642_v3  ;;  %v715_v6 = vsel %vm576_vm0, %v681_v4, 0  ;;  %s504_s30 = scalar_lea.vmem %s2236_s2, %s1928_s19  ;;  %s510_s16 = scalar_lea.vmem %s2237_s3, %s1928_s19  ;;  %v1757_v12 = vld [vmem:[%s498_s22 + $0x8] sm:$0xff]  ;;  %v1758_v16 = vld [vmem:[%s498_s22 + $0x10] sm:$0xff] }
   0xf   : > { %v862_v7 = vsel %vm860_vm1, %v822_v5, 0  ;;  %724 = vmatpush.bf16.msra.mxu2 %v715_v6  ;;  %v1756_v8 = vld [vmem:[%s498_s22] sm:$0xff]  ;;  %v1753_v13 = vld [vmem:[%s492_s27 + $0x8] sm:$0xff]  ;;  %v1754_v17 = vld [vmem:[%s492_s27 + $0x10] sm:$0xff] }
  0x10   : > { %871 = vmatpush.bf16.msra.mxu3 %v862_v7  ;;  %v1752_v9 = vld [vmem:[%s492_s27] sm:$0xff]  ;;  %1622 = vmatmul.msk.bf16.vlgmr.msra.gmra.mxu0 %vm563_vm2, %v1756_v8  ;;  %v1761_v14 = vld [vmem:[%s504_s30 + $0x8] sm:$0xff]  ;;  %v1762_v18 = vld [vmem:[%s504_s30 + $0x10] sm:$0xff] }
  0x11   : > { %v1760_v10 = vld [vmem:[%s504_s30] sm:$0xff]  ;;  %1642 = vmatmul.msk.bf16.vlgmr.msra.gmra.mxu1 %vm563_vm2, %v1752_v9  ;;  %v1765_v15 = vld [vmem:[%s510_s16 + $0x8] sm:$0xff]  ;;  %v1766_v19 = vld [vmem:[%s510_s16 + $0x10] sm:$0xff] }
  0x12   : > { %v1764_v11 = vld [vmem:[%s510_s16] sm:$0xff]  ;;  %1662 = vmatmul.msk.bf16.vlgmr.msra.gmra.mxu2 %vm563_vm2, %v1760_v10  ;;  %v1759_v20 = vld [vmem:[%s498_s22 + $0x18] sm:$0xff] }
  0x13   : > { %1682 = vmatmul.msk.bf16.vlgmr.msra.gmra.mxu3 %vm847_vm3, %v1764_v11  ;;  %v1755_v21 = vld [vmem:[%s492_s27 + $0x18] sm:$0xff]  ;;  %v1965_v27 = vld [vmem:[%s2242_s8] ss:$0 sm:$0xff] }
  0x14   : > { %v1763_v22 = vld [vmem:[%s504_s30 + $0x18] sm:$0xff]  ;;  %v1970_v28 = vld [vmem:[%s2243_s9] ss:$0 sm:$0xff]  ;;  %s1992_s30 = scalar_lea.vmem %s2246_s12, %s1928_s19  ;;  %s2106_s19 = sshll.u32 %s1589_s26, 1 }
  0x15   : > { %v1767_v23 = vld [vmem:[%s510_s16 + $0x18] sm:$0xff]  ;;  %v1977_v36 = vld [vmem:[%s2244_s10] ss:$0 sm:$0xff]  ;;  %p519_p4 = scmp.lt.s32.totalorder %s2106_s19, 15 }
  0x16   : > { %v1982_v38 = vld [vmem:[%s2245_s11] ss:$0 sm:$0xff] }
  0x17   : > { %s2251_s19 = smov (!%p519_p4, %s2106_s19), 15 }
  0x18   : > { %s1605_s26 = sshll.u32 %s2251_s19, 3 }
  0x19   : > { %s2154_s16 = scalar_lea.vmem %s2247_s13, %s1605_s26 }
  0x20   : > { %1623 = vmatmul.msk.bf16.gmra.mxu0 %vm563_vm2, %v1757_v12 }
  0x21   : > { %1643 = vmatmul.msk.bf16.gmra.mxu1 %vm563_vm2, %v1753_v13 }
  0x22   : > { %1663 = vmatmul.msk.bf16.gmra.mxu2 %vm563_vm2, %v1761_v14 }
  0x23   : > { %1683 = vmatmul.msk.bf16.gmra.mxu3 %vm847_vm3, %v1765_v15 }
  0x30   : > { %1624 = vmatmul.msk.bf16.gmra.mxu0 %vm563_vm2, %v1758_v16 }
  0x31   : > { %1644 = vmatmul.msk.bf16.gmra.mxu1 %vm563_vm2, %v1754_v17 }
  0x32   : > { %1664 = vmatmul.msk.bf16.gmra.mxu2 %vm563_vm2, %v1762_v18 }
  0x33   : > { %1684 = vmatmul.msk.bf16.gmra.mxu3 %vm847_vm3, %v1766_v19 }
  0x40   : > { %1625 = vmatmul.msk.bf16.gmra.mxu0 %vm563_vm2, %v1759_v20 }
  0x41   : > { %1645 = vmatmul.msk.bf16.gmra.mxu1 %vm563_vm2, %v1755_v21 }
  0x42   : > { %1665 = vmatmul.msk.bf16.gmra.mxu2 %vm563_vm2, %v1763_v22 }
  0x43   : > { %1685 = vmatmul.msk.bf16.gmra.mxu3 %vm847_vm3, %v1767_v23  ;;  %vm1440_vm3 = vcmask 1042434  }
  0x8d   : > { %v589_v24 = vpop.f32.mrf.mxu0 }
  0x8e   : > { %v653_v25 = vpop.f32.mrf.mxu1 }
  0x8f   : > { %v654_v26 = vadd.f32 %v653_v25, %v589_v24 }
  0x95   : > { %v726_v29 = vpop.f32.mrf.mxu2  ;;  %v591_v32 = vpop.f32.mrf.mxu0 }
  0x96   : > { %v873_v30 = vpop.f32.mrf.mxu3  ;;  %v746_v31 = vadd.f32 %v726_v29, %v654_v26  ;;  %v655_v33 = vpop.f32.mrf.mxu1 }
  0x97   : > { %v874_v35 = vadd.f32 %v1970_v28, %v873_v30  ;;  %v656_v41 = vadd.f32 %v655_v33, %v591_v32 }
  0x98   : > { %v758_v34 = vadd.f32 %v1965_v27, %v746_v31 }
  0x99   : > { %v901_v40 = vmul.f32 0.01, %v874_v35  ;;  %vm893_vm5 = vcmp.ge.f32.partialorder %v874_v35, 0.0 }
  0x9a   : > { %vm766_vm4 = vcmp.ge.f32.partialorder %v758_v34, 0.0  ;;  %v774_v37 = vmul.f32 0.01, %v758_v34 }
  0x9b   : > { %v909_v47 = vsel %vm893_vm5, %v874_v35, %v901_v40  ;;  %vm1444_vm5 = vcmask 1044484  }
  0x9c   : > { %v782_v39 = vsel %vm766_vm4, %v758_v34, %v774_v37  ;;  %vm1442_vm4 = vcmask 1043459  }
  0x9d   : > { %v794_v42 = vmul.f32 %v1977_v36, %v782_v39  ;;  %v728_v43 = vpop.f32.mrf.mxu2  ;;  %v594_v51 = vpop.f32.mrf.mxu0 }
  0x9e   : > { %v875_v44 = vpop.f32.mrf.mxu3  ;;  %v747_v45 = vadd.f32 %v728_v43, %v656_v41  ;;  %v658_v52 = vpop.f32.mrf.mxu1 }
  0x9f   : > { %v806_v46 = vadd.f32 %v1982_v38, %v794_v42  ;;  %v876_v49 = vadd.f32 %v1970_v28, %v875_v44  ;;  %v659_v54 = vadd.f32 %v658_v52, %v594_v51 }
  0xa0   : > { %v759_v48 = vadd.f32 %v1965_v27, %v747_v45 }
  0xa1   : > { %v917_v50 = vadd.f32 %v909_v47, %v806_v46  ;;  %v902_v58 = vmul.f32 0.01, %v876_v49  ;;  %vm894_vm8 = vcmp.ge.f32.partialorder %v876_v49, 0.0 }
  0xa2   : > { %vm767_vm7 = vcmp.ge.f32.partialorder %v759_v48, 0.0  ;;  %v775_v53 = vmul.f32 0.01, %v759_v48 }
  0xa3   : > { %v925_v55 = vpack.c.bf16 %v917_v50, %v917_v50  ;;  %v942_v56 = vmin.f32 %v917_v50, 60.0  ;;  %v910_v1 = vsel %vm894_vm8, %v876_v49, %v902_v58 }
  0xa4   : > { %v783_v57 = vsel %vm767_vm7, %v759_v48, %v775_v53  ;;  %vm1446_vm7 = vcmask 1045509  }
  0xa5   : > { %934 = vst.msk [vmem:[%s1992_s30] sm:$0xf] %vm933_vm6, %v925_v55  ;;  %v950_v59 = vmul.f32 1.442695, %v942_v56  ;;  %v795_v60 = vmul.f32 %v1977_v36, %v783_v57  ;;  %v731_v61 = vpop.f32.mrf.mxu2  ;;  %v596_v13 = vpop.f32.mrf.mxu0 }
  0xa6   : > { %v748_v62 = vadd.f32 %v731_v61, %v659_v54  ;;  %v878_v0 = vpop.f32.mrf.mxu3  ;;  %v660_v14 = vpop.f32.mrf.mxu1 }
  0xa7   : > { %1780 = vpow2.f32 %v950_v59  ;;  %v807_v63 = vadd.f32 %v1982_v38, %v795_v60  ;;  %v879_v3 = vadd.f32 %v1970_v28, %v878_v0  ;;  %v661_v19 = vadd.f32 %v660_v14, %v596_v13 }
  0xa8   : > { %v760_v2 = vadd.f32 %v1965_v27, %v748_v62 }
  0xa9   : > { %v918_v4 = vadd.f32 %v910_v1, %v807_v63  ;;  %v903_v9 = vmul.f32 0.01, %v879_v3  ;;  %vm895_vm10 = vcmp.ge.f32.partialorder %v879_v3, 0.0 }
  0xaa   : > { %vm768_vm9 = vcmp.ge.f32.partialorder %v760_v2, 0.0  ;;  %v776_v5 = vmul.f32 0.01, %v760_v2 }
  0xab   : > { %v926_v6 = vpack.c.bf16 %v918_v4, %v918_v4  ;;  %v943_v7 = vmin.f32 %v918_v4, 60.0  ;;  %v911_v18 = vsel %vm895_vm10, %v879_v3, %v903_v9  ;;  %vm1448_vm10 = vcmask 1046534  }
  0xac   : > { %v784_v8 = vsel %vm768_vm9, %v760_v2, %v776_v5 }
  0xad   : > { %v1781_v10 = vpop.eup %1780  ;;  %935 = vst.msk [vmem:[%s1992_s30 + $0x4] sm:$0xf] %vm933_vm6, %v926_v6  ;;  %v952_v11 = vmul.f32 1.442695, %v943_v7  ;;  %v796_v12 = vmul.f32 %v1977_v36, %v784_v8  ;;  %v733_v17 = vpop.f32.mrf.mxu2 }
  0xae   : > { %v966_v15 = vmul.f32 %v1781_v10, %v917_v50  ;;  %v1182_v22 = vrot.slane %v1781_v10, 2  ;;  %v749_v23 = vadd.f32 %v733_v17, %v661_v19  ;;  %v880_v24 = vpop.f32.mrf.mxu3  ;;  %v1183_v31 = vrot.slane %v1781_v10, 4  ;;  %v2012_v48 = vpop.f32.mrf.mxu0 }
  0xaf   : > { %1782 = vpow2.f32 %v952_v11  ;;  %v808_v16 = vadd.f32 %v1982_v38, %v796_v12  ;;  %v1184_v32 = vrot.slane %v1781_v10, 6  ;;  %v1718_v35 = vrot.slane %v1781_v10, 9  ;;  %v2014_v49 = vpop.f32.mrf.mxu1 }
  0xb0   : > { %v982_v21 = vrot.slane %v966_v15, 2  ;;  %v983_v25 = vrot.slane %v966_v15, 4  ;;  %v984_v26 = vrot.slane %v966_v15, 6  ;;  %v1686_v37 = vrot.slane %v966_v15, 9 }
  0xb1   : > { %v919_v20 = vadd.f32 %v911_v18, %v808_v16  ;;  %v1719_v40 = vrot.slane %v1182_v22, 9  ;;  %v761_v41 = vadd.f32 %v1965_v27, %v749_v23  ;;  %v1720_v45 = vrot.slane %v1183_v31, 9 }
  0xb2   : > { %v1687_v39 = vrot.slane %v982_v21, 9  ;;  %v1688_v42 = vrot.slane %v983_v25, 9  ;;  %v1689_v43 = vrot.slane %v984_v26, 9  ;;  %v1721_v46 = vrot.slane %v1184_v32, 9 }
  0xb3   : > { %v927_v29 = vpack.c.bf16 %v919_v20, %v919_v20  ;;  %v944_v30 = vmin.f32 %v919_v20, 60.0  ;;  %vm769_vm11 = vcmp.ge.f32.partialorder %v761_v41, 0.0  ;;  %v777_v47 = vmul.f32 0.01, %v761_v41 }
  0xb4   : > { %v2016_v50 = vadd.f32 %v1686_v37, %v966_v15  ;;  %v2018_v51 = vadd.f32 %v1687_v39, %v982_v21  ;;  %v1326_v52 = vadd.f32 %v1781_v10, %v1718_v35  ;;  %v1327_v53 = vadd.f32 %v1719_v40, %v1182_v22 }
  0xb5   : > { %v2004_v33 = vpop.eup %1782  ;;  %936 = vst.msk [vmem:[%s1992_s30 + $0x8] sm:$0xf] %vm933_vm6, %v927_v29  ;;  %v954_v34 = vmul.f32 1.442695, %v944_v30  ;;  %v2020_v54 = vadd.f32 %v1688_v42, %v983_v25  ;;  %v2022_v55 = vadd.f32 %v1689_v43, %v984_v26  ;;  %v785_v56 = vsel %vm769_vm11, %v761_v41, %v777_v47  ;;  %v2025_v58 = vpop.f32.mrf.mxu2 }
  0xb6   : > { %v2010_v44 = vmul.f32 %v2004_v33, %v918_v4  ;;  %v881_v57 = vadd.f32 %v1970_v28, %v880_v24  ;;  %v1328_v61 = vadd.f32 %v1720_v45, %v1183_v31  ;;  %v1329_v62 = vadd.f32 %v1721_v46, %v1184_v32  ;;  %v883_v63 = vpop.f32.mrf.mxu3  ;;  %v601_v30 = vpop.f32.mrf.mxu0 }
  0xb7   : > { %1784 = vpow2.f32 %v954_v34  ;;  %v797_v2 = vmul.f32 %v1977_v36, %v785_v56  ;;  %v1185_v3 = vrot.slane %v2004_v33, 2  ;;  %v1186_v4 = vrot.slane %v2004_v33, 4  ;;  %v665_v31 = vpop.f32.mrf.mxu1 }
  0xb8   : > { %v985_v59 = vrot.slane %v2010_v44, 2  ;;  %v986_v60 = vrot.slane %v2010_v44, 4  ;;  %v987_v1 = vrot.slane %v2010_v44, 6  ;;  %v1690_v9 = vrot.slane %v2010_v44, 9 }
  0xb9   : > { %vm896_vm12 = vcmp.ge.f32.partialorder %v881_v57, 0.0  ;;  %v1187_v11 = vrot.slane %v2004_v33, 6  ;;  %v904_v15 = vmul.f32 0.01, %v881_v57  ;;  %v809_v23 = vadd.f32 %v1982_v38, %v797_v2 }
  0xba   : > { %v1691_v12 = vrot.slane %v985_v59, 9  ;;  %v1692_v13 = vrot.slane %v986_v60, 9  ;;  %v2042_v32 = vadd.f32 %v1690_v9, %v2010_v44  ;;  %v1722_v41 = vrot.slane %v2004_v33, 9 }
  0xbb   : > { %v912_v37 = vsel %vm896_vm12, %v881_v57, %v904_v15  ;;  %v1723_v44 = vrot.slane %v1185_v3, 9  ;;  %vm1450_vm11 = vcmask 1047559  }
  0xbc   : > { %v2047_v43 = vadd.f32 %v1691_v12, %v985_v59  ;;  %v2049_v45 = vadd.f32 %v1692_v13, %v986_v60  ;;  %v920_v46 = vadd.f32 %v912_v37, %v809_v23  ;;  %v664_v59 = vadd.f32 %v2014_v49, %v2012_v48 }
  0xbd   : > { %v1785_v0 = vpop.eup %1784  ;;  %v738_v42 = vpop.f32.mrf.mxu2  ;;  %v884_v60 = vadd.f32 %v1970_v28, %v883_v63 }
  0xbe   : > { %v2033_v5 = vmul.f32 %v1785_v0, %v919_v20  ;;  %v1188_v6 = vrot.slane %v1785_v0, 2  ;;  %v1189_v7 = vrot.slane %v1785_v0, 4  ;;  %v1190_v8 = vrot.slane %v1785_v0, 6  ;;  %v885_v47 = vpop.f32.mrf.mxu3 }
  0xbf   : > { %v1726_v10 = vrot.slane %v1785_v0, 9  ;;  %v1693_v20 = vrot.slane %v987_v1, 9  ;;  %v945_v2 = vmin.f32 %v920_v46, 60.0  ;;  %v750_v48 = vadd.f32 %v2025_v58, %v664_v59 }
  0xc0   : > { %v988_v14 = vrot.slane %v2033_v5, 2  ;;  %v1727_v16 = vrot.slane %v1188_v6, 9  ;;  %v1728_v17 = vrot.slane %v1189_v7, 9  ;;  %v1729_v18 = vrot.slane %v1190_v8, 9 }
  0xc1   : > { %v1334_v19 = vadd.f32 %v1785_v0, %v1726_v10  ;;  %v989_v21 = vrot.slane %v2033_v5, 4  ;;  %v990_v22 = vrot.slane %v2033_v5, 6  ;;  %v1694_v34 = vrot.slane %v2033_v5, 9 }
  0xc2   : > { %v1335_v24 = vadd.f32 %v1727_v16, %v1188_v6  ;;  %v1336_v25 = vadd.f32 %v1728_v17, %v1189_v7  ;;  %v1337_v26 = vadd.f32 %v1729_v18, %v1190_v8  ;;  %v1695_v35 = vrot.slane %v988_v14, 9  ;;  %v604_v18 = vpop.f32.mrf.mxu0 }
  0xc3   : > { %v1358_v29 = vadd.f32 %v1334_v19, %v1326_v52  ;;  %v1696_v52 = vrot.slane %v989_v21, 9  ;;  %v1697_v56 = vrot.slane %v990_v22, 9  ;;  %v666_v6 = vadd.f32 %v665_v31, %v601_v30  ;;  %v668_v19 = vpop.f32.mrf.mxu1 }
  0xc4   : > { %v1359_v39 = vadd.f32 %v1335_v24, %v1327_v53  ;;  %v1360_v40 = vadd.f32 %v1336_v25, %v1328_v61  ;;  %v1361_v0 = vadd.f32 %v1337_v26, %v1329_v62  ;;  %v1134_v53 = vadd.f32 %v1694_v34, %v2033_v5 }
  0xc5   : > { %1786 = vrcp.f32 %v1358_v29  ;;  %v1135_v57 = vadd.f32 %v1695_v35, %v988_v14  ;;  %v928_v61 = vpack.c.bf16 %v920_v46, %v920_v46  ;;  %v2057_v7 = vadd.f32 %v1693_v20, %v987_v1  ;;  %v741_v24 = vpop.f32.mrf.mxu2 }
  0xc6   : > { %1788 = vrcp.f32 %v1359_v39  ;;  %v956_v8 = vmul.f32 1.442695, %v945_v2  ;;  %v1724_v62 = vrot.slane %v1186_v4, 9  ;;  %v1725_v5 = vrot.slane %v1187_v11, 9  ;;  %v888_v31 = vpop.f32.mrf.mxu3 }
  0xc7   : > { %1790 = vrcp.f32 %v1360_v40  ;;  %937 = vst.msk [vmem:[%s1992_s30 + $0xc] sm:$0xf] %vm933_vm6, %v928_v61  ;;  %v2066_v10 = vadd.f32 %v2004_v33, %v1722_v41  ;;  %v751_v49 = vadd.f32 %v738_v42, %v666_v6  ;;  %v1136_v63 = vadd.f32 %v1696_v52, %v989_v21 }
  0xc8   : > { %1792 = vrcp.f32 %v1361_v0  ;;  %v1137_v1 = vadd.f32 %v1697_v56, %v990_v22  ;;  %v1158_v12 = vadd.f32 %v1134_v53, %v2016_v50  ;;  %v1159_v14 = vadd.f32 %v1135_v57, %v2018_v51 }
  0xc9   : > { %1794 = vpow2.f32 %v956_v8  ;;  %v762_v15 = vadd.f32 %v1965_v27, %v750_v48  ;;  %v905_v16 = vmul.f32 0.01, %v884_v60  ;;  %v2073_v17 = vadd.f32 %v1970_v28, %v885_v47 }
  0xca   : > { %vm897_vm13 = vcmp.ge.f32.partialorder %v884_v60, 0.0  ;;  %v763_v58 = vadd.f32 %v1965_v27, %v751_v49  ;;  %v669_v21 = vadd.f32 %v668_v19, %v604_v18  ;;  %v1331_v50 = vadd.f32 %v1723_v44, %v1185_v3 }
  0xcb   : > { %v1787_v9 = vpop.eup %1786  ;;  %v1332_v51 = vadd.f32 %v1724_v62, %v1186_v4  ;;  %vm770_vm14 = vcmp.ge.f32.partialorder %v762_v15, 0.0  ;;  %v778_v23 = vmul.f32 0.01, %v762_v15  ;;  %v1160_v25 = vadd.f32 %v1136_v63, %v2020_v54 }
  0xcc   : > { %v1789_v13 = vpop.eup %1788  ;;  %v2075_v20 = vmul.f32 %v1787_v9, %v1158_v12  ;;  %v1161_v26 = vadd.f32 %v1137_v1, %v2022_v55  ;;  %v1333_v30 = vadd.f32 %v1725_v5, %v1187_v11  ;;  %v913_v3 = vsel %vm897_vm13, %v884_v60, %v905_v16 }
  0xcd   : > { %v1791_v22 = vpop.eup %1790  ;;  %v1391_v29 = vmul.f32 %v1789_v13, %v1159_v14  ;;  %v786_v35 = vsel %vm770_vm14, %v762_v15, %v778_v23  ;;  %v2088_v37 = vmul.f32 0.01, %v2073_v17  ;;  %v2091_v4 = vadd.f32 %v1970_v28, %v888_v31 }
  0xce   : > { %v1793_v34 = vpop.eup %1792  ;;  %v2093_v54 = vmul.f32 %v1791_v22, %v1160_v25  ;;  %v1422_v55 = vperm.slane %v2075_v20, 0  ;;  %vm771_vm0 = vcmp.ge.f32.partialorder %v763_v58, 0.0  ;;  %v752_v40 = vadd.f32 %v741_v24, %v669_v21  ;;  %v606_v24 = vpop.f32.mrf.mxu0 }
  0xcf   : > { %v1795_v39 = vpop.eup %1794  ;;  %v798_v42 = vmul.f32 %v1977_v36, %v786_v35  ;;  %v2097_v44 = vmul.f32 %v1793_v34, %v1161_v26  ;;  %v1423_v47 = vperm.slane %v1391_v29, 0  ;;  %vm898_vm1 = vcmp.ge.f32.partialorder %v2073_v17, 0.0  ;;  %v670_v25 = vpop.f32.mrf.mxu1 }
  0xd0   : > { %v969_v33 = vmul.f32 %v1795_v39, %v920_v46  ;;  %v1191_v11 = vrot.slane %v1795_v39, 2  ;;  %v1192_v41 = vrot.slane %v1795_v39, 4  ;;  %v1193_v52 = vrot.slane %v1795_v39, 6 }
  0xd1   : > { %v1730_v56 = vrot.slane %v1795_v39, 9  ;;  %v779_v61 = vmul.f32 0.01, %v763_v58  ;;  %v1424_v6 = vperm.slane %v2093_v54, 0  ;;  %v810_v62 = vadd.f32 %v1982_v38, %v798_v42 }
  0xd2   : > { %v991_v0 = vrot.slane %v969_v33, 2  ;;  %v992_v53 = vrot.slane %v969_v33, 4  ;;  %v993_v57 = vrot.slane %v969_v33, 6  ;;  %v1731_v2 = vrot.slane %v1191_v11, 9 }
  0xd3   : > { %v1732_v59 = vrot.slane %v1192_v41, 9  ;;  %v1733_v46 = vrot.slane %v1193_v52, 9  ;;  %v1338_v60 = vadd.f32 %v1795_v39, %v1730_v56  ;;  %v1698_v8 = vrot.slane %v969_v33, 9 }
  0xd4   : > { %v764_v5 = vadd.f32 %v1965_v27, %v752_v40  ;;  %v1339_v9 = vadd.f32 %v1731_v2, %v1191_v11  ;;  %v1699_v1 = vrot.slane %v991_v0, 9  ;;  %v1700_v12 = vrot.slane %v992_v53, 9  ;;  %v743_v40 = vpop.f32.mrf.mxu2 }
  0xd5   : > { %v1340_v48 = vadd.f32 %v1732_v59, %v1192_v41  ;;  %v1341_v49 = vadd.f32 %v1733_v46, %v1193_v52  ;;  %v1362_v63 = vadd.f32 %v1338_v60, %v2066_v10  ;;  %v1701_v13 = vrot.slane %v993_v57, 9 }
  0xd6   : > { %v787_v14 = vsel %vm771_vm0, %v763_v58, %v779_v61  ;;  %v1363_v15 = vadd.f32 %v1339_v9, %v1331_v50  ;;  %v1439_v19 = vsel %vm1438_vm15, %v1423_v47, %v1422_v55  ;;  %v1138_v20 = vadd.f32 %v1698_v8, %v969_v33 }
  0xd7   : > { %v1364_v16 = vadd.f32 %v1340_v48, %v1332_v51  ;;  %v1365_v18 = vadd.f32 %v1341_v49, %v1333_v30  ;;  %1796 = vrcp.f32 %v1362_v63  ;;  %v2110_v21 = vadd.f32 %v913_v3, %v810_v62 }
  0xd8   : > { %v907_v10 = vmul.f32 0.01, %v2091_v4  ;;  %1798 = vrcp.f32 %v1363_v15  ;;  %v799_v22 = vmul.f32 %v1977_v36, %v787_v14  ;;  %vm772_vm8 = vcmp.ge.f32.partialorder %v764_v5, 0.0 }
  0xd9   : > { %v780_v58 = vmul.f32 0.01, %v764_v5  ;;  %v1139_v50 = vadd.f32 %v1699_v1, %v991_v0  ;;  %v1140_v51 = vadd.f32 %v1700_v12, %v992_v53  ;;  %1800 = vrcp.f32 %v1364_v16  ;;  %v890_v12 = vpop.f32.mrf.mxu3 }
  0xda   : > { %v929_v23 = vpack.c.bf16 %v2110_v21, %v2110_v21  ;;  %v1141_v26 = vadd.f32 %v1701_v13, %v993_v57  ;;  %1802 = vrcp.f32 %v1365_v18  ;;  %v811_v29 = vadd.f32 %v1982_v38, %v799_v22 }
  0xdb   : > { %v788_v30 = vsel %vm772_vm8, %v764_v5, %v780_v58  ;;  %v1162_v31 = vadd.f32 %v1138_v20, %v2042_v32  ;;  %v914_v34 = vsel %vm898_vm1, %v2073_v17, %v2088_v37  ;;  %vm899_vm9 = vcmp.ge.f32.partialorder %v2091_v4, 0.0 }
  0xdc   : > { %938 = vst.msk [vmem:[%s1992_s30 + $0x10] sm:$0xf] %vm933_vm6, %v929_v23  ;;  %v800_v35 = vmul.f32 %v1977_v36, %v788_v30  ;;  %v1425_v39 = vperm.slane %v2097_v44, 0  ;;  %v946_v54 = vmin.f32 %v2110_v21, 60.0  ;;  %v2134_v32 = vadd.f32 %v914_v34, %v811_v29 }
  0xdd   : > { %v1797_v3 = vpop.eup %1796  ;;  %v671_v55 = vadd.f32 %v670_v25, %v606_v24  ;;  %v1441_v33 = vsel %vm1440_vm3, %v1424_v6, %v1439_v19  ;;  %v1163_v17 = vadd.f32 %v1139_v50, %v2047_v43  ;;  %v1164_v42 = vadd.f32 %v1140_v51, %v2049_v45 }
  0xde   : > { %v1394_v37 = vmul.f32 %v1797_v3, %v1162_v31  ;;  %v812_v11 = vadd.f32 %v1982_v38, %v800_v35  ;;  %v1799_v41 = vpop.eup %1798  ;;  %v1165_v44 = vadd.f32 %v1141_v26, %v2057_v7  ;;  %v930_v47 = vpack.c.bf16 %v2134_v32, %v2134_v32 }
  0xdf   : > { %v915_v52 = vsel %vm899_vm9, %v2091_v4, %v907_v10  ;;  %v1801_v56 = vpop.eup %1800  ;;  %v1395_v0 = vmul.f32 %v1799_v41, %v1163_v17  ;;  %v753_v57 = vadd.f32 %v743_v40, %v671_v55  ;;  %v1443_v2 = vsel %vm1442_vm4, %v1425_v39, %v1441_v33 }
  0xe0   : > { %v1426_v53 = vperm.slane %v1394_v37, 0  ;;  %v923_v43 = vadd.f32 %v915_v52, %v812_v11  ;;  %v1803_v61 = vpop.eup %1802  ;;  %v1396_v45 = vmul.f32 %v1801_v56, %v1164_v42  ;;  %v958_v7 = vmul.f32 1.442695, %v946_v54  ;;  %939 = vst.msk [vmem:[%s1992_s30 + $0x14] sm:$0xf] %vm933_vm6, %v930_v47 }
  0xe1   : > { %v1397_v59 = vmul.f32 %v1803_v61, %v1165_v44  ;;  %v1427_v46 = vperm.slane %v1395_v0, 0  ;;  %v765_v9 = vadd.f32 %v1965_v27, %v753_v57  ;;  %v947_v14 = vmin.f32 %v2134_v32, 60.0 }
  0xe2   : > { %v1445_v60 = vsel %vm1444_vm5, %v1426_v53, %v1443_v2  ;;  %v931_v4 = vpack.c.bf16 %v923_v43, %v923_v43  ;;  %v1428_v6 = vperm.slane %v1396_v45, 0  ;;  %v948_v8 = vmin.f32 %v923_v43, 60.0 }
  0xe3   : > { %v1429_v62 = vperm.slane %v1397_v59, 0  ;;  %v1447_v5 = vsel %vm1446_vm7, %v1427_v46, %v1445_v60  ;;  %1804 = vpow2.f32 %v958_v7  ;;  %v781_v1 = vmul.f32 0.01, %v765_v9 }
  0xe4   : > { %940 = vst.msk [vmem:[%s1992_s30 + $0x18] sm:$0xf] %vm933_vm6, %v931_v4  ;;  %v1449_v48 = vsel %vm1448_vm10, %v1428_v6, %v1447_v5  ;;  %v962_v49 = vmul.f32 1.442695, %v948_v8  ;;  %vm773_vm12 = vcmp.ge.f32.partialorder %v765_v9, 0.0  ;;  %v891_v16 = vadd.f32 %v1970_v28, %v890_v12 }
  0xe5   : > { %v1451_v63 = vsel %vm1450_vm11, %v1429_v62, %v1449_v48  ;;  %v789_v15 = vsel %vm773_vm12, %v765_v9, %v781_v1  ;;  %v960_v19 = vmul.f32 1.442695, %v947_v14 }
  0xe6   : > { %1461 = vst.msk [vmem:[%s2154_s16] sm:$0xff] %vm563_vm2, %v1451_v63  ;;  %1806 = vpow2.f32 %v962_v49  ;;  %v801_v10 = vmul.f32 %v1977_v36, %v789_v15  ;;  %vm900_vm13 = vcmp.ge.f32.partialorder %v891_v16, 0.0  ;;  %v908_v50 = vmul.f32 0.01, %v891_v16 }
  0xe7   : > { %1808 = vpow2.f32 %v960_v19 }
  0xe8   : > { %v813_v29 = vadd.f32 %v1982_v38, %v801_v10  ;;  %v916_v39 = vsel %vm900_vm13, %v891_v16, %v908_v50 }
  0xe9   : > { %v2164_v13 = vpop.eup %1804 }
  0xea   : > { %v1194_v18 = vrot.slane %v2164_v13, 2  ;;  %v2172_v22 = vmul.f32 %v2164_v13, %v2110_v21  ;;  %v1195_v51 = vrot.slane %v2164_v13, 4  ;;  %v1196_v23 = vrot.slane %v2164_v13, 6 }
  0xeb   : > { %v1734_v35 = vrot.slane %v2164_v13, 9  ;;  %v924_v11 = vadd.f32 %v916_v39, %v813_v29 }
  0xec   : > { %v1807_v27 = vpop.eup %1806  ;;  %v1735_v24 = vrot.slane %v1194_v18, 9  ;;  %v994_v36 = vrot.slane %v2172_v22, 2  ;;  %v995_v21 = vrot.slane %v2172_v22, 4  ;;  %v996_v34 = vrot.slane %v2172_v22, 6 }
  0xed   : > { %v1200_v20 = vrot.slane %v1807_v27, 2  ;;  %v1201_v58 = vrot.slane %v1807_v27, 4  ;;  %v2176_v25 = vmul.f32 %v1807_v27, %v923_v43  ;;  %v1742_v26 = vrot.slane %v1807_v27, 9  ;;  %v2187_v52 = vpop.eup %1808 }
  0xee   : > { %v1202_v30 = vrot.slane %v1807_v27, 6  ;;  %v1702_v54 = vrot.slane %v2172_v22, 9  ;;  %v1736_v55 = vrot.slane %v1195_v51, 9  ;;  %v1737_v40 = vrot.slane %v1196_v23, 9 }
  0xef   : > { %v1743_v28 = vrot.slane %v1200_v20, 9  ;;  %v1744_v3 = vrot.slane %v1201_v58, 9  ;;  %v1343_v33 = vadd.f32 %v1735_v24, %v1194_v18  ;;  %v1000_v38 = vrot.slane %v2176_v25, 2 }
  0xf0   : > { %v1001_v17 = vrot.slane %v2176_v25, 4  ;;  %v1350_v37 = vadd.f32 %v1807_v27, %v1742_v26  ;;  %v1703_v41 = vrot.slane %v994_v36, 9  ;;  %v1704_v42 = vrot.slane %v995_v21, 9 }
  0xf1   : > { %v1351_v31 = vadd.f32 %v1743_v28, %v1200_v20  ;;  %v1745_v44 = vrot.slane %v1202_v30, 9  ;;  %v1342_v56 = vadd.f32 %v2164_v13, %v1734_v35  ;;  %v1352_v0 = vadd.f32 %v1744_v3, %v1201_v58 }
  0xf2   : > { %v932_v53 = vpack.c.bf16 %v924_v11, %v924_v11  ;;  %v949_v43 = vmin.f32 %v924_v11, 60.0  ;;  %v1705_v57 = vrot.slane %v996_v34, 9  ;;  %v1002_v61 = vrot.slane %v2176_v25, 6 }
  0xf3   : > { %v1367_v47 = vadd.f32 %v1351_v31, %v1343_v33  ;;  %v1710_v2 = vrot.slane %v2176_v25, 9  ;;  %v1344_v45 = vadd.f32 %v1736_v55, %v1195_v51  ;;  %v1711_v7 = vrot.slane %v1000_v38, 9 }
  0xf4   : > { %v1712_v59 = vrot.slane %v1001_v17, 9  ;;  %v1366_v46 = vadd.f32 %v1350_v37, %v1342_v56  ;;  %941 = vst.msk [vmem:[%s1992_s30 + $0x1c] sm:$0xf] %vm933_vm6, %v932_v53  ;;  %v964_v60 = vmul.f32 1.442695, %v949_v43  ;;  %v1142_v4 = vadd.f32 %v1702_v54, %v2172_v22 }
  0xf5   : > { %v2197_v6 = vmul.f32 %v2187_v52, %v2134_v32  ;;  %v1353_v8 = vadd.f32 %v1745_v44, %v1202_v30  ;;  %1810 = vrcp.f32 %v1367_v47  ;;  %v1143_v62 = vadd.f32 %v1703_v41, %v994_v36 }
  0xf6   : > { %v1368_v5 = vadd.f32 %v1352_v0, %v1344_v45  ;;  %1812 = vpow2.f32 %v964_v60  ;;  %v1197_v9 = vrot.slane %v2187_v52, 2  ;;  %v1713_v48 = vrot.slane %v1002_v61, 9 }
  0xf7   : > { %v1345_v49 = vadd.f32 %v1737_v40, %v1196_v23  ;;  %v1198_v63 = vrot.slane %v2187_v52, 4  ;;  %v1199_v1 = vrot.slane %v2187_v52, 6  ;;  %v1150_v12 = vadd.f32 %v1710_v2, %v2176_v25 }
  0xf8   : > { %v1151_v13 = vadd.f32 %v1711_v7, %v1000_v38  ;;  %v1152_v14 = vadd.f32 %v1712_v59, %v1001_v17  ;;  %1814 = vrcp.f32 %v1366_v46  ;;  %v1144_v32 = vadd.f32 %v1704_v42, %v995_v21 }
  0xf9   : > { %v1145_v15 = vadd.f32 %v1705_v57, %v996_v34  ;;  %v997_v16 = vrot.slane %v2197_v6, 2  ;;  %v1369_v27 = vadd.f32 %v1353_v8, %v1345_v49  ;;  %v998_v18 = vrot.slane %v2197_v6, 4 }
  0xfa   : > { %1816 = vrcp.f32 %v1368_v5  ;;  %v1738_v19 = vrot.slane %v2187_v52, 9  ;;  %v1739_v20 = vrot.slane %v1197_v9, 9  ;;  %v999_v22 = vrot.slane %v2197_v6, 6 }
  0xfb   : > { %v1811_v10 = vpop.eup %1810  ;;  %v1706_v58 = vrot.slane %v2197_v6, 9  ;;  %v1153_v50 = vadd.f32 %v1713_v48, %v1002_v61  ;;  %v1740_v51 = vrot.slane %v1198_v63, 9  ;;  %v1166_v24 = vadd.f32 %v1150_v12, %v1142_v4 }
  0xfc   : > { %v1813_v23 = vpop.eup %1812  ;;  %v1167_v28 = vadd.f32 %v1151_v13, %v1143_v62  ;;  %v1168_v25 = vadd.f32 %v1152_v14, %v1144_v32  ;;  %v1741_v26 = vrot.slane %v1199_v1, 9  ;;  %1818 = vrcp.f32 %v1369_v27 }
  0xfd   : > { %v973_v29 = vmul.f32 %v1813_v23, %v924_v11  ;;  %v1203_v36 = vrot.slane %v1813_v23, 2  ;;  %v1204_v21 = vrot.slane %v1813_v23, 4  ;;  %v1205_v31 = vrot.slane %v1813_v23, 6 }
  0xfe   : > { %v1815_v30 = vpop.eup %1814  ;;  %v1746_v34 = vrot.slane %v1813_v23, 9  ;;  %v1346_v35 = vadd.f32 %v2187_v52, %v1738_v19  ;;  %v1347_v3 = vadd.f32 %v1739_v20, %v1197_v9  ;;  %v1399_v39 = vmul.f32 %v1811_v10, %v1167_v28 }
  0xff   : > { %v1003_v54 = vrot.slane %v973_v29, 2  ;;  %v1004_v55 = vrot.slane %v973_v29, 4  ;;  %v1348_v40 = vadd.f32 %v1740_v51, %v1198_v63  ;;  %v1747_v38 = vrot.slane %v1203_v36, 9 }
 0x100   : > { %v1817_v33 = vpop.eup %1816  ;;  %v1748_v17 = vrot.slane %v1204_v21, 9  ;;  %v1749_v37 = vrot.slane %v1205_v31, 9  ;;  %v1354_v41 = vadd.f32 %v1813_v23, %v1746_v34  ;;  %v1398_v42 = vmul.f32 %v1815_v30, %v1166_v24 }
 0x101   : > { %v1005_v44 = vrot.slane %v973_v29, 6  ;;  %v1714_v11 = vrot.slane %v973_v29, 9  ;;  %v1349_v47 = vadd.f32 %v1741_v26, %v1199_v1  ;;  %v1355_v56 = vadd.f32 %v1747_v38, %v1203_v36 }
 0x102   : > { %v1356_v0 = vadd.f32 %v1748_v17, %v1204_v21  ;;  %v1357_v53 = vadd.f32 %v1749_v37, %v1205_v31  ;;  %v1370_v43 = vadd.f32 %v1354_v41, %v1346_v35  ;;  %v1819_v57 = vpop.eup %1818  ;;  %v1400_v52 = vmul.f32 %v1817_v33, %v1168_v25 }
 0x103   : > { %v1431_v61 = vperm.slane %v1399_v39, 0  ;;  %v1715_v2 = vrot.slane %v1003_v54, 9  ;;  %v1716_v45 = vrot.slane %v1004_v55, 9  ;;  %v1371_v7 = vadd.f32 %v1355_v56, %v1347_v3 }
 0x104   : > { %v1372_v59 = vadd.f32 %v1356_v0, %v1348_v40  ;;  %v1373_v46 = vadd.f32 %v1357_v53, %v1349_v47  ;;  %1820 = vrcp.f32 %v1370_v43  ;;  %v1707_v60 = vrot.slane %v997_v16, 9 }
 0x105   : > { %v1708_v4 = vrot.slane %v998_v18, 9  ;;  %v1717_v8 = vrot.slane %v1005_v44, 9  ;;  %v1154_v62 = vadd.f32 %v1714_v11, %v973_v29  ;;  %v1709_v5 = vrot.slane %v999_v22, 9 }
 0x106   : > { %v1169_v9 = vadd.f32 %v1153_v50, %v1145_v15  ;;  %v1430_v48 = vperm.slane %v1398_v42, 0  ;;  %1822 = vrcp.f32 %v1371_v7  ;;  %v1146_v49 = vadd.f32 %v1706_v58, %v2197_v6 }
 0x107   : > { %v1432_v63 = vperm.slane %v1400_v52, 0  ;;  %v1155_v1 = vadd.f32 %v1715_v2, %v1003_v54  ;;  %1824 = vrcp.f32 %v1372_v59  ;;  %v1156_v14 = vadd.f32 %v1716_v45, %v1004_v55 }
 0x108   : > { %v1401_v12 = vmul.f32 %v1819_v57, %v1169_v9  ;;  %v1452_v13 = vsel %vm1438_vm15, %v1431_v61, %v1430_v48  ;;  %1826 = vrcp.f32 %v1373_v46  ;;  %v1147_v32 = vadd.f32 %v1707_v60, %v997_v16 }
 0x109   : > { %v1157_v27 = vadd.f32 %v1717_v8, %v1005_v44  ;;  %v1170_v19 = vadd.f32 %v1154_v62, %v1146_v49  ;;  %v1148_v15 = vadd.f32 %v1708_v4, %v998_v18  ;;  %v1149_v10 = vadd.f32 %v1709_v5, %v999_v22 }
 0x10a   : > { %v1821_v20 = vpop.eup %1820  ;;  %v1453_v58 = vsel %vm1440_vm3, %v1432_v63, %v1452_v13  ;;  %v1171_v50 = vadd.f32 %v1155_v1, %v1147_v32  ;;  %v1433_v24 = vperm.slane %v1401_v12, 0 }
 0x10b   : > { %v1402_v51 = vmul.f32 %v1821_v20, %v1170_v19  ;;  %v1172_v28 = vadd.f32 %v1156_v14, %v1148_v15  ;;  %v1173_v26 = vadd.f32 %v1157_v27, %v1149_v10 }
 0x10c   : > { %v1823_v23 = vpop.eup %1822  ;;  %v1454_v21 = vsel %vm1442_vm4, %v1433_v24, %v1453_v58 }
 0x10d   : > { %v1825_v25 = vpop.eup %1824  ;;  %v1403_v16 = vmul.f32 %v1823_v23, %v1171_v50  ;;  %v1434_v29 = vperm.slane %v1402_v51, 0 }
 0x10e   : > { %v1827_v36 = vpop.eup %1826  ;;  %v1404_v30 = vmul.f32 %v1825_v25, %v1172_v28 }
 0x10f   : > { %v1405_v18 = vmul.f32 %v1827_v36, %v1173_v26  ;;  %v1435_v31 = vperm.slane %v1403_v16, 0  ;;  %v1455_v6 = vsel %vm1444_vm5, %v1434_v29, %v1454_v21 }
 0x110   : > { %v1436_v22 = vperm.slane %v1404_v30, 0 }
 0x111   : > { %v1437_v34 = vperm.slane %v1405_v18, 0  ;;  %v1456_v35 = vsel %vm1446_vm7, %v1435_v31, %v1455_v6 }
 0x112   : > { %v1457_v3 = vsel %vm1448_vm10, %v1436_v22, %v1456_v35 }
 0x113   : > { %v1458_v39 = vsel %vm1450_vm11, %v1437_v34, %v1457_v3 }
 0x114   : > { %1462 = vst.msk [vmem:[%s2154_s16 + $0x8] sm:$0xff] %vm563_vm2, %v1458_v39 }
 0x115 PF: > { %s24_s25 = sadd.s32 1, %s1834_s25  }
 0x116   : > { %p21_p5 = scmp.ge.s32.totalorder %s24_s25, 10  }
 0x118   :  { %23 = sbr.rel (!%p21_p5) target bundleno = 1 (0x1), region = 119 }

// kernel: resblock_forward.6
= control target key start
LH: loop header
LB: loop body
LE: loop exit
PB: predicated region body
PF: predicated region fallthrough
CT: control target
= control target key end

     0   :  { %s1647_s24 = smov 0   ;;  %s2163_s0 = inlined_call_operand.vmem [shape: bf16[512,8], index: 0, kind: input, shape index: {}]   ;;  %s2164_s1 = inlined_call_operand.vmem [shape: bf16[8,32,8], index: 1, kind: input, shape index: {}]   ;;  %s2165_s2 = inlined_call_operand.vmem [shape: bf16[8,32,8], index: 2, kind: input, shape index: {}]   ;;  %s2166_s3 = inlined_call_operand.vmem [shape: bf16[4,8,8], index: 3, kind: input, shape index: {}]   ;;  %s2167_s4 = inlined_call_operand.vmem [shape: f32[1,8], index: 4, kind: input, shape index: {}]   ;;  %s2168_s5 = inlined_call_operand.vmem [shape: f32[1,8], index: 5, kind: input, shape index: {}]   ;;  %s2169_s6 = inlined_call_operand.vmem [shape: f32[1,8], index: 6, kind: input, shape index: {}]   ;;  %s2170_s7 = inlined_call_operand.vmem [shape: bf16[512,8], index: 7, kind: output, shape index: {}]  }
   0x1 LB: > { %s1548_s25 = sadd.s32 4294967295, %s1603_s24   ;;  %p1552_p0 = scmp.ge.s32.totalorder %s1603_s24, 1  ;;  %s1603_s24 = sphi %s1647_s24, %s17_s24  }
   0x2   : > { %p258_p1 = scmp.lt.s32.totalorder %s1603_s24, 9 }
   0x4   : > { %p259_p2 = pnand %p1552_p0, %p258_p1 }
   0x5   : > { %s1553_s30 = sshll.u32 (!%p259_p2), %s1548_s25, 3  ;;  %p306_p4 = scmp.lt.s32.totalorder (!%p259_p2), %s1548_s25, 7 }
   0x6   : > { %262 = sbr.rel (%p259_p2) target bundleno = 287 (0x11f), region = 48  ;;  %p301_p3 = scmp.lt.s32.totalorder (!%p259_p2), %s1553_s30, 63 }
   0xb   : > { %v1561_v0 = vld [vmem:[%s2166_s3 + $0x4] sm:$0xf]  ;;  %vm977_vm0 = vcmask 1043456   ;;  %v1575_v1 = vld [vmem:[%s2166_s3 + $0xc] sm:$0xf]  ;;  %v358_v2 = vlaneseq  ;;  %s2212_s30 = smov (!%p301_p3, %s1553_s30), 63 }
   0xc   : > { %v979_v3 = vsel %vm977_vm0, %v1561_v0, 0  ;;  %v1353_v4 = vsel %vm977_vm0, %v1575_v1, 0  ;;  %v722_v5 = vld [vmem:[%s2166_s3] sm:$0xf]  ;;  %v1570_v6 = vld [vmem:[%s2166_s3 + $0x8] sm:$0xf] }
   0xd   : > { %988 = vmatpush.bf16.msra.mxu0 %v979_v3  ;;  %1362 = vmatpush.bf16.msra.mxu3 %v1353_v4  ;;  %v1091_v7 = vsel %vm977_vm0, %v722_v5, 0  ;;  %v1222_v8 = vsel %vm977_vm0, %v1570_v6, 0  ;;  %v1667_v9 = vshrl.u32 %v358_v2, 7  ;;  %vm1605_vm1 = vmmov 1   ;;  %s2214_s25 = smov (!%p306_p4, %s1548_s25), 7  ;;  %s1554_s12 = sshll.u32 %s2212_s30, 2 }
   0xe   : > { %1100 = vmatpush.bf16.msra.mxu1 %v1091_v7  ;;  %1231 = vmatpush.bf16.msra.mxu2 %v1222_v8  ;;  %vm553_vm2 = vmpackc.low %vm1605_vm1, %vm1605_vm1  ;;  %v1606_v12 = vmov 0   ;;  %s1686_s15 = scalar_lea.vmem %s2163_s0, %s1554_s12  ;;  %s1582_s16 = sshll.u32 %s2214_s25, 4  ;;  %vm329_vm3 = vcmask 60416   ;;  %vm756_vm4 = vsmask.f32 256 }
   0xf   : > { %v360_v10 = vadd.s32 8, %v1667_v9  ;;  %v362_v11 = vadd.s32 24, %v1667_v9  ;;  %v1676_v13 = vsel %vm553_vm2, 65537, %v1606_v12  ;;  %v361_v17 = vadd.s32 16, %v1667_v9  ;;  %s1694_s19 = scalar_lea.vmem %s2164_s1, %s1582_s16  ;;  %v334_v18 = vld [vmem:[%s1686_s15] sm:$0xf]  ;;  %s1911_s22 = scalar_lea.vmem %s2165_s2, %s1582_s16 }
  0x10   : > { %v585_v16 = vshrl.u32 %v1676_v13, 16  ;;  %vm757_vm5 = vsmask.f32 4368  ;;  %v581_v21 = vshll.u32 %v1676_v13, 16  ;;  %v371_v22 = vand.u32 15, %v1667_v9  ;;  %s2121_s10 = scalar_lea.vmem %s2170_s7, %s1554_s12 }
  0x11   : > { %v378_v14 = vand.u32 15, %v360_v10  ;;  %v392_v15 = vand.u32 15, %v362_v11  ;;  %v327_v23 = vld [vmem:[%s1694_s19 + $0x8] sm:$0xf]  ;;  %v328_v24 = vld [vmem:[%s1694_s19 + $0xc] sm:$0xf]  ;;  %v1704_v28 = vunpack.c.l.b16 %v1606_v12  ;;  %v1710_v31 = vunpack.c.h.b16 %v1606_v12  ;;  %vm1728_vm10 = vmor %vm756_vm4, %vm757_vm5 }
  0x12   : > { %v335_v25 = vld [vmem:[%s1686_s15 + $0x4] sm:$0xf]  ;;  %v762_v26 = vrot.slane %v585_v16, 7  ;;  %v385_v27 = vand.u32 15, %v361_v17  ;;  %332 = vst.msk [vmem:[#allocation2 + $0x8] sm:$0xf] %vm329_vm3, %v327_v23 }
  0x13   : > { %v496_v19 = vadd.s32 1, %v378_v14  ;;  %v498_v20 = vadd.s32 1, %v392_v15  ;;  %v336_v29 = vld [vmem:[%s1686_s15 + $0x8] sm:$0xf]  ;;  %v337_v30 = vld [vmem:[%s1686_s15 + $0xc] sm:$0xf] }
  0x14   : > { %333 = vst.msk [vmem:[#allocation2 + $0xc] sm:$0xf] %vm329_vm3, %v328_v24  ;;  %v1713_v33 = vor.u32 %v762_v26, %v581_v21  ;;  %v1715_v34 = vrot.slane %v762_v26, 4  ;;  %v338_v35 = vld [vmem:[%s1686_s15 + $0x10] sm:$0xf]  ;;  %v463_v39 = vadd.s32 4294967295, %v371_v22 }
  0x15   : > { %vm512_vm6 = vcmp.lt.s32.totalorder %v496_v19, 16  ;;  %vm514_vm7 = vcmp.lt.s32.totalorder %v498_v20, 16  ;;  %342 = vst.msk [vmem:[#allocation2 + $0x10] sm:$0xf] %vm329_vm3, %v334_v18  ;;  %v339_v44 = vld [vmem:[%s1686_s15 + $0x14] sm:$0xf] }
  0x16   : > { %vm741_vm8 = vmpackc.low %vm512_vm6, %vm512_vm6  ;;  %343 = vst.msk [vmem:[#allocation2 + $0x14] sm:$0xf] %vm329_vm3, %v335_v25  ;;  %v830_v42 = vunpack.c.l.b16 %v1713_v33  ;;  %v831_v43 = vunpack.c.h.b16 %v1713_v33  ;;  %v326_v46 = vld [vmem:[%s1694_s19 + $0x4] sm:$0xf]  ;;  %v465_v47 = vadd.s32 4294967295, %v385_v27  ;;  %vm471_vm13 = vcmp.ge.s32.totalorder %v463_v39, 0 }
  0x17   : > { %vm743_vm9 = vmpackc.low %vm514_vm7, %vm514_vm7  ;;  %v749_v32 = vsel %vm741_vm8, 65537, %v1606_v12  ;;  %344 = vst.msk [vmem:[#allocation2 + $0x18] sm:$0xf] %vm329_vm3, %v336_v29  ;;  %v1752_v55 = vrot.slane %v585_v16, 4  ;;  %v1756_v57 = vrot.slane %v581_v21, 5 }
  0x18   : > { %v751_v36 = vsel %vm743_vm9, 65537, %v1606_v12  ;;  %v768_v37 = vshrl.u32 %v749_v32, 16  ;;  %v771_v38 = vshll.u32 %v749_v32, 16  ;;  %vm1735_vm11 = vcmp.ne.s32.totalorder %v830_v42, %v1704_v28  ;;  %345 = vst.msk [vmem:[#allocation2 + $0x1c] sm:$0xf] %vm329_vm3, %v337_v30  ;;  %vm552_vm0 = vmpackc.low %vm471_vm13, %vm471_vm13 }
  0x19   : > { %v786_v40 = vshrl.u32 %v751_v36, 16  ;;  %v789_v41 = vshll.u32 %v751_v36, 16  ;;  %vm1740_vm12 = vcmp.ne.s32.totalorder %v831_v43, %v1710_v31  ;;  %346 = vst.msk [vmem:[#allocation2 + $0x20] sm:$0xf] %vm329_vm3, %v338_v35  ;;  %vm473_vm15 = vcmp.ge.s32.totalorder %v465_v47, 0 }
  0x1a   : > { %v770_v45 = vrot.slane %v768_v37, 7  ;;  %vm836_vm14 = vmpackc.low %vm1740_vm12, %vm1735_vm11  ;;  %v1750_v54 = vld [vmem:[#allocation2 + $0x8] sm:$0xf]  ;;  %347 = vst.msk [vmem:[#allocation2 + $0x24] sm:$0xf] %vm329_vm3, %v339_v44  ;;  %v560_v62 = vsel %vm552_vm0, 65537, %v1606_v12  ;;  %v588_v50 = vor.u32 %v1752_v55, %v1756_v57 }
  0x1b   : > { %v1732_v49 = vrot.slane %v786_v40, 7  ;;  %v893_v60 = vsel %vm836_vm14, %v1750_v54, 0  ;;  %331 = vst.msk [vmem:[#allocation2 + $0x4] sm:$0xf] %vm329_vm3, %v326_v46  ;;  %vm1771_vm1 = vmpackc.low %vm473_vm15, %vm473_vm15  ;;  %vm568_vm2 = vsmask.f32 3328 }
  0x1c   : > { %v773_v52 = vor.u32 %v771_v38, %v770_v45  ;;  %v775_v53 = vrot.slane %v770_v45, 4  ;;  %vm569_vm4 = vsmask.f32 7440  ;;  %v1779_v3 = vld [vmem:[#allocation2 + $0xc] sm:$0xf]  ;;  %v913_v8 = vunpack.c.l.b16 %v893_v60 }
  0x1d   : > { %v791_v56 = vor.u32 %v789_v41, %v1732_v49  ;;  %v1781_v4 = vld [vmem:[#allocation2 + $0x10] sm:$0xf]  ;;  %v1783_v10 = vld [vmem:[#allocation2 + $0x14] sm:$0xf]  ;;  %v562_v16 = vsel %vm1771_vm1, 65537, %v1606_v12  ;;  %v572_v27 = vshll.u32 %v560_v62, 16 }
  0x1e   : > { %v774_v58 = vsel %vm1728_vm10, %v1715_v34, %v773_v52  ;;  %v783_v59 = vsel %vm1728_vm10, %v775_v53, %v1713_v33  ;;  %v1261_v15 = vld [vmem:[#allocation2 + $0x18] sm:$0xf]  ;;  %vm927_vm1 = vsmask.f32 7424  ;;  %vm964_vm12 = vcmask 64512  }
  0x1f   : > { %v792_v63 = vsel %vm1728_vm10, %v1715_v34, %v791_v56  ;;  %v837_v0 = vunpack.c.l.b16 %v774_v58  ;;  %v838_v1 = vunpack.c.h.b16 %v774_v58  ;;  %v844_v2 = vunpack.c.l.b16 %v783_v59  ;;  %v1262_v20 = vld [vmem:[#allocation2 + $0x1c] sm:$0xf]  ;;  %v340_v22 = vld [vmem:[%s1686_s15 + $0x18] sm:$0xf] }
  0x20   : > { %v845_v5 = vunpack.c.h.b16 %v783_v59  ;;  %v851_v6 = vunpack.c.l.b16 %v792_v63  ;;  %v852_v7 = vunpack.c.h.b16 %v792_v63  ;;  %v1270_v21 = vsel %vm836_vm14, %v1261_v15, 0  ;;  %v1263_v24 = vld [vmem:[#allocation2 + $0x20] sm:$0xf]  ;;  %v341_v45 = vld [vmem:[%s1686_s15 + $0x1c] sm:$0xf]  ;;  %vm1850_vm14 = vmor %vm568_vm2, %vm569_vm4 }
  0x21   : > { %vm1786_vm5 = vcmp.ne.s32.totalorder %v837_v0, %v1704_v28  ;;  %vm1791_vm6 = vcmp.ne.s32.totalorder %v838_v1, %v1710_v31  ;;  %vm1796_vm7 = vcmp.ne.s32.totalorder %v844_v2, %v1704_v28  ;;  %v1290_v26 = vunpack.c.l.b16 %v1270_v21  ;;  %v1264_v32 = vld [vmem:[#allocation2 + $0x24] sm:$0xf]  ;;  %348 = vst.msk [vmem:[#allocation2 + $0x28] sm:$0xf] %vm329_vm3, %v340_v22 }
  0x22   : > { %vm843_vm8 = vmpackc.low %vm1791_vm6, %vm1786_vm5  ;;  %vm1808_vm9 = vcmp.ne.s32.totalorder %v845_v5, %v1710_v31  ;;  %vm1813_vm13 = vcmp.ne.s32.totalorder %v851_v6, %v1704_v28  ;;  %vm1818_vm15 = vcmp.ne.s32.totalorder %v852_v7, %v1710_v31  ;;  %v574_v46 = vrot.slane %v572_v27, 5  ;;  %349 = vst.msk [vmem:[#allocation2 + $0x2c] sm:$0xf] %vm329_vm3, %v341_v45  ;;  %v527_v22 = vld [vmem:[#allocation2 + $0x4] sm:$0x8] }
  0x23   : > { %vm850_vm0 = vmpackc.low %vm1808_vm9, %vm1796_vm7  ;;  %v894_v23 = vsel %vm843_vm8, %v1779_v3, 0  ;;  %v1271_v25 = vsel %vm843_vm8, %v1262_v20, 0  ;;  %v575_v47 = vshrl.u32 %v560_v62, 16  ;;  %v591_v51 = vshll.u32 %v562_v16, 16 }
  0x24   : > { %vm857_vm11 = vmpackc.low %vm1818_vm15, %vm1813_vm13  ;;  %v895_v29 = vsel %vm850_vm0, %v1781_v4, 0  ;;  %v914_v30 = vunpack.c.l.b16 %v894_v23  ;;  %v1272_v35 = vsel %vm850_vm0, %v1263_v24, 0  ;;  %v1291_v36 = vunpack.c.l.b16 %v1271_v25  ;;  %v1122_v25 = vld [vmem:[#allocation2 + $0x14] sm:$0x8] }
  0x25   : > { %v896_v37 = vsel %vm857_vm11, %v1783_v10, 0  ;;  %v915_v38 = vunpack.c.l.b16 %v895_v29  ;;  %v1273_v39 = vsel %vm857_vm11, %v1264_v32, 0  ;;  %v1292_v40 = vunpack.c.l.b16 %v1272_v35  ;;  %v1913_v35 = vld [vmem:[#allocation2 + $0x18] sm:$0xf] }
  0x26   : > { %v916_v41 = vunpack.c.l.b16 %v896_v37  ;;  %v922_v42 = vpack.c.b16 %v914_v30, %v913_v8  ;;  %v1293_v43 = vunpack.c.l.b16 %v1273_v39  ;;  %v1299_v44 = vpack.c.b16 %v1291_v36, %v1290_v26  ;;  %v1124_v36 = vld [vmem:[#allocation2 + $0x1c] sm:$0xf]  ;;  %v1123_v39 = vld [vmem:[#allocation2 + $0x18] sm:$0xf] }
  0x27   : > { %v577_v62 = vrot.slane %v575_v47, 4  ;;  %v1854_v63 = vrot.slane %v588_v50, 4  ;;  %v593_v2 = vrot.slane %v591_v51, 5  ;;  %v595_v7 = vshrl.u32 %v562_v16, 16 }
  0x28   : > { %v1844_v52 = vpack.c.b16 %v916_v41, %v915_v38  ;;  %v929_v53 = vshrl.u32 %v922_v42, 16  ;;  %v931_v56 = vshll.u32 %v922_v42, 16  ;;  %v1846_v58 = vpack.c.b16 %v1293_v43, %v1292_v40 }
  0x29   : > { %v1305_v59 = vshrl.u32 %v1299_v44, 16  ;;  %v1307_v60 = vshll.u32 %v1299_v44, 16  ;;  %v578_v6 = vor.u32 %v577_v62, %v574_v46  ;;  %v650_v8 = vunpack.c.l.b16 %v574_v46 }
  0x2a   : > { %v933_v55 = vrot.slane %v931_v56, 1  ;;  %v936_v0 = vshll.u32 %v1844_v52, 16  ;;  %v1312_v1 = vshll.u32 %v1846_v58, 16  ;;  %v594_v15 = vsel %vm1850_vm14, %v1854_v63, %v593_v2 }
  0x2b   : > { %v1309_v5 = vrot.slane %v1307_v60, 1  ;;  %v579_v18 = vrot.slane %v578_v6, 4  ;;  %v597_v19 = vrot.slane %v595_v7, 4  ;;  %v651_v20 = vunpack.c.h.b16 %v574_v46 }
  0x2c   : > { %v934_v11 = vor.u32 %v933_v55, %v929_v53  ;;  %v1858_v13 = vrot.slane %v936_v0, 1  ;;  %v1860_v14 = vrot.slane %v1312_v1, 1  ;;  %vm1868_vm2 = vcmp.ne.s32.totalorder %v650_v8, %v1704_v28 }
  0x2d   : > { %v1310_v17 = vor.u32 %v1309_v5, %v1305_v59  ;;  %v664_v23 = vunpack.c.l.b16 %v594_v15  ;;  %v665_v24 = vunpack.c.h.b16 %v594_v15  ;;  %v584_v27 = vsel %vm1850_vm14, %v579_v18, %v1756_v57  ;;  %v1125_v59 = vld [vmem:[#allocation2 + $0x20] sm:$0xf] }
  0x2e   : > { %v939_v21 = vsel %vm927_vm1, %v934_v11, %v1858_v13  ;;  %v598_v29 = vor.u32 %v597_v19, %v593_v2  ;;  %vm655_vm4 = vcmp.ne.s32.totalorder %v651_v20, %v1710_v31  ;;  %v657_v30 = vunpack.c.l.b16 %v584_v27 }
  0x2f   : > { %1562 = vmatmul.msk.bf16.vlgmr.msra.gmra.mxu0 %vm964_vm12, %v939_v21  ;;  %v1315_v26 = vsel %vm927_vm1, %v1310_v17, %v1860_v14  ;;  %vm656_vm5 = vmpackc.low %vm655_vm4, %vm1868_vm2  ;;  %v658_v32 = vunpack.c.h.b16 %v584_v27  ;;  %vm1883_vm6 = vcmp.ne.s32.totalorder %v664_v23, %v1704_v28  ;;  %vm669_vm7 = vcmp.ne.s32.totalorder %v665_v24, %v1710_v31 }
  0x30   : > { %1576 = vmatmul.msk.bf16.vlgmr.msra.gmra.mxu3 %vm964_vm12, %v1315_v26  ;;  %v599_v37 = vrot.slane %v598_v29, 4  ;;  %vm670_vm8 = vmpackc.low %vm669_vm7, %vm1883_vm6  ;;  %v713_v38 = vsel %vm656_vm5, %v527_v22, 0  ;;  %v1131_v40 = vsel %vm656_vm5, %v1122_v25, 0  ;;  %v364_v41 = vadd.s32 40, %v1667_v9 }
  0x31   : > { %vm661_vm9 = vcmp.ne.s32.totalorder %v657_v30, %v1704_v28  ;;  %vm662_vm13 = vcmp.ne.s32.totalorder %v658_v32, %v1710_v31  ;;  %v715_v42 = vsel %vm670_vm8, %v1779_v3, 0  ;;  %v1019_v44 = vunpack.c.l.b16 %v713_v38  ;;  %v1265_v38 = vld [vmem:[#allocation2 + $0x28] sm:$0xf] }
  0x32   : > { %v604_v43 = vsel %vm1850_vm14, %v599_v37, %v1756_v57  ;;  %vm663_vm15 = vmpackc.low %vm662_vm13, %vm661_vm9  ;;  %v1133_v45 = vsel %vm670_vm8, %v1124_v36, 0  ;;  %v1151_v46 = vunpack.c.l.b16 %v1131_v40  ;;  %v406_v62 = vand.u32 15, %v364_v41 }
  0x33   : > { %v671_v47 = vunpack.c.l.b16 %v604_v43  ;;  %v672_v50 = vunpack.c.h.b16 %v604_v43  ;;  %v714_v51 = vsel %vm663_vm15, %v1750_v54, 0  ;;  %v1132_v53 = vsel %vm663_vm15, %v1123_v39, 0  ;;  %v350_v43 = vld [vmem:[%s1911_s22] sm:$0xf] }
  0x34   : > { %v1020_v56 = vunpack.c.l.b16 %v714_v51  ;;  %v1152_v60 = vunpack.c.l.b16 %v1132_v53  ;;  %v1021_v3 = vunpack.c.l.b16 %v715_v42  ;;  %v793_v55 = vrot.slane %v1732_v49, 4  ;;  %354 = vst.msk [vmem:[#allocation2 + $0x30] sm:$0xf] %vm329_vm3, %v350_v43 }
  0x35   : > { %vm675_vm0 = vcmp.ne.s32.totalorder %v671_v47, %v1704_v28  ;;  %vm676_vm11 = vcmp.ne.s32.totalorder %v672_v50, %v1710_v31  ;;  %v1153_v1 = vunpack.c.l.b16 %v1133_v45  ;;  %v500_v5 = vadd.s32 1, %v406_v62  ;;  %v351_v50 = vld [vmem:[%s1911_s22 + $0x4] sm:$0xf] }
  0x36   : > { %vm677_vm2 = vmpackc.low %vm676_vm11, %vm675_vm0  ;;  %v1028_v0 = vpack.c.b16 %v1020_v56, %v1019_v44  ;;  %v1160_v2 = vpack.c.b16 %v1152_v60, %v1151_v46  ;;  %v801_v7 = vsel %vm1728_vm10, %v793_v55, %v1713_v33  ;;  %vm1033_vm6 = vsmask.f32 4352  ;;  %355 = vst.msk [vmem:[#allocation2 + $0x34] sm:$0xf] %vm329_vm3, %v351_v50 }
  0x37   : > { %v716_v6 = vsel %vm677_vm2, %v1781_v4, 0  ;;  %v1134_v54 = vsel %vm677_vm2, %v1125_v59, 0  ;;  %vm516_vm4 = vcmp.lt.s32.totalorder %v500_v5, 16  ;;  %v858_v49 = vunpack.c.l.b16 %v801_v7 }
  0x38   : > { %v1022_v8 = vunpack.c.l.b16 %v716_v6  ;;  %v1035_v11 = vshrl.u32 %v1028_v0, 16  ;;  %v1038_v15 = vshll.u32 %v1028_v0, 16  ;;  %v1154_v17 = vunpack.c.l.b16 %v1134_v54  ;;  %vm745_vm5 = vmpackc.low %vm516_vm4, %vm516_vm4 }
  0x39   : > { %v1166_v18 = vshrl.u32 %v1160_v2, 16  ;;  %v1169_v19 = vshll.u32 %v1160_v2, 16  ;;  %v753_v24 = vsel %vm745_vm5, 65537, %v1606_v12  ;;  %v859_v25 = vunpack.c.h.b16 %v801_v7 }
  0x3a   : > { %v1029_v20 = vpack.c.b16 %v1022_v8, %v1021_v3  ;;  %v1037_v21 = vrot.slane %v1035_v11, 3  ;;  %v1040_v22 = vrot.slane %v1038_v15, 4  ;;  %v1161_v16 = vpack.c.b16 %v1154_v17, %v1153_v1 }
  0x3b   : > { %v1168_v4 = vrot.slane %v1166_v18, 3  ;;  %v1171_v23 = vrot.slane %v1169_v19, 4  ;;  %v804_v36 = vshrl.u32 %v753_v24, 16  ;;  %v807_v37 = vshll.u32 %v753_v24, 16  ;;  %v1266_v19 = vld [vmem:[#allocation2 + $0x2c] sm:$0xf] }
  0x3c   : > { %v1043_v26 = vshrl.u32 %v1029_v20, 16  ;;  %v1046_v27 = vshll.u32 %v1029_v20, 16  ;;  %v1174_v29 = vshrl.u32 %v1161_v16, 16  ;;  %v1041_v30 = vor.u32 %v1040_v22, %v1037_v21 }
  0x3d   : > { %v1177_v32 = vshll.u32 %v1161_v16, 16  ;;  %vm1916_vm7 = vcmp.ne.s32.totalorder %v858_v49, %v1704_v28  ;;  %v1172_v44 = vor.u32 %v1171_v23, %v1168_v4  ;;  %v806_v46 = vrot.slane %v804_v36, 7 }
  0x3e   : > { %v1045_v39 = vrot.slane %v1043_v26, 3  ;;  %v1048_v40 = vrot.slane %v1046_v27, 4  ;;  %v1176_v41 = vrot.slane %v1174_v29, 3  ;;  %vm1922_vm8 = vcmp.ne.s32.totalorder %v859_v25, %v1710_v31  ;;  %v1968_v29 = vld [vmem:[#allocation2 + $0x20] sm:$0xf] }
  0x3f   : > { %v1179_v45 = vrot.slane %v1177_v32, 4  ;;  %vm864_vm9 = vmpackc.low %vm1922_vm8, %vm1916_vm7  ;;  %v363_v53 = vadd.s32 32, %v1667_v9  ;;  %v366_v56 = vadd.s32 56, %v1667_v9  ;;  %v365_v59 = vadd.s32 48, %v1667_v9 }
  0x40   : > { %v1928_v51 = vor.u32 %v1048_v40, %v1045_v39  ;;  %v809_v62 = vor.u32 %v807_v37, %v806_v46  ;;  %v940_v3 = vshrl.u32 %v1844_v52, 16  ;;  %v1316_v55 = vshrl.u32 %v1846_v58, 16  ;;  %v1952_v58 = vld [vmem:[#allocation2 + $0x1c] sm:$0xf] }
  0x41   : > { %v1938_v60 = vor.u32 %v1179_v45, %v1176_v41  ;;  %v897_v1 = vsel %vm864_vm9, %v1913_v35, 0  ;;  %v1274_v2 = vsel %vm864_vm9, %v1265_v38, 0  ;;  %v399_v5 = vand.u32 15, %v363_v53 }
  0x42   : > { %v1050_v0 = vsel %vm1033_vm6, %v1041_v30, %v1928_v51  ;;  %v810_v9 = vsel %vm1728_vm10, %v1715_v34, %v809_v62  ;;  %v420_v54 = vand.u32 15, %v366_v56  ;;  %v811_v52 = vrot.slane %v806_v46, 4  ;;  %v1267_v30 = vld [vmem:[#allocation2 + $0x30] sm:$0xf] }
  0x43   : > { %1566 = vmatmul.msk.bf16.vlgmr.msra.gmra.mxu1 %vm964_vm12, %v1050_v0  ;;  %v1181_v6 = vsel %vm1033_vm6, %v1172_v44, %v1938_v60  ;;  %v865_v7 = vunpack.c.l.b16 %v810_v9  ;;  %v866_v8 = vunpack.c.h.b16 %v810_v9  ;;  %v467_v11 = vadd.s32 4294967295, %v399_v5 }
  0x44   : > { %1571 = vmatmul.msk.bf16.vlgmr.msra.gmra.mxu2 %vm964_vm12, %v1181_v6  ;;  %v413_v15 = vand.u32 15, %v365_v59  ;;  %v917_v17 = vunpack.c.l.b16 %v897_v1  ;;  %v942_v18 = vor.u32 %v940_v3, %v1858_v13  ;;  %v502_v49 = vadd.s32 1, %v420_v54  ;;  %v352_v3 = vld [vmem:[%s1911_s22 + $0x8] sm:$0xf]  ;;  %v1126_v6 = vld [vmem:[#allocation2 + $0x24] sm:$0xf] }
  0x45   : > { %v819_v20 = vsel %vm1728_vm10, %v811_v52, %v1713_v33  ;;  %vm869_vm13 = vcmp.ne.s32.totalorder %v865_v7, %v1704_v28  ;;  %vm870_vm15 = vcmp.ne.s32.totalorder %v866_v8, %v1710_v31  ;;  %vm475_vm0 = vcmp.ge.s32.totalorder %v467_v11, 0  ;;  %356 = vst.msk [vmem:[#allocation2 + $0x38] sm:$0xf] %vm329_vm3, %v352_v3 }
  0x46   : > { %v872_v21 = vunpack.c.l.b16 %v819_v20  ;;  %vm871_vm11 = vmpackc.low %vm870_vm15, %vm869_vm13  ;;  %v1294_v22 = vunpack.c.l.b16 %v1274_v2  ;;  %vm518_vm2 = vcmp.lt.s32.totalorder %v502_v49, 16  ;;  %v873_v16 = vunpack.c.h.b16 %v819_v20 }
  0x47   : > { %v469_v4 = vadd.s32 4294967295, %v413_v15  ;;  %v898_v23 = vsel %vm871_vm11, %v1952_v58, 0  ;;  %v1275_v13 = vsel %vm871_vm11, %v1266_v19, 0  ;;  %v1318_v24 = vor.u32 %v1316_v55, %v1860_v14  ;;  %vm556_vm4 = vmpackc.low %vm475_vm0, %vm475_vm0 }
  0x48   : > { %vm1963_vm5 = vcmp.ne.s32.totalorder %v872_v21, %v1704_v28  ;;  %v918_v25 = vunpack.c.l.b16 %v898_v23  ;;  %v1295_v26 = vunpack.c.l.b16 %v1275_v13  ;;  %v564_v27 = vsel %vm556_vm4, 65537, %v1606_v12  ;;  %vm747_vm7 = vmpackc.low %vm518_vm2, %vm518_vm2  ;;  %v2007_v13 = vld [vmem:[#allocation2 + $0x24] sm:$0xf] }
  0x49   : > { %vm877_vm8 = vcmp.ne.s32.totalorder %v873_v16, %v1710_v31  ;;  %v611_v32 = vshll.u32 %v564_v27, 16  ;;  %v615_v36 = vshrl.u32 %v564_v27, 16  ;;  %v755_v14 = vsel %vm747_vm7, 65537, %v1606_v12 }
  0x4a   : > { %vm878_vm9 = vmpackc.low %vm877_vm8, %vm1963_vm5  ;;  %vm477_vm13 = vcmp.ge.s32.totalorder %v469_v4, 0  ;;  %v924_v37 = vpack.c.b16 %v918_v25, %v917_v17  ;;  %v1301_v38 = vpack.c.b16 %v1295_v26, %v1294_v22  ;;  %v822_v39 = vshrl.u32 %v755_v14, 16  ;;  %v1127_v22 = vld [vmem:[#allocation2 + $0x28] sm:$0xf] }
  0x4b   : > { %v825_v40 = vshll.u32 %v755_v14, 16  ;;  %v613_v41 = vrot.slane %v611_v32, 5  ;;  %v617_v42 = vrot.slane %v615_v36, 4  ;;  %v1975_v43 = vsel %vm878_vm9, %v1968_v29, 0  ;;  %vm558_vm15 = vmpackc.low %vm477_vm13, %vm477_vm13 }
  0x4c   : > { %v1977_v44 = vsel %vm878_vm9, %v1267_v30, 0  ;;  %v944_v45 = vshll.u32 %v924_v37, 16  ;;  %v1320_v46 = vshll.u32 %v1301_v38, 16  ;;  %v1979_v47 = vrot.slane %v822_v39, 7 }
  0x4d   : > { %v919_v50 = vunpack.c.l.b16 %v1975_v43  ;;  %v614_v53 = vsel %vm1850_vm14, %v1854_v63, %v613_v41  ;;  %v618_v56 = vor.u32 %v617_v42, %v613_v41  ;;  %v948_v59 = vshrl.u32 %v924_v37, 16 }
  0x4e   : > { %v1296_v62 = vunpack.c.l.b16 %v1977_v44  ;;  %v946_v55 = vrot.slane %v944_v45, 1  ;;  %v1322_v0 = vrot.slane %v1320_v46, 1  ;;  %v678_v1 = vunpack.c.l.b16 %v614_v53 }
  0x4f   : > { %v679_v2 = vunpack.c.h.b16 %v614_v53  ;;  %v619_v5 = vrot.slane %v618_v56, 4  ;;  %v827_v9 = vor.u32 %v825_v40, %v1979_v47  ;;  %v1324_v54 = vshrl.u32 %v1301_v38, 16 }
  0x50   : > { %v566_v52 = vsel %vm558_vm15, 65537, %v1606_v12  ;;  %v947_v7 = vsel %vm927_vm1, %v942_v18, %v946_v55  ;;  %v1323_v8 = vsel %vm927_vm1, %v1318_v24, %v1322_v0  ;;  %vm682_vm0 = vcmp.ne.s32.totalorder %v678_v1, %v1704_v28 }
  0x51   : > { %vm683_vm11 = vcmp.ne.s32.totalorder %v679_v2, %v1710_v31  ;;  %1563 = vmatmul.msk.bf16.gmra.mxu0 %vm964_vm12, %v947_v7  ;;  %1577 = vmatmul.msk.bf16.gmra.mxu3 %vm964_vm12, %v1323_v8  ;;  %v624_v11 = vsel %vm1850_vm14, %v619_v5, %v1756_v57  ;;  %v828_v12 = vsel %vm1728_vm10, %v1715_v34, %v827_v9  ;;  %v631_v17 = vshll.u32 %v566_v52, 16  ;;  %v1268_v34 = vld [vmem:[#allocation2 + $0x34] sm:$0xf] }
  0x52   : > { %vm684_vm2 = vmpackc.low %vm683_vm11, %vm682_vm0  ;;  %v2002_v15 = vor.u32 %v948_v59, %v946_v55  ;;  %v685_v18 = vunpack.c.l.b16 %v624_v11  ;;  %v686_v19 = vunpack.c.h.b16 %v624_v11  ;;  %v879_v4 = vunpack.c.l.b16 %v828_v12 }
  0x53   : > { %v717_v49 = vsel %vm684_vm2, %v1783_v10, 0  ;;  %v1135_v20 = vsel %vm684_vm2, %v1126_v6, 0  ;;  %v880_v23 = vunpack.c.h.b16 %v828_v12  ;;  %v1326_v48 = vor.u32 %v1324_v54, %v1322_v0  ;;  %v1128_v54 = vld [vmem:[#allocation2 + $0x2c] sm:$0xf] }
  0x54   : > { %v1023_v21 = vunpack.c.l.b16 %v717_v49  ;;  %v1155_v16 = vunpack.c.l.b16 %v1135_v20  ;;  %vm689_vm4 = vcmp.ne.s32.totalorder %v685_v18, %v1704_v28  ;;  %vm690_vm5 = vcmp.ne.s32.totalorder %v686_v19, %v1710_v31 }
  0x55   : > { %v633_v24 = vrot.slane %v631_v17, 5  ;;  %vm691_vm10 = vmpackc.low %vm690_vm5, %vm689_vm4  ;;  %vm883_vm7 = vcmp.ne.s32.totalorder %v879_v4, %v1704_v28  ;;  %vm884_vm8 = vcmp.ne.s32.totalorder %v880_v23, %v1710_v31  ;;  %v635_v10 = vshrl.u32 %v566_v52, 16  ;;  %v1269_v23 = vld [vmem:[#allocation2 + $0x38] sm:$0x1] }
  0x56   : > { %v829_v33 = vrot.slane %v1979_v47, 4  ;;  %v718_v25 = vsel %vm691_vm10, %v1913_v35, 0  ;;  %v1136_v26 = vsel %vm691_vm10, %v1127_v22, 0  ;;  %vm885_vm9 = vmpackc.low %vm884_vm8, %vm883_vm7  ;;  %v706_v30 = vunpack.c.l.b16 %v1854_v63 }
  0x57   : > { %v634_v27 = vsel %vm1850_vm14, %v1854_v63, %v633_v24  ;;  %v1024_v32 = vunpack.c.l.b16 %v718_v25  ;;  %v1156_v36 = vunpack.c.l.b16 %v1136_v26  ;;  %v900_v14 = vsel %vm885_vm9, %v2007_v13, 0 }
  0x58   : > { %v1277_v37 = vsel %vm885_vm9, %v1268_v34, 0  ;;  %v920_v38 = vunpack.c.l.b16 %v900_v14  ;;  %v637_v40 = vrot.slane %v635_v10, 4  ;;  %v692_v41 = vunpack.c.l.b16 %v634_v27 }
  0x59   : > { %v1297_v39 = vunpack.c.l.b16 %v1277_v37  ;;  %v1030_v42 = vpack.c.b16 %v1024_v32, %v1023_v21  ;;  %v1162_v44 = vpack.c.b16 %v1156_v36, %v1155_v16  ;;  %v693_v35 = vunpack.c.h.b16 %v634_v27  ;;  %v723_v16 = vld [vmem:[#allocation2 + $0x28] sm:$0x1]  ;;  %v1130_v27 = vld [vmem:[#allocation2 + $0x34] sm:$0xf] }
  0x5a   : > { %v886_v45 = vunpack.c.l.b16 %v829_v33  ;;  %v2020_v46 = vpack.c.b16 %v920_v38, %v919_v50  ;;  %v638_v53 = vor.u32 %v637_v40, %v633_v24  ;;  %vm2025_vm13 = vcmp.ne.s32.totalorder %v692_v41, %v1704_v28 }
  0x5b   : > { %v2022_v47 = vpack.c.b16 %v1297_v39, %v1296_v62  ;;  %v1052_v59 = vshrl.u32 %v1030_v42, 16  ;;  %v1055_v3 = vshll.u32 %v1030_v42, 16  ;;  %v1183_v55 = vshrl.u32 %v1162_v44, 16 }
  0x5c   : > { %v1186_v0 = vshll.u32 %v1162_v44, 16  ;;  %v952_v1 = vshll.u32 %v2020_v46, 16  ;;  %v639_v5 = vrot.slane %v638_v53, 4  ;;  %vm2032_vm15 = vcmp.ne.s32.totalorder %v693_v35, %v1710_v31 }
  0x5d   : > { %v1328_v2 = vshll.u32 %v2022_v47, 16  ;;  %v1054_v50 = vrot.slane %v1052_v59, 3  ;;  %v1057_v62 = vrot.slane %v1055_v3, 4  ;;  %v1185_v6 = vrot.slane %v1183_v55, 3  ;;  %vm698_vm0 = vmpackc.low %vm2032_vm15, %vm2025_vm13 }
  0x5e   : > { %v1188_v9 = vrot.slane %v1186_v0, 4  ;;  %v954_v52 = vrot.slane %v952_v1, 1  ;;  %v644_v8 = vsel %vm1850_vm14, %v639_v5, %v1756_v57  ;;  %v719_v11 = vsel %vm698_vm0, %v1952_v58, 0  ;;  %v1129_v58 = vld [vmem:[#allocation2 + $0x30] sm:$0xf] }
  0x5f   : > { %v1330_v7 = vrot.slane %v1328_v2, 1  ;;  %v2044_v12 = vor.u32 %v1057_v62, %v1054_v50  ;;  %v699_v18 = vunpack.c.l.b16 %v644_v8  ;;  %v700_v19 = vunpack.c.h.b16 %v644_v8 }
  0x60   : > { %v2046_v17 = vor.u32 %v1188_v9, %v1185_v6  ;;  %v955_v49 = vsel %vm927_vm1, %v2002_v15, %v954_v52  ;;  %v1137_v21 = vsel %vm698_vm0, %v1128_v54, 0  ;;  %v887_v15 = vunpack.c.h.b16 %v829_v33 }
  0x61   : > { %v1331_v20 = vsel %vm927_vm1, %v1326_v48, %v1330_v7  ;;  %v1059_v22 = vsel %vm1033_vm6, %v1928_v51, %v2044_v12  ;;  %1564 = vmatmul.msk.bf16.gmra.mxu0 %vm964_vm12, %v955_v49  ;;  %vm2060_vm14 = vcmp.ne.s32.totalorder %v699_v18, %v1704_v28  ;;  %vm704_vm11 = vcmp.ne.s32.totalorder %v700_v19, %v1710_v31  ;;  %v2107_v48 = vld [vmem:[%s2168_s5] ss:$0 sm:$0xff] }
  0x62   : > { %v1190_v57 = vsel %vm1033_vm6, %v1938_v60, %v2046_v17  ;;  %1578 = vmatmul.msk.bf16.gmra.mxu3 %vm964_vm12, %v1331_v20  ;;  %1567 = vmatmul.msk.bf16.gmra.mxu1 %vm964_vm12, %v1059_v22  ;;  %v1025_v51 = vunpack.c.l.b16 %v719_v11  ;;  %vm890_vm2 = vcmp.ne.s32.totalorder %v886_v45, %v1704_v28  ;;  %vm705_vm4 = vmpackc.low %vm704_vm11, %vm2060_vm14  ;;  %v1157_v60 = vunpack.c.l.b16 %v1137_v21 }
  0x63   : > { %1572 = vmatmul.msk.bf16.gmra.mxu2 %vm964_vm12, %v1190_v57  ;;  %v956_v4 = vshrl.u32 %v2020_v46, 16  ;;  %v707_v34 = vunpack.c.h.b16 %v1854_v63  ;;  %vm2073_vm5 = vcmp.ne.s32.totalorder %v706_v30, %v1704_v28  ;;  %v720_v24 = vsel %vm705_vm4, %v1968_v29, 0 }
  0x64   : > { %v1138_v10 = vsel %vm705_vm4, %v1129_v58, 0  ;;  %vm891_vm10 = vcmp.ne.s32.totalorder %v887_v15, %v1710_v31  ;;  %v1332_v33 = vshrl.u32 %v2022_v47, 16  ;;  %v1026_v25 = vunpack.c.l.b16 %v720_v24 }
  0x65   : > { %v1158_v26 = vunpack.c.l.b16 %v1138_v10  ;;  %vm892_vm7 = vmpackc.low %vm891_vm10, %vm890_vm2  ;;  %vm711_vm8 = vcmp.ne.s32.totalorder %v707_v34, %v1710_v31  ;;  %v958_v14 = vor.u32 %v956_v4, %v954_v52 }
  0x66   : > { %v901_v32 = vsel %vm892_vm7, %v723_v16, 0  ;;  %v1278_v63 = vsel %vm892_vm7, %v1269_v23, 0  ;;  %vm712_vm9 = vmpackc.low %vm711_vm8, %vm2073_vm5  ;;  %v1031_v28 = vpack.c.b16 %v1026_v25, %v1025_v51  ;;  %v1334_v37 = vor.u32 %v1332_v33, %v1330_v7  ;;  %v2112_v33 = vld [vmem:[%s2169_s6] ss:$0 sm:$0xff] }
  0x67   : > { %v1163_v30 = vpack.c.b16 %v1158_v26, %v1157_v60  ;;  %v921_v36 = vunpack.c.l.b16 %v901_v32  ;;  %v1298_v29 = vunpack.c.l.b16 %v1278_v63  ;;  %v721_v38 = vsel %vm712_vm9, %v2007_v13, 0  ;;  %v2101_v60 = vld [vmem:[%s2167_s4] ss:$0 sm:$0xff] }
  0x68   : > { %v1139_v39 = vsel %vm712_vm9, %v1130_v27, 0  ;;  %v1061_v40 = vshrl.u32 %v1031_v28, 16  ;;  %v1064_v41 = vshll.u32 %v1031_v28, 16  ;;  %v1027_v45 = vunpack.c.l.b16 %v721_v38 }
  0x69   : > { %v1192_v42 = vshrl.u32 %v1163_v30, 16  ;;  %v1195_v44 = vshll.u32 %v1163_v30, 16  ;;  %v926_v31 = vpack.c.b16 %v921_v36, %v921_v36  ;;  %v1303_v35 = vpack.c.b16 %v1298_v29, %v1298_v29 }
  0x6a   : > { %v1159_v46 = vunpack.c.l.b16 %v1139_v39  ;;  %v1063_v47 = vrot.slane %v1061_v40, 3  ;;  %v1066_v53 = vrot.slane %v1064_v41, 4  ;;  %v1032_v0 = vpack.c.b16 %v1027_v45, %v1027_v45 }
  0x6b   : > { %v1194_v56 = vrot.slane %v1192_v42, 3  ;;  %v1197_v59 = vrot.slane %v1195_v44, 4  ;;  %v960_v3 = vshll.u32 %v926_v31, 16  ;;  %v1336_v55 = vshll.u32 %v1303_v35, 16 }
  0x6c   : > { %v1164_v1 = vpack.c.b16 %v1159_v46, %v1159_v46  ;;  %v1067_v2 = vor.u32 %v1066_v53, %v1063_v47  ;;  %v1070_v50 = vshrl.u32 %v1032_v0, 16  ;;  %v1073_v62 = vshll.u32 %v1032_v0, 16 }
  0x6d   : > { %v1198_v5 = vor.u32 %v1197_v59, %v1194_v56  ;;  %v962_v13 = vrot.slane %v960_v3, 1  ;;  %v1338_v43 = vrot.slane %v1336_v55, 1 }
  0x6e   : > { %v1068_v6 = vsel %vm1033_vm6, %v2044_v12, %v1067_v2  ;;  %v1201_v54 = vshrl.u32 %v1164_v1, 16  ;;  %v1204_v52 = vshll.u32 %v1164_v1, 16  ;;  %v1072_v11 = vrot.slane %v1070_v50, 3 }
  0x6f   : > { %v1199_v9 = vsel %vm1033_vm6, %v2046_v17, %v1198_v5  ;;  %v963_v7 = vsel %vm927_vm1, %v958_v14, %v962_v13  ;;  %v1339_v8 = vsel %vm927_vm1, %v1334_v37, %v1338_v43  ;;  %v1075_v18 = vrot.slane %v1073_v62, 4 }
  0x70   : > { %v1203_v19 = vrot.slane %v1201_v54, 3  ;;  %v1206_v49 = vrot.slane %v1204_v52, 4 }
  0x71   : > { %1565 = vmatmul.msk.bf16.gmra.mxu0 %vm964_vm12, %v963_v7  ;;  %v1076_v12 = vor.u32 %v1075_v18, %v1072_v11 }
  0x72   : > { %1579 = vmatmul.msk.bf16.gmra.mxu3 %vm964_vm12, %v1339_v8  ;;  %1568 = vmatmul.msk.bf16.gmra.mxu1 %vm964_vm12, %v1068_v6  ;;  %v1207_v17 = vor.u32 %v1206_v49, %v1203_v19 }
  0x73   : > { %1573 = vmatmul.msk.bf16.gmra.mxu2 %vm964_vm12, %v1199_v9  ;;  %v1077_v20 = vsel %vm1033_vm6, %v1067_v2, %v1076_v12 }
  0x74   : > { %v1208_v21 = vsel %vm1033_vm6, %v1198_v5, %v1207_v17 }
  0x82   : > { %1569 = vmatmul.msk.bf16.gmra.mxu1 %vm964_vm12, %v1077_v20 }
  0x83   : > { %1574 = vmatmul.msk.bf16.gmra.mxu2 %vm964_vm12, %v1208_v21 }
  0xac   : > { %v990_v57 = vpop.f32.mrf.mxu0 }
  0xb3   : > { %v1364_v58 = vpop.f32.mrf.mxu3 }
  0xb4   : > { %v992_v34 = vpop.f32.mrf.mxu0 }
  0xbb   : > { %v1366_v63 = vpop.f32.mrf.mxu3 }
  0xc0   : > { %v1102_v22 = vpop.f32.mrf.mxu1 }
  0xc1   : > { %v1103_v61 = vadd.f32 %v1102_v22, %v990_v57 }
  0xc7   : > { %v1233_v51 = vpop.f32.mrf.mxu2 }
  0xc8   : > { %v1253_v15 = vadd.f32 %v1233_v51, %v1103_v61  ;;  %v1104_v4 = vpop.f32.mrf.mxu1 }
  0xc9   : > { %v1105_v10 = vadd.f32 %v1104_v4, %v992_v34 }
  0xca   : > { %v1384_v16 = vadd.f32 %v1364_v58, %v1253_v15 }
  0xcc   : > { %v1396_v23 = vadd.f32 %v2101_v60, %v1384_v16 }
  0xce   : > { %vm1404_vm1 = vcmp.ge.f32.partialorder %v1396_v23, 0.0  ;;  %v1412_v24 = vmul.f32 0.01, %v1396_v23  ;;  %v995_v39 = vpop.f32.mrf.mxu0 }
  0xcf   : > { %v1235_v25 = vpop.f32.mrf.mxu2 }
  0xd0   : > { %v1420_v26 = vsel %vm1404_vm1, %v1396_v23, %v1412_v24  ;;  %v1254_v27 = vadd.f32 %v1235_v25, %v1105_v10 }
  0xd1   : > { %v1432_v32 = vmul.f32 %v2107_v48, %v1420_v26 }
  0xd2   : > { %v1385_v28 = vadd.f32 %v1366_v63, %v1254_v27 }
  0xd3   : > { %v1444_v30 = vadd.f32 %v2112_v33, %v1432_v32 }
  0xd4   : > { %v1397_v36 = vadd.f32 %v2101_v60, %v1385_v28  ;;  %v1369_v42 = vpop.f32.mrf.mxu3 }
  0xd5   : > { %v1452_v29 = vpack.c.bf16 %v1444_v30, %v1444_v30 }
  0xd6   : > { %vm1405_vm12 = vcmp.ge.f32.partialorder %v1397_v36, 0.0  ;;  %v1413_v14 = vmul.f32 0.01, %v1397_v36  ;;  %v997_v35 = vpop.f32.mrf.mxu0 }
  0xd7   : > { %1460 = vst.msk [vmem:[%s2121_s10] sm:$0xf] %vm329_vm3, %v1452_v29 }
  0xd8   : > { %v1421_v37 = vsel %vm1405_vm12, %v1397_v36, %v1413_v14 }
  0xd9   : > { %v1433_v38 = vmul.f32 %v2107_v48, %v1421_v37 }
  0xdb   : > { %v1445_v40 = vadd.f32 %v2112_v33, %v1433_v38 }
  0xdc   : > { %v1371_v53 = vpop.f32.mrf.mxu3 }
  0xdd   : > { %v1453_v41 = vpack.c.bf16 %v1445_v40, %v1445_v40 }
  0xde   : > { %v1000_v0 = vpop.f32.mrf.mxu0 }
  0xdf   : > { %1461 = vst.msk [vmem:[%s2121_s10 + $0x4] sm:$0xf] %vm329_vm3, %v1453_v41  ;;  %v1107_v44 = vpop.f32.mrf.mxu1 }
  0xe0   : > { %v1108_v31 = vadd.f32 %v1107_v44, %v995_v39 }
  0xe5   : > { %v1374_v6 = vpop.f32.mrf.mxu3 }
  0xe6   : > { %v1238_v45 = vpop.f32.mrf.mxu2  ;;  %v1002_v49 = vpop.f32.mrf.mxu0 }
  0xe7   : > { %v1255_v46 = vadd.f32 %v1238_v45, %v1108_v31  ;;  %v1109_v47 = vpop.f32.mrf.mxu1 }
  0xe8   : > { %v1110_v55 = vadd.f32 %v1109_v47, %v997_v35 }
  0xe9   : > { %v1386_v56 = vadd.f32 %v1369_v42, %v1255_v46 }
  0xeb   : > { %v1398_v59 = vadd.f32 %v2101_v60, %v1386_v56 }
  0xed   : > { %vm1406_vm6 = vcmp.ge.f32.partialorder %v1398_v59, 0.0  ;;  %v1414_v3 = vmul.f32 0.01, %v1398_v59  ;;  %v1376_v57 = vpop.f32.mrf.mxu3 }
  0xee   : > { %v1240_v1 = vpop.f32.mrf.mxu2  ;;  %v1005_v10 = vpop.f32.mrf.mxu0 }
  0xef   : > { %v1422_v2 = vsel %vm1406_vm6, %v1398_v59, %v1414_v3  ;;  %v1256_v5 = vadd.f32 %v1240_v1, %v1110_v55  ;;  %v1112_v43 = vpop.f32.mrf.mxu1 }
  0xf0   : > { %v1434_v13 = vmul.f32 %v2107_v48, %v1422_v2  ;;  %v1113_v54 = vadd.f32 %v1112_v43, %v1000_v0 }
  0xf1   : > { %v1387_v50 = vadd.f32 %v1371_v53, %v1256_v5 }
  0xf2   : > { %v1446_v62 = vadd.f32 %v2112_v33, %v1434_v13 }
  0xf3   : > { %v1399_v9 = vadd.f32 %v2101_v60, %v1387_v50 }
  0xf4   : > { %v1454_v52 = vpack.c.bf16 %v1446_v62, %v1446_v62 }
  0xf5   : > { %vm1407_vm13 = vcmp.ge.f32.partialorder %v1399_v9, 0.0  ;;  %v1415_v7 = vmul.f32 0.01, %v1399_v9  ;;  %v1379_v63 = vpop.f32.mrf.mxu3 }
  0xf6   : > { %1462 = vst.msk [vmem:[%s2121_s10 + $0x8] sm:$0xf] %vm329_vm3, %v1454_v52  ;;  %v1243_v8 = vpop.f32.mrf.mxu2  ;;  %v1007_v41 = vpop.f32.mrf.mxu0 }
  0xf7   : > { %v1423_v11 = vsel %vm1407_vm13, %v1399_v9, %v1415_v7  ;;  %v1257_v18 = vadd.f32 %v1243_v8, %v1113_v54  ;;  %v1114_v12 = vpop.f32.mrf.mxu1 }
  0xf8   : > { %v1435_v19 = vmul.f32 %v2107_v48, %v1423_v11  ;;  %v1115_v58 = vadd.f32 %v1114_v12, %v1002_v49 }
  0xf9   : > { %v1388_v17 = vadd.f32 %v1374_v6, %v1257_v18 }
  0xfa   : > { %v1447_v20 = vadd.f32 %v2112_v33, %v1435_v19 }
  0xfb   : > { %v1400_v21 = vadd.f32 %v2101_v60, %v1388_v17 }
  0xfc   : > { %v1455_v22 = vpack.c.bf16 %v1447_v20, %v1447_v20 }
  0xfd   : > { %vm1408_vm15 = vcmp.ge.f32.partialorder %v1400_v21, 0.0  ;;  %v1416_v61 = vmul.f32 0.01, %v1400_v21  ;;  %v1381_v47 = vpop.f32.mrf.mxu3 }
  0xfe   : > { %1463 = vst.msk [vmem:[%s2121_s10 + $0xc] sm:$0xf] %vm329_vm3, %v1455_v22  ;;  %v1245_v51 = vpop.f32.mrf.mxu2 }
  0xff   : > { %v1424_v15 = vsel %vm1408_vm15, %v1400_v21, %v1416_v61  ;;  %v1258_v16 = vadd.f32 %v1245_v51, %v1115_v58  ;;  %v1117_v23 = vpop.f32.mrf.mxu1 }
 0x100   : > { %v1436_v4 = vmul.f32 %v2107_v48, %v1424_v15  ;;  %v1118_v26 = vadd.f32 %v1117_v23, %v1005_v10 }
 0x101   : > { %v1389_v34 = vadd.f32 %v1376_v57, %v1258_v16 }
 0x102   : > { %v1448_v24 = vadd.f32 %v2112_v33, %v1436_v4 }
 0x103   : > { %v1401_v25 = vadd.f32 %v2101_v60, %v1389_v34 }
 0x104   : > { %v1456_v27 = vpack.c.bf16 %v1448_v24, %v1448_v24 }
 0x105   : > { %vm1409_vm0 = vcmp.ge.f32.partialorder %v1401_v25, 0.0  ;;  %v1417_v32 = vmul.f32 0.01, %v1401_v25 }
 0x106   : > { %1464 = vst.msk [vmem:[%s2121_s10 + $0x10] sm:$0xf] %vm329_vm3, %v1456_v27  ;;  %v1248_v28 = vpop.f32.mrf.mxu2 }
 0x107   : > { %v1425_v30 = vsel %vm1409_vm0, %v1401_v25, %v1417_v32  ;;  %v1259_v36 = vadd.f32 %v1248_v28, %v1118_v26  ;;  %v1119_v38 = vpop.f32.mrf.mxu1 }
 0x108   : > { %v1437_v29 = vmul.f32 %v2107_v48, %v1425_v30  ;;  %v1120_v44 = vadd.f32 %v1119_v38, %v1007_v41 }
 0x109   : > { %v1390_v14 = vadd.f32 %v1379_v63, %v1259_v36 }
 0x10a   : > { %v1449_v37 = vadd.f32 %v2112_v33, %v1437_v29 }
 0x10b   : > { %v1402_v39 = vadd.f32 %v2101_v60, %v1390_v14 }
 0x10c   : > { %v1457_v40 = vpack.c.bf16 %v1449_v37, %v1449_v37 }
 0x10d   : > { %vm1410_vm14 = vcmp.ge.f32.partialorder %v1402_v39, 0.0  ;;  %v1418_v42 = vmul.f32 0.01, %v1402_v39 }
 0x10e   : > { %1465 = vst.msk [vmem:[%s2121_s10 + $0x14] sm:$0xf] %vm329_vm3, %v1457_v40  ;;  %v1250_v31 = vpop.f32.mrf.mxu2 }
 0x10f   : > { %v1426_v35 = vsel %vm1410_vm14, %v1402_v39, %v1418_v42  ;;  %v1260_v45 = vadd.f32 %v1250_v31, %v1120_v44 }
 0x110   : > { %v1438_v46 = vmul.f32 %v2107_v48, %v1426_v35 }
 0x111   : > { %v1391_v53 = vadd.f32 %v1381_v47, %v1260_v45 }
 0x112   : > { %v1450_v56 = vadd.f32 %v2112_v33, %v1438_v46 }
 0x113   : > { %v1403_v59 = vadd.f32 %v2101_v60, %v1391_v53 }
 0x114   : > { %v1458_v3 = vpack.c.bf16 %v1450_v56, %v1450_v56 }
 0x115   : > { %vm1411_vm11 = vcmp.ge.f32.partialorder %v1403_v59, 0.0  ;;  %v1419_v55 = vmul.f32 0.01, %v1403_v59 }
 0x116   : > { %1466 = vst.msk [vmem:[%s2121_s10 + $0x18] sm:$0xf] %vm329_vm3, %v1458_v3 }
 0x117   : > { %v1427_v0 = vsel %vm1411_vm11, %v1403_v59, %v1419_v55 }
 0x118   : > { %v1439_v1 = vmul.f32 %v2107_v48, %v1427_v0 }
 0x11a   : > { %v1451_v2 = vadd.f32 %v2112_v33, %v1439_v1 }
 0x11c   : > { %v1459_v5 = vpack.c.bf16 %v1451_v2, %v1451_v2 }
 0x11e   : > { %1467 = vst.msk [vmem:[%s2121_s10 + $0x1c] sm:$0xf] %vm329_vm3, %v1459_v5 }
 0x11f PF: > { %s17_s24 = sadd.s32 1, %s1603_s24  }
 0x120   : > { %p14_p5 = scmp.ge.s32.totalorder %s17_s24, 10  }
 0x122   :  { %16 = sbr.rel (!%p14_p5) target bundleno = 1 (0x1), region = 87 }

</bundles_post_ra>
